<compile_context>
chip_gen: v7x
topology: tpu7x:2x2x1
jax: 0.10.0
libtpu: 0.0.40
codegen_flags: <defaults>
</compile_context>

<pallas_src>
import functools

import numpy as np
import jax
import jax.numpy as jnp
from jax.experimental import pallas as pl

# --------------------------- static configuration ---------------------------
# TransformerBlock(dim=32, input_resolution=(3,3), num_heads=4, window_size=3,
#                  mlp_ratio=4)
DIM = 32
NUM_HEADS = 4
HEAD_DIM = DIM // NUM_HEADS        # 8
WIN = 3
N = WIN * WIN                      # 9 tokens per window
B = 2                              # windows per call
MLP_RATIO = 4
HID1 = DIM * MLP_RATIO             # mlp1 / mlpfusion hidden = 128
HID2 = HID1 // 2                   # mlp2 hidden = 64
SCALE = HEAD_DIM ** -0.5
LN_EPS = 1e-5
NEG_INF = -1e9
F32 = jnp.float32
BF16 = jnp.bfloat16

# slab A (bf16, 32 lanes): per attention module [Wq x4 | Wk x4 | Wvp x4 | fc2]
_WQ, _WK, _WVP, _FC2 = 0, 128, 256, 384
A_MOD_ROWS = 512
A_FUS_FC2 = 2 * A_MOD_ROWS         # fusion fc2 base (1024)
A_ROWS = A_FUS_FC2 + HID1          # 1152

# slab B (bf16, 128 lanes): [fc1_sa1 | fc1_sa2 | fusion_fc1a | fusion_fc1b]
_B_FUS_A = 2 * DIM                 # 64
_B_FUS_B = 3 * DIM                 # 96
B_ROWS = 4 * DIM                   # 128

# slab P32 (f32, 32 lanes): LN params, small biases, tiled conv weights
_LN1W, _LN1B, _LN2W, _LN2B = 0, 1, 2, 3
_BPROJ, _B2, _BQ, _BK, _BVP = 4, 5, 6, 10, 14
P32_MOD_ROWS = 18
_P_FUS_B2 = 2 * P32_MOD_ROWS       # 36
_P_C1B = 37                        # merge_conv1 bias row
_P_C2B = 38                        # merge_conv2 bias row


def _p32_conv_layout(bsz):
    """Row offsets of the two bsz-tiled depthwise-conv weights (8-row aligned)."""
    bn = bsz * N
    c1w = 40
    c2w = -(-(c1w + bn) // 8) * 8
    return c1w, c2w, c2w + bn


# --------------------------- small in-kernel helpers -------------------------
_SQRT_2_OVER_PI = 0.7978845608028654
_GELU_C = 0.044715


def _gelu(x):
    # TODO(synk): torch nn.GELU defaults to exact erf; Mosaic has no erf
    # lowering, so the tanh-form GELU is used (max abs deviation ~3e-4).
    return 0.5 * x * (1.0 + jnp.tanh(_SQRT_2_OVER_PI * (x + _GELU_C * x * x * x)))


def _ln(x, w, b):
    mu = jnp.mean(x, axis=-1, keepdims=True)
    xc = x - mu
    var = jnp.mean(xc * xc, axis=-1, keepdims=True)
    return xc * jax.lax.rsqrt(var + LN_EPS) * w + b


def _row(ref, i):                  # (1, lanes) load at a static row
    return ref[i:i + 1, :]


def _mm(a, b):                     # (M,K) @ (K,N), f32 accumulation
    return jax.lax.dot_general(a, b, (((1,), (0,)), ((), ())),
                               preferred_element_type=F32)


def _mm_nt(a, b):                  # (M,K) @ (N,K)^T
    return jax.lax.dot_general(a, b, (((1,), (1,)), ((), ())),
                               preferred_element_type=F32)


# ------------------------------ Pallas kernel --------------------------------
def _attn_block(x, m, wA, wB, p32, pb1, abias, q_in):
    """selfAttn{1,2} on the batch-flattened (B*N, C) matrix:
       LN -> per-head W-MSA (+rel-pos bias & cross-batch mask) -> proj ->
       residual -> LN -> MLP -> residual.  m selects the weight set."""
    a0 = m * A_MOD_ROWS
    p0 = m * P32_MOD_ROWS

    xn = _ln(x, _row(p32, p0 + _LN1W), _row(p32, p0 + _LN1B))
    xnb = xn.astype(BF16)

    o = jnp.zeros((x.shape[0], DIM), F32)
    q_out = []
    for h in range(NUM_HEADS):                      # static per-head loop
        if q_in is None:
            # scale already folded into Wq / bq at pack time
            q_h = _mm(xnb, wA[a0 + _WQ + h * DIM:a0 + _WQ + (h + 1) * DIM, :]) \
                  + _row(p32, p0 + _BQ + h)
        else:
            q_h = q_in[h]                           # pre-scaled query from sa1
        k_h = _mm(xnb, wA[a0 + _WK + h * DIM:a0 + _WK + (h + 1) * DIM, :]) \
              + _row(p32, p0 + _BK + h)
        # v already composed with this head's slice of the output projection
        vp_h = _mm(xnb, wA[a0 + _WVP + h * DIM:a0 + _WVP + (h + 1) * DIM, :]) \
               + _row(p32, p0 + _BVP + h)

        # abias = tiled rel-pos bias + (-1e9) on cross-window entries, so the
        # (B*N, B*N) softmax factorizes exactly into per-window softmaxes.
        logits = _mm_nt(q_h.astype(BF16), k_h.astype(BF16)) \
                 + abias[m * NUM_HEADS + h]
        logits = logits - jnp.max(logits, axis=-1, keepdims=True)
        e = jnp.exp(logits)                         # masked entries -> exactly 0
        p = e * pl.reciprocal(jnp.sum(e, axis=-1, keepdims=True), approx=True)

        o = o + _mm(p.astype(BF16), vp_h.astype(BF16))   # accumulate (B*N, C)
        q_out.append(q_h)

    x1 = x + o + _row(p32, p0 + _BPROJ)             # attention residual
    x1n = _ln(x1, _row(p32, p0 + _LN2W), _row(p32, p0 + _LN2B))
    hid = _gelu(_mm(x1n.astype(BF16), wB[m * DIM:(m + 1) * DIM, :])
                + _row(pb1, m))                     # lanes >= hid are exactly 0
    out = x1 + _mm(hid.astype(BF16), wA[a0 + _FC2:a0 + _FC2 + HID1, :]) \
          + _row(p32, p0 + _B2)                     # MLP residual
    return out, q_out


def _fused_kernel(bsz, xi_ref, xb_ref, wA_ref, wB_ref, p32_ref, pb1_ref,
                  abias_ref, out_ref):
    xi = xi_ref[...]                                # (B*N, C)
    xb = xb_ref[...]

    attn_image, q1 = _attn_block(xi, 0, wA_ref, wB_ref, p32_ref, pb1_ref,
                                 abias_ref, None)               # selfAttn1
    attn_building, _ = _attn_block(xb, 1, wA_ref, wB_ref, p32_ref, pb1_ref,
                                   abias_ref, None)             # selfAttn2
    image_attn_build, _ = _attn_block(attn_building, 1, wA_ref, wB_ref,
                                      p32_ref, pb1_ref, abias_ref, q1)
    # ^ selfAttn2(query=q1): q1 never leaves VMEM/vregs.

    # mlpfusion(cat([attn_image, image_attn_build], -1)) + attn_image,
    # with fc1 split into two halves so no lane concatenation is needed.
    hid = _gelu(_mm(attn_image.astype(BF16), wB_ref[_B_FUS_A:_B_FUS_A + DIM, :])
                + _mm(image_attn_build.astype(BF16),
                      wB_ref[_B_FUS_B:_B_FUS_B + DIM, :])
                + _row(pb1_ref, 2))
    x = attn_image + _mm(hid.astype(BF16),
                         wA_ref[A_FUS_FC2:A_FUS_FC2 + HID1, :]) \
        + _row(p32_ref, _P_FUS_B2)

    # Depthwise 3x3 'valid' merge convs on a 3x3 map == per-window weighted
    # row sum, done as one 0/1 selector matmul each (f32 on the MXU).
    bn = bsz * N
    row_id = jax.lax.broadcasted_iota(jnp.int32, (bsz, bn), 0)
    col_id = jax.lax.broadcasted_iota(jnp.int32, (bsz, bn), 1)
    sel = ((col_id >= row_id * N) & (col_id < (row_id + 1) * N)).astype(F32)

    c1w, c2w, _ = _p32_conv_layout(bsz)
    prod_x = x * p32_ref[c2w:c2w + bn, :]                     # merge_conv2
    prod_ab = attn_building * p32_ref[c1w:c1w + bn, :]        # merge_conv1
    out_ref[0:bsz, :] = _mm(sel, prod_x) + _row(p32_ref, _P_C2B)
    out_ref[bsz:2 * bsz, :] = _mm(sel, prod_ab) + _row(p32_ref, _P_C1B)


# --------------------------------- wrapper -----------------------------------
def transformer_block_forward(window_image, window_building, packed):
    """Both-inputs branch of TransformerBlock.forward (one fused Pallas call).
    `packed` must have been built by pack_params() for the same batch size."""
    bsz, n, c = window_image.shape
    assert n == N and c == DIM, "input feature has wrong size"
    xi = window_image.reshape(bsz * N, DIM).astype(F32)
    xb = window_building.reshape(bsz * N, DIM).astype(F32)

    out = pl.pallas_call(
        functools.partial(_fused_kernel, bsz),
        out_shape=jax.ShapeDtypeStruct((2 * bsz, DIM), F32),
    )(xi, xb, packed['wA'], packed['wB'], packed['p32'], packed['pb1'],
      packed['abias'])
    return out[:bsz].reshape(bsz, 1, DIM), out[bsz:].reshape(bsz, 1, DIM)


# --------------------------- parameter construction --------------------------
def _relative_position_index():
    coords = np.stack(np.meshgrid(np.arange(WIN), np.arange(WIN), indexing='ij'))
    flat = coords.reshape(2, -1)
    rel = flat[:, :, None] - flat[:, None, :]
    rel = rel.transpose(1, 2, 0).astype(np.int64)
    rel[..., 0] += WIN - 1
    rel[..., 1] += WIN - 1
    rel[..., 0] *= 2 * WIN - 1
    return rel.sum(-1)                              # (N, N)


_REL_IDX = _relative_position_index()


def init_torch_params(key):
    """Parameters in torch layout (Linear weight = (out, in), etc.)."""
    kit = iter(jax.random.split(key, 32))

    def nrm(shape, std=0.02):
        return std * jax.random.normal(next(kit), shape, dtype=F32)

    def sa(hidden):
        return dict(ln1_w=jnp.ones((DIM,), F32), ln1_b=jnp.zeros((DIM,), F32),
                    qkv_w=nrm((3 * DIM, DIM)), qkv_b=nrm((3 * DIM,)),
                    proj_w=nrm((DIM, DIM)), proj_b=nrm((DIM,)),
                    relb_table=nrm(((2 * WIN - 1) ** 2, NUM_HEADS)),
                    ln2_w=jnp.ones((DIM,), F32), ln2_b=jnp.zeros((DIM,), F32),
                    fc1_w=nrm((hidden, DIM)), fc1_b=nrm((hidden,)),
                    fc2_w=nrm((DIM, hidden)), fc2_b=nrm((DIM,)))

    def conv():
        return dict(w=nrm((DIM, 1, WIN, WIN), std=0.1), b=nrm((DIM,), std=0.1))

    return dict(sa1=sa(HID1), sa2=sa(HID2),
                fusion=dict(fc1_w=nrm((HID1, 2 * DIM)), fc1_b=nrm((HID1,)),
                            fc2_w=nrm((DIM, HID1)), fc2_b=nrm((DIM,))),
                conv1=conv(), conv2=conv())


def pack_params(tp, bsz):
    """Pack torch-layout params into the kernel's resident slabs (static bsz)."""
    bn = bsz * N
    c1w, c2w, p32_rows = _p32_conv_layout(bsz)

    wA = np.zeros((A_ROWS, DIM), np.float32)
    wB = np.zeros((B_ROWS, 128), np.float32)
    p32 = np.zeros((p32_rows, DIM), np.float32)
    pb1 = np.zeros((3, 128), np.float32)
    abias = np.zeros((2 * NUM_HEADS, bn, bn), np.float32)

    rel_idx = _REL_IDX.reshape(-1)
    win_ids = np.arange(bn) // N
    xmask = np.where(win_ids[:, None] == win_ids[None, :], 0.0,
                     NEG_INF).astype(np.float32)

    for m, name in enumerate(('sa1', 'sa2')):
        p = {k: np.asarray(v) for k, v in tp[name].items()}
        a0, p0 = m * A_MOD_ROWS, m * P32_MOD_ROWS
        W, bqkv, Wp = p['qkv_w'], p['qkv_b'], p['proj_w']
        for h in range(NUM_HEADS):
            s = h * HEAD_DIM
            Wq = W[s:s + HEAD_DIM, :].T * SCALE                  # (32, 8)
            Wk = W[DIM + s:DIM + s + HEAD_DIM, :].T
            Wv = W[2 * DIM + s:2 * DIM + s + HEAD_DIM, :].T
            Pr = Wp.T[s:s + HEAD_DIM, :]                         # (8, 32)
            wA[a0 + _WQ + h * DIM:a0 + _WQ + (h + 1) * DIM, :HEAD_DIM] = Wq
            wA[a0 + _WK + h * DIM:a0 + _WK + (h + 1) * DIM, :HEAD_DIM] = Wk
            wA[a0 + _WVP + h * DIM:a0 + _WVP + (h + 1) * DIM, :] = Wv @ Pr
            p32[p0 + _BQ + h, :HEAD_DIM] = bqkv[s:s + HEAD_DIM] * SCALE
            p32[p0 + _BK + h, :HEAD_DIM] = bqkv[DIM + s:DIM + s + HEAD_DIM]
            p32[p0 + _BVP + h, :] = bqkv[2 * DIM + s:2 * DIM + s + HEAD_DIM] @ Pr
        hid = p['fc1_w'].shape[0]
        wB[m * DIM:(m + 1) * DIM, :hid] = p['fc1_w'].T
        wA[a0 + _FC2:a0 + _FC2 + hid, :] = p['fc2_w'].T
        pb1[m, :hid] = p['fc1_b']
        p32[p0 + _LN1W] = p['ln1_w']; p32[p0 + _LN1B] = p['ln1_b']
        p32[p0 + _LN2W] = p['ln2_w']; p32[p0 + _LN2B] = p['ln2_b']
        p32[p0 + _BPROJ] = p['proj_b']; p32[p0 + _B2] = p['fc2_b']
        relb = p['relb_table'][rel_idx].reshape(N, N, NUM_HEADS).transpose(2, 0, 1)
        abias[m * NUM_HEADS:(m + 1) * NUM_HEADS] = (
            np.tile(relb, (1, bsz, bsz)) + xmask[None])

    fus = {k: np.asarray(v) for k, v in tp['fusion'].items()}
    wB[_B_FUS_A:_B_FUS_A + DIM, :] = fus['fc1_w'][:, :DIM].T
    wB[_B_FUS_B:_B_FUS_B + DIM, :] = fus['fc1_w'][:, DIM:].T
    wA[A_FUS_FC2:A_FUS_FC2 + HID1, :] = fus['fc2_w'].T
    pb1[2, :] = fus['fc1_b']
    p32[_P_FUS_B2] = fus['fc2_b']

    for name, (cwr, cbr) in (('conv1', (c1w, _P_C1B)), ('conv2', (c2w, _P_C2B))):
        cp = {k: np.asarray(v) for k, v in tp[name].items()}
        wflat = cp['w'].reshape(DIM, N).T                        # (9, 32)
        p32[cwr:cwr + bn, :] = np.tile(wflat, (bsz, 1))
        p32[cbr] = cp['b']

    return dict(wA=jnp.asarray(wA).astype(BF16),
                wB=jnp.asarray(wB).astype(BF16),
                p32=jnp.asarray(p32),
                pb1=jnp.asarray(pb1),
                abias=jnp.asarray(abias))


# --------------------------- pure-JAX f32 reference --------------------------
def _ref_ln(x, w, b):
    mu = jnp.mean(x, -1, keepdims=True)
    var = jnp.mean((x - mu) ** 2, -1, keepdims=True)
    return (x - mu) / jnp.sqrt(var + LN_EPS) * w + b


def _ref_attn(x, p, query=None):
    B_, N_, C = x.shape
    qkv = x @ p['qkv_w'].T + p['qkv_b']
    qkv = qkv.reshape(B_, N_, 3, NUM_HEADS, HEAD_DIM).transpose(2, 0, 3, 1, 4)
    q, k, v = qkv[0] * SCALE, qkv[1], qkv[2]
    if query is not None:
        q = query
    attn = q @ jnp.swapaxes(k, -1, -2)
    relb = p['relb_table'][_REL_IDX.reshape(-1)].reshape(N_, N_, NUM_HEADS)
    attn = jax.nn.softmax(attn + jnp.transpose(relb, (2, 0, 1))[None], -1)
    o = (attn @ v).transpose(0, 2, 1, 3).reshape(B_, N_, C)
    return o @ p['proj_w'].T + p['proj_b'], q


def _ref_mlp(x, p):
    h = jax.nn.gelu(x @ p['fc1_w'].T + p['fc1_b'], approximate=False)
    return h @ p['fc2_w'].T + p['fc2_b']


def _ref_block(x, p, query=None):
    a, q = _ref_attn(_ref_ln(x, p['ln1_w'], p['ln1_b']), p, query)
    x = x + a
    x = x + _ref_mlp(_ref_ln(x, p['ln2_w'], p['ln2_b']), p)
    return x, q


def _ref_conv(x, p):
    wflat = p['w'].reshape(DIM, N).T                             # (9, 32)
    return jnp.sum(x * wflat[None], axis=1) + p['b']             # (B, 32)


def _ref_forward(wi, wb, tp):
    ai, q1 = _ref_block(wi, tp['sa1'])
    ab, _ = _ref_block(wb, tp['sa2'])
    iab, _ = _ref_block(ab, tp['sa2'], query=q1)
    x = _ref_mlp(jnp.concatenate([ai, iab], -1), tp['fusion']) + ai
    return _ref_conv(x, tp['conv2']), _ref_conv(ab, tp['conv1'])


# ------------------------------------ main -----------------------------------
if __name__ == "__main__":
    key = jax.random.PRNGKey(0)
    kp, ki, kb = jax.random.split(key, 3)
    torch_params = init_torch_params(kp)
    packed = pack_params(torch_params, B)

    window_image = jax.random.normal(ki, (B, N, DIM), dtype=F32)
    window_building = jax.random.normal(kb, (B, N, DIM), dtype=F32)

    fwd = jax.jit(transformer_block_forward)
    x_out, ab_out = fwd(window_image, window_building, packed)
    x_out = jax.block_until_ready(x_out)
    ab_out = jax.block_until_ready(ab_out)

    x_ref, ab_ref = _ref_forward(window_image, window_building, torch_params)
    np.testing.assert_allclose(np.asarray(x_out[:, 0, :]), np.asarray(x_ref),
                               rtol=3e-3, atol=3e-3)
    np.testing.assert_allclose(np.asarray(ab_out[:, 0, :]), np.asarray(ab_ref),
                               rtol=3e-3, atol=3e-3)

    print("KERNEL_OK")
</pallas_src>

<mosaic_0001>
module attributes {stable_mosaic.version = 11 : i64} {
  func.func @_fused_kernel(%arg0: memref<18x32xf32, #tpu.memory_space<vmem>>, %arg1: memref<18x32xf32, #tpu.memory_space<vmem>>, %arg2: memref<1152x32xbf16, #tpu.memory_space<vmem>>, %arg3: memref<128x128xbf16, #tpu.memory_space<vmem>>, %arg4: memref<82x32xf32, #tpu.memory_space<vmem>>, %arg5: memref<3x128xf32, #tpu.memory_space<vmem>>, %arg6: memref<8x18x18xf32, #tpu.memory_space<vmem>>, %arg7: memref<4x32xf32, #tpu.memory_space<vmem>>) attributes {dimension_semantics = [], scalar_prefetch = 0 : i64, scratch_operands = 0 : i64, tpu.core_type = #tpu.core_type<tc>} {
    %c0 = arith.constant 0 : index
    %c0_0 = arith.constant 0 : index
    %0 = vector.load %arg0[%c0, %c0_0] : memref<18x32xf32, #tpu.memory_space<vmem>>, vector<18x32xf32>
    %c0_1 = arith.constant 0 : index
    %c0_2 = arith.constant 0 : index
    %1 = vector.load %arg1[%c0_1, %c0_2] : memref<18x32xf32, #tpu.memory_space<vmem>>, vector<18x32xf32>
    %c0_3 = arith.constant 0 : index
    %c0_4 = arith.constant 0 : index
    %2 = vector.load %arg4[%c0_3, %c0_4] : memref<82x32xf32, #tpu.memory_space<vmem>>, vector<1x32xf32>
    %c1 = arith.constant 1 : index
    %c0_5 = arith.constant 0 : index
    %3 = vector.load %arg4[%c1, %c0_5] : memref<82x32xf32, #tpu.memory_space<vmem>>, vector<1x32xf32>
    %cst = arith.constant dense<0.000000e+00> : vector<18xf32>
    %4 = vector.multi_reduction <add>, %0, %cst [1] : vector<18x32xf32> to vector<18xf32>
    %5 = vector.shape_cast %4 : vector<18xf32> to vector<18x1xf32>
    %cst_6 = arith.constant 3.200000e+01 : f32
    %6 = vector.broadcast %cst_6 : f32 to vector<18x1xf32>
    %7 = arith.divf %5, %6 : vector<18x1xf32>
    %8 = vector.broadcast %7 : vector<18x1xf32> to vector<18x32xf32>
    %9 = arith.subf %0, %8 : vector<18x32xf32>
    %10 = arith.mulf %9, %9 : vector<18x32xf32>
    %cst_7 = arith.constant dense<0.000000e+00> : vector<18xf32>
    %11 = vector.multi_reduction <add>, %10, %cst_7 [1] : vector<18x32xf32> to vector<18xf32>
    %12 = vector.shape_cast %11 : vector<18xf32> to vector<18x1xf32>
    %cst_8 = arith.constant 3.200000e+01 : f32
    %13 = vector.broadcast %cst_8 : f32 to vector<18x1xf32>
    %14 = arith.divf %12, %13 : vector<18x1xf32>
    %cst_9 = arith.constant 9.99999974E-6 : f32
    %15 = vector.broadcast %cst_9 : f32 to vector<18x1xf32>
    %16 = arith.addf %14, %15 : vector<18x1xf32>
    %17 = math.rsqrt %16 : vector<18x1xf32>
    %18 = vector.broadcast %17 : vector<18x1xf32> to vector<18x32xf32>
    %19 = arith.mulf %9, %18 : vector<18x32xf32>
    %20 = vector.broadcast %2 : vector<1x32xf32> to vector<18x32xf32>
    %21 = arith.mulf %19, %20 : vector<18x32xf32>
    %22 = vector.broadcast %3 : vector<1x32xf32> to vector<18x32xf32>
    %23 = arith.addf %21, %22 : vector<18x32xf32>
    %24 = arith.truncf %23 : vector<18x32xf32> to vector<18x32xbf16>
    %cst_10 = arith.constant 0.000000e+00 : f32
    %25 = vector.broadcast %cst_10 : f32 to vector<18x32xf32>
    %c0_11 = arith.constant 0 : index
    %c0_12 = arith.constant 0 : index
    %26 = vector.load %arg2[%c0_11, %c0_12] : memref<1152x32xbf16, #tpu.memory_space<vmem>>, vector<32x32xbf16>
    %cst_13 = arith.constant dense<0.000000e+00> : vector<18x32xf32>
    %27 = tpu.matmul %24, %26, %cst_13 {dimension_numbers = #tpu.dot_dimension_numbers<[1], [0], [0], [1], [0, 0, 1, 1], [], []>} : vector<18x32xbf16>, vector<32x32xbf16>, vector<18x32xf32> -> vector<18x32xf32>
    %c6 = arith.constant 6 : index
    %c0_14 = arith.constant 0 : index
    %28 = vector.load %arg4[%c6, %c0_14] : memref<82x32xf32, #tpu.memory_space<vmem>>, vector<1x32xf32>
    %29 = vector.broadcast %28 : vector<1x32xf32> to vector<18x32xf32>
    %30 = arith.addf %27, %29 : vector<18x32xf32>
    %c128 = arith.constant 128 : index
    %c0_15 = arith.constant 0 : index
    %31 = vector.load %arg2[%c128, %c0_15] : memref<1152x32xbf16, #tpu.memory_space<vmem>>, vector<32x32xbf16>
    %cst_16 = arith.constant dense<0.000000e+00> : vector<18x32xf32>
    %32 = tpu.matmul %24, %31, %cst_16 {dimension_numbers = #tpu.dot_dimension_numbers<[1], [0], [0], [1], [0, 0, 1, 1], [], []>} : vector<18x32xbf16>, vector<32x32xbf16>, vector<18x32xf32> -> vector<18x32xf32>
    %c10 = arith.constant 10 : index
    %c0_17 = arith.constant 0 : index
    %33 = vector.load %arg4[%c10, %c0_17] : memref<82x32xf32, #tpu.memory_space<vmem>>, vector<1x32xf32>
    %34 = vector.broadcast %33 : vector<1x32xf32> to vector<18x32xf32>
    %35 = arith.addf %32, %34 : vector<18x32xf32>
    %c256 = arith.constant 256 : index
    %c0_18 = arith.constant 0 : index
    %36 = vector.load %arg2[%c256, %c0_18] : memref<1152x32xbf16, #tpu.memory_space<vmem>>, vector<32x32xbf16>
    %cst_19 = arith.constant dense<0.000000e+00> : vector<18x32xf32>
    %37 = tpu.matmul %24, %36, %cst_19 {dimension_numbers = #tpu.dot_dimension_numbers<[1], [0], [0], [1], [0, 0, 1, 1], [], []>} : vector<18x32xbf16>, vector<32x32xbf16>, vector<18x32xf32> -> vector<18x32xf32>
    %c14 = arith.constant 14 : index
    %c0_20 = arith.constant 0 : index
    %38 = vector.load %arg4[%c14, %c0_20] : memref<82x32xf32, #tpu.memory_space<vmem>>, vector<1x32xf32>
    %39 = vector.broadcast %38 : vector<1x32xf32> to vector<18x32xf32>
    %40 = arith.addf %37, %39 : vector<18x32xf32>
    %41 = arith.truncf %30 : vector<18x32xf32> to vector<18x32xbf16>
    %42 = arith.truncf %35 : vector<18x32xf32> to vector<18x32xbf16>
    %cst_21 = arith.constant dense<0.000000e+00> : vector<18x18xf32>
    %43 = tpu.matmul %41, %42, %cst_21 {dimension_numbers = #tpu.dot_dimension_numbers<[1], [1], [0], [0], [0, 0, 1, 0], [], []>} : vector<18x32xbf16>, vector<18x32xbf16>, vector<18x18xf32> -> vector<18x18xf32>
    %c0_22 = arith.constant 0 : index
    %c0_23 = arith.constant 0 : index
    %c0_24 = arith.constant 0 : index
    %44 = vector.load %arg6[%c0_22, %c0_23, %c0_24] : memref<8x18x18xf32, #tpu.memory_space<vmem>>, vector<1x18x18xf32>
    %45 = vector.shape_cast %44 : vector<1x18x18xf32> to vector<18x18xf32>
    %46 = arith.addf %43, %45 : vector<18x18xf32>
    %cst_25 = arith.constant dense<0xFF800000> : vector<18xf32>
    %47 = vector.multi_reduction <maximumf>, %46, %cst_25 [1] : vector<18x18xf32> to vector<18xf32>
    %48 = vector.shape_cast %47 : vector<18xf32> to vector<18x1xf32>
    %49 = vector.broadcast %48 : vector<18x1xf32> to vector<18x18xf32>
    %50 = arith.subf %46, %49 : vector<18x18xf32>
    %51 = math.exp %50 : vector<18x18xf32>
    %cst_26 = arith.constant dense<0.000000e+00> : vector<18xf32>
    %52 = vector.multi_reduction <add>, %51, %cst_26 [1] : vector<18x18xf32> to vector<18xf32>
    %53 = vector.shape_cast %52 : vector<18xf32> to vector<18x1xf32>
    %54 = tpu.reciprocal %53 {approx = true} : vector<18x1xf32> -> vector<18x1xf32>
    %55 = vector.broadcast %54 : vector<18x1xf32> to vector<18x18xf32>
    %56 = arith.mulf %51, %55 : vector<18x18xf32>
    %57 = arith.truncf %56 : vector<18x18xf32> to vector<18x18xbf16>
    %58 = arith.truncf %40 : vector<18x32xf32> to vector<18x32xbf16>
    %cst_27 = arith.constant dense<0.000000e+00> : vector<18x32xf32>
    %59 = tpu.matmul %57, %58, %cst_27 {dimension_numbers = #tpu.dot_dimension_numbers<[1], [0], [0], [1], [0, 0, 1, 1], [], []>} : vector<18x18xbf16>, vector<18x32xbf16>, vector<18x32xf32> -> vector<18x32xf32>
    %60 = arith.addf %25, %59 : vector<18x32xf32>
    %c32 = arith.constant 32 : index
    %c0_28 = arith.constant 0 : index
    %61 = vector.load %arg2[%c32, %c0_28] : memref<1152x32xbf16, #tpu.memory_space<vmem>>, vector<32x32xbf16>
    %cst_29 = arith.constant dense<0.000000e+00> : vector<18x32xf32>
    %62 = tpu.matmul %24, %61, %cst_29 {dimension_numbers = #tpu.dot_dimension_numbers<[1], [0], [0], [1], [0, 0, 1, 1], [], []>} : vector<18x32xbf16>, vector<32x32xbf16>, vector<18x32xf32> -> vector<18x32xf32>
    %c7 = arith.constant 7 : index
    %c0_30 = arith.constant 0 : index
    %63 = vector.load %arg4[%c7, %c0_30] : memref<82x32xf32, #tpu.memory_space<vmem>>, vector<1x32xf32>
    %64 = vector.broadcast %63 : vector<1x32xf32> to vector<18x32xf32>
    %65 = arith.addf %62, %64 : vector<18x32xf32>
    %c160 = arith.constant 160 : index
    %c0_31 = arith.constant 0 : index
    %66 = vector.load %arg2[%c160, %c0_31] : memref<1152x32xbf16, #tpu.memory_space<vmem>>, vector<32x32xbf16>
    %cst_32 = arith.constant dense<0.000000e+00> : vector<18x32xf32>
    %67 = tpu.matmul %24, %66, %cst_32 {dimension_numbers = #tpu.dot_dimension_numbers<[1], [0], [0], [1], [0, 0, 1, 1], [], []>} : vector<18x32xbf16>, vector<32x32xbf16>, vector<18x32xf32> -> vector<18x32xf32>
    %c11 = arith.constant 11 : index
    %c0_33 = arith.constant 0 : index
    %68 = vector.load %arg4[%c11, %c0_33] : memref<82x32xf32, #tpu.memory_space<vmem>>, vector<1x32xf32>
    %69 = vector.broadcast %68 : vector<1x32xf32> to vector<18x32xf32>
    %70 = arith.addf %67, %69 : vector<18x32xf32>
    %c288 = arith.constant 288 : index
    %c0_34 = arith.constant 0 : index
    %71 = vector.load %arg2[%c288, %c0_34] : memref<1152x32xbf16, #tpu.memory_space<vmem>>, vector<32x32xbf16>
    %cst_35 = arith.constant dense<0.000000e+00> : vector<18x32xf32>
    %72 = tpu.matmul %24, %71, %cst_35 {dimension_numbers = #tpu.dot_dimension_numbers<[1], [0], [0], [1], [0, 0, 1, 1], [], []>} : vector<18x32xbf16>, vector<32x32xbf16>, vector<18x32xf32> -> vector<18x32xf32>
    %c15 = arith.constant 15 : index
    %c0_36 = arith.constant 0 : index
    %73 = vector.load %arg4[%c15, %c0_36] : memref<82x32xf32, #tpu.memory_space<vmem>>, vector<1x32xf32>
    %74 = vector.broadcast %73 : vector<1x32xf32> to vector<18x32xf32>
    %75 = arith.addf %72, %74 : vector<18x32xf32>
    %76 = arith.truncf %65 : vector<18x32xf32> to vector<18x32xbf16>
    %77 = arith.truncf %70 : vector<18x32xf32> to vector<18x32xbf16>
    %cst_37 = arith.constant dense<0.000000e+00> : vector<18x18xf32>
    %78 = tpu.matmul %76, %77, %cst_37 {dimension_numbers = #tpu.dot_dimension_numbers<[1], [1], [0], [0], [0, 0, 1, 0], [], []>} : vector<18x32xbf16>, vector<18x32xbf16>, vector<18x18xf32> -> vector<18x18xf32>
    %c1_38 = arith.constant 1 : index
    %c0_39 = arith.constant 0 : index
    %c0_40 = arith.constant 0 : index
    %79 = vector.load %arg6[%c1_38, %c0_39, %c0_40] : memref<8x18x18xf32, #tpu.memory_space<vmem>>, vector<1x18x18xf32>
    %80 = vector.shape_cast %79 : vector<1x18x18xf32> to vector<18x18xf32>
    %81 = arith.addf %78, %80 : vector<18x18xf32>
    %cst_41 = arith.constant dense<0xFF800000> : vector<18xf32>
    %82 = vector.multi_reduction <maximumf>, %81, %cst_41 [1] : vector<18x18xf32> to vector<18xf32>
    %83 = vector.shape_cast %82 : vector<18xf32> to vector<18x1xf32>
    %84 = vector.broadcast %83 : vector<18x1xf32> to vector<18x18xf32>
    %85 = arith.subf %81, %84 : vector<18x18xf32>
    %86 = math.exp %85 : vector<18x18xf32>
    %cst_42 = arith.constant dense<0.000000e+00> : vector<18xf32>
    %87 = vector.multi_reduction <add>, %86, %cst_42 [1] : vector<18x18xf32> to vector<18xf32>
    %88 = vector.shape_cast %87 : vector<18xf32> to vector<18x1xf32>
    %89 = tpu.reciprocal %88 {approx = true} : vector<18x1xf32> -> vector<18x1xf32>
    %90 = vector.broadcast %89 : vector<18x1xf32> to vector<18x18xf32>
    %91 = arith.mulf %86, %90 : vector<18x18xf32>
    %92 = arith.truncf %91 : vector<18x18xf32> to vector<18x18xbf16>
    %93 = arith.truncf %75 : vector<18x32xf32> to vector<18x32xbf16>
    %cst_43 = arith.constant dense<0.000000e+00> : vector<18x32xf32>
    %94 = tpu.matmul %92, %93, %cst_43 {dimension_numbers = #tpu.dot_dimension_numbers<[1], [0], [0], [1], [0, 0, 1, 1], [], []>} : vector<18x18xbf16>, vector<18x32xbf16>, vector<18x32xf32> -> vector<18x32xf32>
    %95 = arith.addf %60, %94 : vector<18x32xf32>
    %c64 = arith.constant 64 : index
    %c0_44 = arith.constant 0 : index
    %96 = vector.load %arg2[%c64, %c0_44] : memref<1152x32xbf16, #tpu.memory_space<vmem>>, vector<32x32xbf16>
    %cst_45 = arith.constant dense<0.000000e+00> : vector<18x32xf32>
    %97 = tpu.matmul %24, %96, %cst_45 {dimension_numbers = #tpu.dot_dimension_numbers<[1], [0], [0], [1], [0, 0, 1, 1], [], []>} : vector<18x32xbf16>, vector<32x32xbf16>, vector<18x32xf32> -> vector<18x32xf32>
    %c8 = arith.constant 8 : index
    %c0_46 = arith.constant 0 : index
    %98 = vector.load %arg4[%c8, %c0_46] : memref<82x32xf32, #tpu.memory_space<vmem>>, vector<1x32xf32>
    %99 = vector.broadcast %98 : vector<1x32xf32> to vector<18x32xf32>
    %100 = arith.addf %97, %99 : vector<18x32xf32>
    %c192 = arith.constant 192 : index
    %c0_47 = arith.constant 0 : index
    %101 = vector.load %arg2[%c192, %c0_47] : memref<1152x32xbf16, #tpu.memory_space<vmem>>, vector<32x32xbf16>
    %cst_48 = arith.constant dense<0.000000e+00> : vector<18x32xf32>
    %102 = tpu.matmul %24, %101, %cst_48 {dimension_numbers = #tpu.dot_dimension_numbers<[1], [0], [0], [1], [0, 0, 1, 1], [], []>} : vector<18x32xbf16>, vector<32x32xbf16>, vector<18x32xf32> -> vector<18x32xf32>
    %c12 = arith.constant 12 : index
    %c0_49 = arith.constant 0 : index
    %103 = vector.load %arg4[%c12, %c0_49] : memref<82x32xf32, #tpu.memory_space<vmem>>, vector<1x32xf32>
    %104 = vector.broadcast %103 : vector<1x32xf32> to vector<18x32xf32>
    %105 = arith.addf %102, %104 : vector<18x32xf32>
    %c320 = arith.constant 320 : index
    %c0_50 = arith.constant 0 : index
    %106 = vector.load %arg2[%c320, %c0_50] : memref<1152x32xbf16, #tpu.memory_space<vmem>>, vector<32x32xbf16>
    %cst_51 = arith.constant dense<0.000000e+00> : vector<18x32xf32>
    %107 = tpu.matmul %24, %106, %cst_51 {dimension_numbers = #tpu.dot_dimension_numbers<[1], [0], [0], [1], [0, 0, 1, 1], [], []>} : vector<18x32xbf16>, vector<32x32xbf16>, vector<18x32xf32> -> vector<18x32xf32>
    %c16 = arith.constant 16 : index
    %c0_52 = arith.constant 0 : index
    %108 = vector.load %arg4[%c16, %c0_52] : memref<82x32xf32, #tpu.memory_space<vmem>>, vector<1x32xf32>
    %109 = vector.broadcast %108 : vector<1x32xf32> to vector<18x32xf32>
    %110 = arith.addf %107, %109 : vector<18x32xf32>
    %111 = arith.truncf %100 : vector<18x32xf32> to vector<18x32xbf16>
    %112 = arith.truncf %105 : vector<18x32xf32> to vector<18x32xbf16>
    %cst_53 = arith.constant dense<0.000000e+00> : vector<18x18xf32>
    %113 = tpu.matmul %111, %112, %cst_53 {dimension_numbers = #tpu.dot_dimension_numbers<[1], [1], [0], [0], [0, 0, 1, 0], [], []>} : vector<18x32xbf16>, vector<18x32xbf16>, vector<18x18xf32> -> vector<18x18xf32>
    %c2 = arith.constant 2 : index
    %c0_54 = arith.constant 0 : index
    %c0_55 = arith.constant 0 : index
    %114 = vector.load %arg6[%c2, %c0_54, %c0_55] : memref<8x18x18xf32, #tpu.memory_space<vmem>>, vector<1x18x18xf32>
    %115 = vector.shape_cast %114 : vector<1x18x18xf32> to vector<18x18xf32>
    %116 = arith.addf %113, %115 : vector<18x18xf32>
    %cst_56 = arith.constant dense<0xFF800000> : vector<18xf32>
    %117 = vector.multi_reduction <maximumf>, %116, %cst_56 [1] : vector<18x18xf32> to vector<18xf32>
    %118 = vector.shape_cast %117 : vector<18xf32> to vector<18x1xf32>
    %119 = vector.broadcast %118 : vector<18x1xf32> to vector<18x18xf32>
    %120 = arith.subf %116, %119 : vector<18x18xf32>
    %121 = math.exp %120 : vector<18x18xf32>
    %cst_57 = arith.constant dense<0.000000e+00> : vector<18xf32>
    %122 = vector.multi_reduction <add>, %121, %cst_57 [1] : vector<18x18xf32> to vector<18xf32>
    %123 = vector.shape_cast %122 : vector<18xf32> to vector<18x1xf32>
    %124 = tpu.reciprocal %123 {approx = true} : vector<18x1xf32> -> vector<18x1xf32>
    %125 = vector.broadcast %124 : vector<18x1xf32> to vector<18x18xf32>
    %126 = arith.mulf %121, %125 : vector<18x18xf32>
    %127 = arith.truncf %126 : vector<18x18xf32> to vector<18x18xbf16>
    %128 = arith.truncf %110 : vector<18x32xf32> to vector<18x32xbf16>
    %cst_58 = arith.constant dense<0.000000e+00> : vector<18x32xf32>
    %129 = tpu.matmul %127, %128, %cst_58 {dimension_numbers = #tpu.dot_dimension_numbers<[1], [0], [0], [1], [0, 0, 1, 1], [], []>} : vector<18x18xbf16>, vector<18x32xbf16>, vector<18x32xf32> -> vector<18x32xf32>
    %130 = arith.addf %95, %129 : vector<18x32xf32>
    %c96 = arith.constant 96 : index
    %c0_59 = arith.constant 0 : index
    %131 = vector.load %arg2[%c96, %c0_59] : memref<1152x32xbf16, #tpu.memory_space<vmem>>, vector<32x32xbf16>
    %cst_60 = arith.constant dense<0.000000e+00> : vector<18x32xf32>
    %132 = tpu.matmul %24, %131, %cst_60 {dimension_numbers = #tpu.dot_dimension_numbers<[1], [0], [0], [1], [0, 0, 1, 1], [], []>} : vector<18x32xbf16>, vector<32x32xbf16>, vector<18x32xf32> -> vector<18x32xf32>
    %c9 = arith.constant 9 : index
    %c0_61 = arith.constant 0 : index
    %133 = vector.load %arg4[%c9, %c0_61] : memref<82x32xf32, #tpu.memory_space<vmem>>, vector<1x32xf32>
    %134 = vector.broadcast %133 : vector<1x32xf32> to vector<18x32xf32>
    %135 = arith.addf %132, %134 : vector<18x32xf32>
    %c224 = arith.constant 224 : index
    %c0_62 = arith.constant 0 : index
    %136 = vector.load %arg2[%c224, %c0_62] : memref<1152x32xbf16, #tpu.memory_space<vmem>>, vector<32x32xbf16>
    %cst_63 = arith.constant dense<0.000000e+00> : vector<18x32xf32>
    %137 = tpu.matmul %24, %136, %cst_63 {dimension_numbers = #tpu.dot_dimension_numbers<[1], [0], [0], [1], [0, 0, 1, 1], [], []>} : vector<18x32xbf16>, vector<32x32xbf16>, vector<18x32xf32> -> vector<18x32xf32>
    %c13 = arith.constant 13 : index
    %c0_64 = arith.constant 0 : index
    %138 = vector.load %arg4[%c13, %c0_64] : memref<82x32xf32, #tpu.memory_space<vmem>>, vector<1x32xf32>
    %139 = vector.broadcast %138 : vector<1x32xf32> to vector<18x32xf32>
    %140 = arith.addf %137, %139 : vector<18x32xf32>
    %c352 = arith.constant 352 : index
    %c0_65 = arith.constant 0 : index
    %141 = vector.load %arg2[%c352, %c0_65] : memref<1152x32xbf16, #tpu.memory_space<vmem>>, vector<32x32xbf16>
    %cst_66 = arith.constant dense<0.000000e+00> : vector<18x32xf32>
    %142 = tpu.matmul %24, %141, %cst_66 {dimension_numbers = #tpu.dot_dimension_numbers<[1], [0], [0], [1], [0, 0, 1, 1], [], []>} : vector<18x32xbf16>, vector<32x32xbf16>, vector<18x32xf32> -> vector<18x32xf32>
    %c17 = arith.constant 17 : index
    %c0_67 = arith.constant 0 : index
    %143 = vector.load %arg4[%c17, %c0_67] : memref<82x32xf32, #tpu.memory_space<vmem>>, vector<1x32xf32>
    %144 = vector.broadcast %143 : vector<1x32xf32> to vector<18x32xf32>
    %145 = arith.addf %142, %144 : vector<18x32xf32>
    %146 = arith.truncf %135 : vector<18x32xf32> to vector<18x32xbf16>
    %147 = arith.truncf %140 : vector<18x32xf32> to vector<18x32xbf16>
    %cst_68 = arith.constant dense<0.000000e+00> : vector<18x18xf32>
    %148 = tpu.matmul %146, %147, %cst_68 {dimension_numbers = #tpu.dot_dimension_numbers<[1], [1], [0], [0], [0, 0, 1, 0], [], []>} : vector<18x32xbf16>, vector<18x32xbf16>, vector<18x18xf32> -> vector<18x18xf32>
    %c3 = arith.constant 3 : index
    %c0_69 = arith.constant 0 : index
    %c0_70 = arith.constant 0 : index
    %149 = vector.load %arg6[%c3, %c0_69, %c0_70] : memref<8x18x18xf32, #tpu.memory_space<vmem>>, vector<1x18x18xf32>
    %150 = vector.shape_cast %149 : vector<1x18x18xf32> to vector<18x18xf32>
    %151 = arith.addf %148, %150 : vector<18x18xf32>
    %cst_71 = arith.constant dense<0xFF800000> : vector<18xf32>
    %152 = vector.multi_reduction <maximumf>, %151, %cst_71 [1] : vector<18x18xf32> to vector<18xf32>
    %153 = vector.shape_cast %152 : vector<18xf32> to vector<18x1xf32>
    %154 = vector.broadcast %153 : vector<18x1xf32> to vector<18x18xf32>
    %155 = arith.subf %151, %154 : vector<18x18xf32>
    %156 = math.exp %155 : vector<18x18xf32>
    %cst_72 = arith.constant dense<0.000000e+00> : vector<18xf32>
    %157 = vector.multi_reduction <add>, %156, %cst_72 [1] : vector<18x18xf32> to vector<18xf32>
    %158 = vector.shape_cast %157 : vector<18xf32> to vector<18x1xf32>
    %159 = tpu.reciprocal %158 {approx = true} : vector<18x1xf32> -> vector<18x1xf32>
    %160 = vector.broadcast %159 : vector<18x1xf32> to vector<18x18xf32>
    %161 = arith.mulf %156, %160 : vector<18x18xf32>
    %162 = arith.truncf %161 : vector<18x18xf32> to vector<18x18xbf16>
    %163 = arith.truncf %145 : vector<18x32xf32> to vector<18x32xbf16>
    %cst_73 = arith.constant dense<0.000000e+00> : vector<18x32xf32>
    %164 = tpu.matmul %162, %163, %cst_73 {dimension_numbers = #tpu.dot_dimension_numbers<[1], [0], [0], [1], [0, 0, 1, 1], [], []>} : vector<18x18xbf16>, vector<18x32xbf16>, vector<18x32xf32> -> vector<18x32xf32>
    %165 = arith.addf %130, %164 : vector<18x32xf32>
    %166 = arith.addf %0, %165 : vector<18x32xf32>
    %c4 = arith.constant 4 : index
    %c0_74 = arith.constant 0 : index
    %167 = vector.load %arg4[%c4, %c0_74] : memref<82x32xf32, #tpu.memory_space<vmem>>, vector<1x32xf32>
    %168 = vector.broadcast %167 : vector<1x32xf32> to vector<18x32xf32>
    %169 = arith.addf %166, %168 : vector<18x32xf32>
    %c2_75 = arith.constant 2 : index
    %c0_76 = arith.constant 0 : index
    %170 = vector.load %arg4[%c2_75, %c0_76] : memref<82x32xf32, #tpu.memory_space<vmem>>, vector<1x32xf32>
    %c3_77 = arith.constant 3 : index
    %c0_78 = arith.constant 0 : index
    %171 = vector.load %arg4[%c3_77, %c0_78] : memref<82x32xf32, #tpu.memory_space<vmem>>, vector<1x32xf32>
    %cst_79 = arith.constant dense<0.000000e+00> : vector<18xf32>
    %172 = vector.multi_reduction <add>, %169, %cst_79 [1] : vector<18x32xf32> to vector<18xf32>
    %173 = vector.shape_cast %172 : vector<18xf32> to vector<18x1xf32>
    %cst_80 = arith.constant 3.200000e+01 : f32
    %174 = vector.broadcast %cst_80 : f32 to vector<18x1xf32>
    %175 = arith.divf %173, %174 : vector<18x1xf32>
    %176 = vector.broadcast %175 : vector<18x1xf32> to vector<18x32xf32>
    %177 = arith.subf %169, %176 : vector<18x32xf32>
    %178 = arith.mulf %177, %177 : vector<18x32xf32>
    %cst_81 = arith.constant dense<0.000000e+00> : vector<18xf32>
    %179 = vector.multi_reduction <add>, %178, %cst_81 [1] : vector<18x32xf32> to vector<18xf32>
    %180 = vector.shape_cast %179 : vector<18xf32> to vector<18x1xf32>
    %cst_82 = arith.constant 3.200000e+01 : f32
    %181 = vector.broadcast %cst_82 : f32 to vector<18x1xf32>
    %182 = arith.divf %180, %181 : vector<18x1xf32>
    %cst_83 = arith.constant 9.99999974E-6 : f32
    %183 = vector.broadcast %cst_83 : f32 to vector<18x1xf32>
    %184 = arith.addf %182, %183 : vector<18x1xf32>
    %185 = math.rsqrt %184 : vector<18x1xf32>
    %186 = vector.broadcast %185 : vector<18x1xf32> to vector<18x32xf32>
    %187 = arith.mulf %177, %186 : vector<18x32xf32>
    %188 = vector.broadcast %170 : vector<1x32xf32> to vector<18x32xf32>
    %189 = arith.mulf %187, %188 : vector<18x32xf32>
    %190 = vector.broadcast %171 : vector<1x32xf32> to vector<18x32xf32>
    %191 = arith.addf %189, %190 : vector<18x32xf32>
    %192 = arith.truncf %191 : vector<18x32xf32> to vector<18x32xbf16>
    %c0_84 = arith.constant 0 : index
    %c0_85 = arith.constant 0 : index
    %193 = vector.load %arg3[%c0_84, %c0_85] : memref<128x128xbf16, #tpu.memory_space<vmem>>, vector<32x128xbf16>
    %cst_86 = arith.constant dense<0.000000e+00> : vector<18x128xf32>
    %194 = tpu.matmul %192, %193, %cst_86 {dimension_numbers = #tpu.dot_dimension_numbers<[1], [0], [0], [1], [0, 0, 1, 1], [], []>} : vector<18x32xbf16>, vector<32x128xbf16>, vector<18x128xf32> -> vector<18x128xf32>
    %c0_87 = arith.constant 0 : index
    %c0_88 = arith.constant 0 : index
    %195 = vector.load %arg5[%c0_87, %c0_88] : memref<3x128xf32, #tpu.memory_space<vmem>>, vector<1x128xf32>
    %196 = vector.broadcast %195 : vector<1x128xf32> to vector<18x128xf32>
    %197 = arith.addf %194, %196 : vector<18x128xf32>
    %cst_89 = arith.constant 5.000000e-01 : f32
    %198 = vector.broadcast %cst_89 : f32 to vector<18x128xf32>
    %199 = arith.mulf %198, %197 : vector<18x128xf32>
    %cst_90 = arith.constant 4.471500e-02 : f32
    %200 = vector.broadcast %cst_90 : f32 to vector<18x128xf32>
    %201 = arith.mulf %200, %197 : vector<18x128xf32>
    %202 = arith.mulf %201, %197 : vector<18x128xf32>
    %203 = arith.mulf %202, %197 : vector<18x128xf32>
    %204 = arith.addf %197, %203 : vector<18x128xf32>
    %cst_91 = arith.constant 0.797884583 : f32
    %205 = vector.broadcast %cst_91 : f32 to vector<18x128xf32>
    %206 = arith.mulf %205, %204 : vector<18x128xf32>
    %207 = math.tanh %206 : vector<18x128xf32>
    %cst_92 = arith.constant 1.000000e+00 : f32
    %208 = vector.broadcast %cst_92 : f32 to vector<18x128xf32>
    %209 = arith.addf %208, %207 : vector<18x128xf32>
    %210 = arith.mulf %199, %209 : vector<18x128xf32>
    %211 = arith.truncf %210 : vector<18x128xf32> to vector<18x128xbf16>
    %c384 = arith.constant 384 : index
    %c0_93 = arith.constant 0 : index
    %212 = vector.load %arg2[%c384, %c0_93] : memref<1152x32xbf16, #tpu.memory_space<vmem>>, vector<128x32xbf16>
    %cst_94 = arith.constant dense<0.000000e+00> : vector<18x32xf32>
    %213 = tpu.matmul %211, %212, %cst_94 {dimension_numbers = #tpu.dot_dimension_numbers<[1], [0], [0], [1], [0, 0, 1, 1], [], []>} : vector<18x128xbf16>, vector<128x32xbf16>, vector<18x32xf32> -> vector<18x32xf32>
    %214 = arith.addf %169, %213 : vector<18x32xf32>
    %c5 = arith.constant 5 : index
    %c0_95 = arith.constant 0 : index
    %215 = vector.load %arg4[%c5, %c0_95] : memref<82x32xf32, #tpu.memory_space<vmem>>, vector<1x32xf32>
    %216 = vector.broadcast %215 : vector<1x32xf32> to vector<18x32xf32>
    %217 = arith.addf %214, %216 : vector<18x32xf32>
    %c18 = arith.constant 18 : index
    %c0_96 = arith.constant 0 : index
    %218 = vector.load %arg4[%c18, %c0_96] : memref<82x32xf32, #tpu.memory_space<vmem>>, vector<1x32xf32>
    %c19 = arith.constant 19 : index
    %c0_97 = arith.constant 0 : index
    %219 = vector.load %arg4[%c19, %c0_97] : memref<82x32xf32, #tpu.memory_space<vmem>>, vector<1x32xf32>
    %cst_98 = arith.constant dense<0.000000e+00> : vector<18xf32>
    %220 = vector.multi_reduction <add>, %1, %cst_98 [1] : vector<18x32xf32> to vector<18xf32>
    %221 = vector.shape_cast %220 : vector<18xf32> to vector<18x1xf32>
    %cst_99 = arith.constant 3.200000e+01 : f32
    %222 = vector.broadcast %cst_99 : f32 to vector<18x1xf32>
    %223 = arith.divf %221, %222 : vector<18x1xf32>
    %224 = vector.broadcast %223 : vector<18x1xf32> to vector<18x32xf32>
    %225 = arith.subf %1, %224 : vector<18x32xf32>
    %226 = arith.mulf %225, %225 : vector<18x32xf32>
    %cst_100 = arith.constant dense<0.000000e+00> : vector<18xf32>
    %227 = vector.multi_reduction <add>, %226, %cst_100 [1] : vector<18x32xf32> to vector<18xf32>
    %228 = vector.shape_cast %227 : vector<18xf32> to vector<18x1xf32>
    %cst_101 = arith.constant 3.200000e+01 : f32
    %229 = vector.broadcast %cst_101 : f32 to vector<18x1xf32>
    %230 = arith.divf %228, %229 : vector<18x1xf32>
    %cst_102 = arith.constant 9.99999974E-6 : f32
    %231 = vector.broadcast %cst_102 : f32 to vector<18x1xf32>
    %232 = arith.addf %230, %231 : vector<18x1xf32>
    %233 = math.rsqrt %232 : vector<18x1xf32>
    %234 = vector.broadcast %233 : vector<18x1xf32> to vector<18x32xf32>
    %235 = arith.mulf %225, %234 : vector<18x32xf32>
    %236 = vector.broadcast %218 : vector<1x32xf32> to vector<18x32xf32>
    %237 = arith.mulf %235, %236 : vector<18x32xf32>
    %238 = vector.broadcast %219 : vector<1x32xf32> to vector<18x32xf32>
    %239 = arith.addf %237, %238 : vector<18x32xf32>
    %240 = arith.truncf %239 : vector<18x32xf32> to vector<18x32xbf16>
    %cst_103 = arith.constant 0.000000e+00 : f32
    %241 = vector.broadcast %cst_103 : f32 to vector<18x32xf32>
    %c512 = arith.constant 512 : index
    %c0_104 = arith.constant 0 : index
    %242 = vector.load %arg2[%c512, %c0_104] : memref<1152x32xbf16, #tpu.memory_space<vmem>>, vector<32x32xbf16>
    %cst_105 = arith.constant dense<0.000000e+00> : vector<18x32xf32>
    %243 = tpu.matmul %240, %242, %cst_105 {dimension_numbers = #tpu.dot_dimension_numbers<[1], [0], [0], [1], [0, 0, 1, 1], [], []>} : vector<18x32xbf16>, vector<32x32xbf16>, vector<18x32xf32> -> vector<18x32xf32>
    %c24 = arith.constant 24 : index
    %c0_106 = arith.constant 0 : index
    %244 = vector.load %arg4[%c24, %c0_106] : memref<82x32xf32, #tpu.memory_space<vmem>>, vector<1x32xf32>
    %245 = vector.broadcast %244 : vector<1x32xf32> to vector<18x32xf32>
    %246 = arith.addf %243, %245 : vector<18x32xf32>
    %c640 = arith.constant 640 : index
    %c0_107 = arith.constant 0 : index
    %247 = vector.load %arg2[%c640, %c0_107] : memref<1152x32xbf16, #tpu.memory_space<vmem>>, vector<32x32xbf16>
    %cst_108 = arith.constant dense<0.000000e+00> : vector<18x32xf32>
    %248 = tpu.matmul %240, %247, %cst_108 {dimension_numbers = #tpu.dot_dimension_numbers<[1], [0], [0], [1], [0, 0, 1, 1], [], []>} : vector<18x32xbf16>, vector<32x32xbf16>, vector<18x32xf32> -> vector<18x32xf32>
    %c28 = arith.constant 28 : index
    %c0_109 = arith.constant 0 : index
    %249 = vector.load %arg4[%c28, %c0_109] : memref<82x32xf32, #tpu.memory_space<vmem>>, vector<1x32xf32>
    %250 = vector.broadcast %249 : vector<1x32xf32> to vector<18x32xf32>
    %251 = arith.addf %248, %250 : vector<18x32xf32>
    %c768 = arith.constant 768 : index
    %c0_110 = arith.constant 0 : index
    %252 = vector.load %arg2[%c768, %c0_110] : memref<1152x32xbf16, #tpu.memory_space<vmem>>, vector<32x32xbf16>
    %cst_111 = arith.constant dense<0.000000e+00> : vector<18x32xf32>
    %253 = tpu.matmul %240, %252, %cst_111 {dimension_numbers = #tpu.dot_dimension_numbers<[1], [0], [0], [1], [0, 0, 1, 1], [], []>} : vector<18x32xbf16>, vector<32x32xbf16>, vector<18x32xf32> -> vector<18x32xf32>
    %c32_112 = arith.constant 32 : index
    %c0_113 = arith.constant 0 : index
    %254 = vector.load %arg4[%c32_112, %c0_113] : memref<82x32xf32, #tpu.memory_space<vmem>>, vector<1x32xf32>
    %255 = vector.broadcast %254 : vector<1x32xf32> to vector<18x32xf32>
    %256 = arith.addf %253, %255 : vector<18x32xf32>
    %257 = arith.truncf %246 : vector<18x32xf32> to vector<18x32xbf16>
    %258 = arith.truncf %251 : vector<18x32xf32> to vector<18x32xbf16>
    %cst_114 = arith.constant dense<0.000000e+00> : vector<18x18xf32>
    %259 = tpu.matmul %257, %258, %cst_114 {dimension_numbers = #tpu.dot_dimension_numbers<[1], [1], [0], [0], [0, 0, 1, 0], [], []>} : vector<18x32xbf16>, vector<18x32xbf16>, vector<18x18xf32> -> vector<18x18xf32>
    %c4_115 = arith.constant 4 : index
    %c0_116 = arith.constant 0 : index
    %c0_117 = arith.constant 0 : index
    %260 = vector.load %arg6[%c4_115, %c0_116, %c0_117] : memref<8x18x18xf32, #tpu.memory_space<vmem>>, vector<1x18x18xf32>
    %261 = vector.shape_cast %260 : vector<1x18x18xf32> to vector<18x18xf32>
    %262 = arith.addf %259, %261 : vector<18x18xf32>
    %cst_118 = arith.constant dense<0xFF800000> : vector<18xf32>
    %263 = vector.multi_reduction <maximumf>, %262, %cst_118 [1] : vector<18x18xf32> to vector<18xf32>
    %264 = vector.shape_cast %263 : vector<18xf32> to vector<18x1xf32>
    %265 = vector.broadcast %264 : vector<18x1xf32> to vector<18x18xf32>
    %266 = arith.subf %262, %265 : vector<18x18xf32>
    %267 = math.exp %266 : vector<18x18xf32>
    %cst_119 = arith.constant dense<0.000000e+00> : vector<18xf32>
    %268 = vector.multi_reduction <add>, %267, %cst_119 [1] : vector<18x18xf32> to vector<18xf32>
    %269 = vector.shape_cast %268 : vector<18xf32> to vector<18x1xf32>
    %270 = tpu.reciprocal %269 {approx = true} : vector<18x1xf32> -> vector<18x1xf32>
    %271 = vector.broadcast %270 : vector<18x1xf32> to vector<18x18xf32>
    %272 = arith.mulf %267, %271 : vector<18x18xf32>
    %273 = arith.truncf %272 : vector<18x18xf32> to vector<18x18xbf16>
    %274 = arith.truncf %256 : vector<18x32xf32> to vector<18x32xbf16>
    %cst_120 = arith.constant dense<0.000000e+00> : vector<18x32xf32>
    %275 = tpu.matmul %273, %274, %cst_120 {dimension_numbers = #tpu.dot_dimension_numbers<[1], [0], [0], [1], [0, 0, 1, 1], [], []>} : vector<18x18xbf16>, vector<18x32xbf16>, vector<18x32xf32> -> vector<18x32xf32>
    %276 = arith.addf %241, %275 : vector<18x32xf32>
    %c544 = arith.constant 544 : index
    %c0_121 = arith.constant 0 : index
    %277 = vector.load %arg2[%c544, %c0_121] : memref<1152x32xbf16, #tpu.memory_space<vmem>>, vector<32x32xbf16>
    %cst_122 = arith.constant dense<0.000000e+00> : vector<18x32xf32>
    %278 = tpu.matmul %240, %277, %cst_122 {dimension_numbers = #tpu.dot_dimension_numbers<[1], [0], [0], [1], [0, 0, 1, 1], [], []>} : vector<18x32xbf16>, vector<32x32xbf16>, vector<18x32xf32> -> vector<18x32xf32>
    %c25 = arith.constant 25 : index
    %c0_123 = arith.constant 0 : index
    %279 = vector.load %arg4[%c25, %c0_123] : memref<82x32xf32, #tpu.memory_space<vmem>>, vector<1x32xf32>
    %280 = vector.broadcast %279 : vector<1x32xf32> to vector<18x32xf32>
    %281 = arith.addf %278, %280 : vector<18x32xf32>
    %c672 = arith.constant 672 : index
    %c0_124 = arith.constant 0 : index
    %282 = vector.load %arg2[%c672, %c0_124] : memref<1152x32xbf16, #tpu.memory_space<vmem>>, vector<32x32xbf16>
    %cst_125 = arith.constant dense<0.000000e+00> : vector<18x32xf32>
    %283 = tpu.matmul %240, %282, %cst_125 {dimension_numbers = #tpu.dot_dimension_numbers<[1], [0], [0], [1], [0, 0, 1, 1], [], []>} : vector<18x32xbf16>, vector<32x32xbf16>, vector<18x32xf32> -> vector<18x32xf32>
    %c29 = arith.constant 29 : index
    %c0_126 = arith.constant 0 : index
    %284 = vector.load %arg4[%c29, %c0_126] : memref<82x32xf32, #tpu.memory_space<vmem>>, vector<1x32xf32>
    %285 = vector.broadcast %284 : vector<1x32xf32> to vector<18x32xf32>
    %286 = arith.addf %283, %285 : vector<18x32xf32>
    %c800 = arith.constant 800 : index
    %c0_127 = arith.constant 0 : index
    %287 = vector.load %arg2[%c800, %c0_127] : memref<1152x32xbf16, #tpu.memory_space<vmem>>, vector<32x32xbf16>
    %cst_128 = arith.constant dense<0.000000e+00> : vector<18x32xf32>
    %288 = tpu.matmul %240, %287, %cst_128 {dimension_numbers = #tpu.dot_dimension_numbers<[1], [0], [0], [1], [0, 0, 1, 1], [], []>} : vector<18x32xbf16>, vector<32x32xbf16>, vector<18x32xf32> -> vector<18x32xf32>
    %c33 = arith.constant 33 : index
    %c0_129 = arith.constant 0 : index
    %289 = vector.load %arg4[%c33, %c0_129] : memref<82x32xf32, #tpu.memory_space<vmem>>, vector<1x32xf32>
    %290 = vector.broadcast %289 : vector<1x32xf32> to vector<18x32xf32>
    %291 = arith.addf %288, %290 : vector<18x32xf32>
    %292 = arith.truncf %281 : vector<18x32xf32> to vector<18x32xbf16>
    %293 = arith.truncf %286 : vector<18x32xf32> to vector<18x32xbf16>
    %cst_130 = arith.constant dense<0.000000e+00> : vector<18x18xf32>
    %294 = tpu.matmul %292, %293, %cst_130 {dimension_numbers = #tpu.dot_dimension_numbers<[1], [1], [0], [0], [0, 0, 1, 0], [], []>} : vector<18x32xbf16>, vector<18x32xbf16>, vector<18x18xf32> -> vector<18x18xf32>
    %c5_131 = arith.constant 5 : index
    %c0_132 = arith.constant 0 : index
    %c0_133 = arith.constant 0 : index
    %295 = vector.load %arg6[%c5_131, %c0_132, %c0_133] : memref<8x18x18xf32, #tpu.memory_space<vmem>>, vector<1x18x18xf32>
    %296 = vector.shape_cast %295 : vector<1x18x18xf32> to vector<18x18xf32>
    %297 = arith.addf %294, %296 : vector<18x18xf32>
    %cst_134 = arith.constant dense<0xFF800000> : vector<18xf32>
    %298 = vector.multi_reduction <maximumf>, %297, %cst_134 [1] : vector<18x18xf32> to vector<18xf32>
    %299 = vector.shape_cast %298 : vector<18xf32> to vector<18x1xf32>
    %300 = vector.broadcast %299 : vector<18x1xf32> to vector<18x18xf32>
    %301 = arith.subf %297, %300 : vector<18x18xf32>
    %302 = math.exp %301 : vector<18x18xf32>
    %cst_135 = arith.constant dense<0.000000e+00> : vector<18xf32>
    %303 = vector.multi_reduction <add>, %302, %cst_135 [1] : vector<18x18xf32> to vector<18xf32>
    %304 = vector.shape_cast %303 : vector<18xf32> to vector<18x1xf32>
    %305 = tpu.reciprocal %304 {approx = true} : vector<18x1xf32> -> vector<18x1xf32>
    %306 = vector.broadcast %305 : vector<18x1xf32> to vector<18x18xf32>
    %307 = arith.mulf %302, %306 : vector<18x18xf32>
    %308 = arith.truncf %307 : vector<18x18xf32> to vector<18x18xbf16>
    %309 = arith.truncf %291 : vector<18x32xf32> to vector<18x32xbf16>
    %cst_136 = arith.constant dense<0.000000e+00> : vector<18x32xf32>
    %310 = tpu.matmul %308, %309, %cst_136 {dimension_numbers = #tpu.dot_dimension_numbers<[1], [0], [0], [1], [0, 0, 1, 1], [], []>} : vector<18x18xbf16>, vector<18x32xbf16>, vector<18x32xf32> -> vector<18x32xf32>
    %311 = arith.addf %276, %310 : vector<18x32xf32>
    %c576 = arith.constant 576 : index
    %c0_137 = arith.constant 0 : index
    %312 = vector.load %arg2[%c576, %c0_137] : memref<1152x32xbf16, #tpu.memory_space<vmem>>, vector<32x32xbf16>
    %cst_138 = arith.constant dense<0.000000e+00> : vector<18x32xf32>
    %313 = tpu.matmul %240, %312, %cst_138 {dimension_numbers = #tpu.dot_dimension_numbers<[1], [0], [0], [1], [0, 0, 1, 1], [], []>} : vector<18x32xbf16>, vector<32x32xbf16>, vector<18x32xf32> -> vector<18x32xf32>
    %c26 = arith.constant 26 : index
    %c0_139 = arith.constant 0 : index
    %314 = vector.load %arg4[%c26, %c0_139] : memref<82x32xf32, #tpu.memory_space<vmem>>, vector<1x32xf32>
    %315 = vector.broadcast %314 : vector<1x32xf32> to vector<18x32xf32>
    %316 = arith.addf %313, %315 : vector<18x32xf32>
    %c704 = arith.constant 704 : index
    %c0_140 = arith.constant 0 : index
    %317 = vector.load %arg2[%c704, %c0_140] : memref<1152x32xbf16, #tpu.memory_space<vmem>>, vector<32x32xbf16>
    %cst_141 = arith.constant dense<0.000000e+00> : vector<18x32xf32>
    %318 = tpu.matmul %240, %317, %cst_141 {dimension_numbers = #tpu.dot_dimension_numbers<[1], [0], [0], [1], [0, 0, 1, 1], [], []>} : vector<18x32xbf16>, vector<32x32xbf16>, vector<18x32xf32> -> vector<18x32xf32>
    %c30 = arith.constant 30 : index
    %c0_142 = arith.constant 0 : index
    %319 = vector.load %arg4[%c30, %c0_142] : memref<82x32xf32, #tpu.memory_space<vmem>>, vector<1x32xf32>
    %320 = vector.broadcast %319 : vector<1x32xf32> to vector<18x32xf32>
    %321 = arith.addf %318, %320 : vector<18x32xf32>
    %c832 = arith.constant 832 : index
    %c0_143 = arith.constant 0 : index
    %322 = vector.load %arg2[%c832, %c0_143] : memref<1152x32xbf16, #tpu.memory_space<vmem>>, vector<32x32xbf16>
    %cst_144 = arith.constant dense<0.000000e+00> : vector<18x32xf32>
    %323 = tpu.matmul %240, %322, %cst_144 {dimension_numbers = #tpu.dot_dimension_numbers<[1], [0], [0], [1], [0, 0, 1, 1], [], []>} : vector<18x32xbf16>, vector<32x32xbf16>, vector<18x32xf32> -> vector<18x32xf32>
    %c34 = arith.constant 34 : index
    %c0_145 = arith.constant 0 : index
    %324 = vector.load %arg4[%c34, %c0_145] : memref<82x32xf32, #tpu.memory_space<vmem>>, vector<1x32xf32>
    %325 = vector.broadcast %324 : vector<1x32xf32> to vector<18x32xf32>
    %326 = arith.addf %323, %325 : vector<18x32xf32>
    %327 = arith.truncf %316 : vector<18x32xf32> to vector<18x32xbf16>
    %328 = arith.truncf %321 : vector<18x32xf32> to vector<18x32xbf16>
    %cst_146 = arith.constant dense<0.000000e+00> : vector<18x18xf32>
    %329 = tpu.matmul %327, %328, %cst_146 {dimension_numbers = #tpu.dot_dimension_numbers<[1], [1], [0], [0], [0, 0, 1, 0], [], []>} : vector<18x32xbf16>, vector<18x32xbf16>, vector<18x18xf32> -> vector<18x18xf32>
    %c6_147 = arith.constant 6 : index
    %c0_148 = arith.constant 0 : index
    %c0_149 = arith.constant 0 : index
    %330 = vector.load %arg6[%c6_147, %c0_148, %c0_149] : memref<8x18x18xf32, #tpu.memory_space<vmem>>, vector<1x18x18xf32>
    %331 = vector.shape_cast %330 : vector<1x18x18xf32> to vector<18x18xf32>
    %332 = arith.addf %329, %331 : vector<18x18xf32>
    %cst_150 = arith.constant dense<0xFF800000> : vector<18xf32>
    %333 = vector.multi_reduction <maximumf>, %332, %cst_150 [1] : vector<18x18xf32> to vector<18xf32>
    %334 = vector.shape_cast %333 : vector<18xf32> to vector<18x1xf32>
    %335 = vector.broadcast %334 : vector<18x1xf32> to vector<18x18xf32>
    %336 = arith.subf %332, %335 : vector<18x18xf32>
    %337 = math.exp %336 : vector<18x18xf32>
    %cst_151 = arith.constant dense<0.000000e+00> : vector<18xf32>
    %338 = vector.multi_reduction <add>, %337, %cst_151 [1] : vector<18x18xf32> to vector<18xf32>
    %339 = vector.shape_cast %338 : vector<18xf32> to vector<18x1xf32>
    %340 = tpu.reciprocal %339 {approx = true} : vector<18x1xf32> -> vector<18x1xf32>
    %341 = vector.broadcast %340 : vector<18x1xf32> to vector<18x18xf32>
    %342 = arith.mulf %337, %341 : vector<18x18xf32>
    %343 = arith.truncf %342 : vector<18x18xf32> to vector<18x18xbf16>
    %344 = arith.truncf %326 : vector<18x32xf32> to vector<18x32xbf16>
    %cst_152 = arith.constant dense<0.000000e+00> : vector<18x32xf32>
    %345 = tpu.matmul %343, %344, %cst_152 {dimension_numbers = #tpu.dot_dimension_numbers<[1], [0], [0], [1], [0, 0, 1, 1], [], []>} : vector<18x18xbf16>, vector<18x32xbf16>, vector<18x32xf32> -> vector<18x32xf32>
    %346 = arith.addf %311, %345 : vector<18x32xf32>
    %c608 = arith.constant 608 : index
    %c0_153 = arith.constant 0 : index
    %347 = vector.load %arg2[%c608, %c0_153] : memref<1152x32xbf16, #tpu.memory_space<vmem>>, vector<32x32xbf16>
    %cst_154 = arith.constant dense<0.000000e+00> : vector<18x32xf32>
    %348 = tpu.matmul %240, %347, %cst_154 {dimension_numbers = #tpu.dot_dimension_numbers<[1], [0], [0], [1], [0, 0, 1, 1], [], []>} : vector<18x32xbf16>, vector<32x32xbf16>, vector<18x32xf32> -> vector<18x32xf32>
    %c27 = arith.constant 27 : index
    %c0_155 = arith.constant 0 : index
    %349 = vector.load %arg4[%c27, %c0_155] : memref<82x32xf32, #tpu.memory_space<vmem>>, vector<1x32xf32>
    %350 = vector.broadcast %349 : vector<1x32xf32> to vector<18x32xf32>
    %351 = arith.addf %348, %350 : vector<18x32xf32>
    %c736 = arith.constant 736 : index
    %c0_156 = arith.constant 0 : index
    %352 = vector.load %arg2[%c736, %c0_156] : memref<1152x32xbf16, #tpu.memory_space<vmem>>, vector<32x32xbf16>
    %cst_157 = arith.constant dense<0.000000e+00> : vector<18x32xf32>
    %353 = tpu.matmul %240, %352, %cst_157 {dimension_numbers = #tpu.dot_dimension_numbers<[1], [0], [0], [1], [0, 0, 1, 1], [], []>} : vector<18x32xbf16>, vector<32x32xbf16>, vector<18x32xf32> -> vector<18x32xf32>
    %c31 = arith.constant 31 : index
    %c0_158 = arith.constant 0 : index
    %354 = vector.load %arg4[%c31, %c0_158] : memref<82x32xf32, #tpu.memory_space<vmem>>, vector<1x32xf32>
    %355 = vector.broadcast %354 : vector<1x32xf32> to vector<18x32xf32>
    %356 = arith.addf %353, %355 : vector<18x32xf32>
    %c864 = arith.constant 864 : index
    %c0_159 = arith.constant 0 : index
    %357 = vector.load %arg2[%c864, %c0_159] : memref<1152x32xbf16, #tpu.memory_space<vmem>>, vector<32x32xbf16>
    %cst_160 = arith.constant dense<0.000000e+00> : vector<18x32xf32>
    %358 = tpu.matmul %240, %357, %cst_160 {dimension_numbers = #tpu.dot_dimension_numbers<[1], [0], [0], [1], [0, 0, 1, 1], [], []>} : vector<18x32xbf16>, vector<32x32xbf16>, vector<18x32xf32> -> vector<18x32xf32>
    %c35 = arith.constant 35 : index
    %c0_161 = arith.constant 0 : index
    %359 = vector.load %arg4[%c35, %c0_161] : memref<82x32xf32, #tpu.memory_space<vmem>>, vector<1x32xf32>
    %360 = vector.broadcast %359 : vector<1x32xf32> to vector<18x32xf32>
    %361 = arith.addf %358, %360 : vector<18x32xf32>
    %362 = arith.truncf %351 : vector<18x32xf32> to vector<18x32xbf16>
    %363 = arith.truncf %356 : vector<18x32xf32> to vector<18x32xbf16>
    %cst_162 = arith.constant dense<0.000000e+00> : vector<18x18xf32>
    %364 = tpu.matmul %362, %363, %cst_162 {dimension_numbers = #tpu.dot_dimension_numbers<[1], [1], [0], [0], [0, 0, 1, 0], [], []>} : vector<18x32xbf16>, vector<18x32xbf16>, vector<18x18xf32> -> vector<18x18xf32>
    %c7_163 = arith.constant 7 : index
    %c0_164 = arith.constant 0 : index
    %c0_165 = arith.constant 0 : index
    %365 = vector.load %arg6[%c7_163, %c0_164, %c0_165] : memref<8x18x18xf32, #tpu.memory_space<vmem>>, vector<1x18x18xf32>
    %366 = vector.shape_cast %365 : vector<1x18x18xf32> to vector<18x18xf32>
    %367 = arith.addf %364, %366 : vector<18x18xf32>
    %cst_166 = arith.constant dense<0xFF800000> : vector<18xf32>
    %368 = vector.multi_reduction <maximumf>, %367, %cst_166 [1] : vector<18x18xf32> to vector<18xf32>
    %369 = vector.shape_cast %368 : vector<18xf32> to vector<18x1xf32>
    %370 = vector.broadcast %369 : vector<18x1xf32> to vector<18x18xf32>
    %371 = arith.subf %367, %370 : vector<18x18xf32>
    %372 = math.exp %371 : vector<18x18xf32>
    %cst_167 = arith.constant dense<0.000000e+00> : vector<18xf32>
    %373 = vector.multi_reduction <add>, %372, %cst_167 [1] : vector<18x18xf32> to vector<18xf32>
    %374 = vector.shape_cast %373 : vector<18xf32> to vector<18x1xf32>
    %375 = tpu.reciprocal %374 {approx = true} : vector<18x1xf32> -> vector<18x1xf32>
    %376 = vector.broadcast %375 : vector<18x1xf32> to vector<18x18xf32>
    %377 = arith.mulf %372, %376 : vector<18x18xf32>
    %378 = arith.truncf %377 : vector<18x18xf32> to vector<18x18xbf16>
    %379 = arith.truncf %361 : vector<18x32xf32> to vector<18x32xbf16>
    %cst_168 = arith.constant dense<0.000000e+00> : vector<18x32xf32>
    %380 = tpu.matmul %378, %379, %cst_168 {dimension_numbers = #tpu.dot_dimension_numbers<[1], [0], [0], [1], [0, 0, 1, 1], [], []>} : vector<18x18xbf16>, vector<18x32xbf16>, vector<18x32xf32> -> vector<18x32xf32>
    %381 = arith.addf %346, %380 : vector<18x32xf32>
    %382 = arith.addf %1, %381 : vector<18x32xf32>
    %c22 = arith.constant 22 : index
    %c0_169 = arith.constant 0 : index
    %383 = vector.load %arg4[%c22, %c0_169] : memref<82x32xf32, #tpu.memory_space<vmem>>, vector<1x32xf32>
    %384 = vector.broadcast %383 : vector<1x32xf32> to vector<18x32xf32>
    %385 = arith.addf %382, %384 : vector<18x32xf32>
    %c20 = arith.constant 20 : index
    %c0_170 = arith.constant 0 : index
    %386 = vector.load %arg4[%c20, %c0_170] : memref<82x32xf32, #tpu.memory_space<vmem>>, vector<1x32xf32>
    %c21 = arith.constant 21 : index
    %c0_171 = arith.constant 0 : index
    %387 = vector.load %arg4[%c21, %c0_171] : memref<82x32xf32, #tpu.memory_space<vmem>>, vector<1x32xf32>
    %cst_172 = arith.constant dense<0.000000e+00> : vector<18xf32>
    %388 = vector.multi_reduction <add>, %385, %cst_172 [1] : vector<18x32xf32> to vector<18xf32>
    %389 = vector.shape_cast %388 : vector<18xf32> to vector<18x1xf32>
    %cst_173 = arith.constant 3.200000e+01 : f32
    %390 = vector.broadcast %cst_173 : f32 to vector<18x1xf32>
    %391 = arith.divf %389, %390 : vector<18x1xf32>
    %392 = vector.broadcast %391 : vector<18x1xf32> to vector<18x32xf32>
    %393 = arith.subf %385, %392 : vector<18x32xf32>
    %394 = arith.mulf %393, %393 : vector<18x32xf32>
    %cst_174 = arith.constant dense<0.000000e+00> : vector<18xf32>
    %395 = vector.multi_reduction <add>, %394, %cst_174 [1] : vector<18x32xf32> to vector<18xf32>
    %396 = vector.shape_cast %395 : vector<18xf32> to vector<18x1xf32>
    %cst_175 = arith.constant 3.200000e+01 : f32
    %397 = vector.broadcast %cst_175 : f32 to vector<18x1xf32>
    %398 = arith.divf %396, %397 : vector<18x1xf32>
    %cst_176 = arith.constant 9.99999974E-6 : f32
    %399 = vector.broadcast %cst_176 : f32 to vector<18x1xf32>
    %400 = arith.addf %398, %399 : vector<18x1xf32>
    %401 = math.rsqrt %400 : vector<18x1xf32>
    %402 = vector.broadcast %401 : vector<18x1xf32> to vector<18x32xf32>
    %403 = arith.mulf %393, %402 : vector<18x32xf32>
    %404 = vector.broadcast %386 : vector<1x32xf32> to vector<18x32xf32>
    %405 = arith.mulf %403, %404 : vector<18x32xf32>
    %406 = vector.broadcast %387 : vector<1x32xf32> to vector<18x32xf32>
    %407 = arith.addf %405, %406 : vector<18x32xf32>
    %408 = arith.truncf %407 : vector<18x32xf32> to vector<18x32xbf16>
    %c32_177 = arith.constant 32 : index
    %c0_178 = arith.constant 0 : index
    %409 = vector.load %arg3[%c32_177, %c0_178] : memref<128x128xbf16, #tpu.memory_space<vmem>>, vector<32x128xbf16>
    %cst_179 = arith.constant dense<0.000000e+00> : vector<18x128xf32>
    %410 = tpu.matmul %408, %409, %cst_179 {dimension_numbers = #tpu.dot_dimension_numbers<[1], [0], [0], [1], [0, 0, 1, 1], [], []>} : vector<18x32xbf16>, vector<32x128xbf16>, vector<18x128xf32> -> vector<18x128xf32>
    %c1_180 = arith.constant 1 : index
    %c0_181 = arith.constant 0 : index
    %411 = vector.load %arg5[%c1_180, %c0_181] : memref<3x128xf32, #tpu.memory_space<vmem>>, vector<1x128xf32>
    %412 = vector.broadcast %411 : vector<1x128xf32> to vector<18x128xf32>
    %413 = arith.addf %410, %412 : vector<18x128xf32>
    %cst_182 = arith.constant 5.000000e-01 : f32
    %414 = vector.broadcast %cst_182 : f32 to vector<18x128xf32>
    %415 = arith.mulf %414, %413 : vector<18x128xf32>
    %cst_183 = arith.constant 4.471500e-02 : f32
    %416 = vector.broadcast %cst_183 : f32 to vector<18x128xf32>
    %417 = arith.mulf %416, %413 : vector<18x128xf32>
    %418 = arith.mulf %417, %413 : vector<18x128xf32>
    %419 = arith.mulf %418, %413 : vector<18x128xf32>
    %420 = arith.addf %413, %419 : vector<18x128xf32>
    %cst_184 = arith.constant 0.797884583 : f32
    %421 = vector.broadcast %cst_184 : f32 to vector<18x128xf32>
    %422 = arith.mulf %421, %420 : vector<18x128xf32>
    %423 = math.tanh %422 : vector<18x128xf32>
    %cst_185 = arith.constant 1.000000e+00 : f32
    %424 = vector.broadcast %cst_185 : f32 to vector<18x128xf32>
    %425 = arith.addf %424, %423 : vector<18x128xf32>
    %426 = arith.mulf %415, %425 : vector<18x128xf32>
    %427 = arith.truncf %426 : vector<18x128xf32> to vector<18x128xbf16>
    %c896 = arith.constant 896 : index
    %c0_186 = arith.constant 0 : index
    %428 = vector.load %arg2[%c896, %c0_186] : memref<1152x32xbf16, #tpu.memory_space<vmem>>, vector<128x32xbf16>
    %cst_187 = arith.constant dense<0.000000e+00> : vector<18x32xf32>
    %429 = tpu.matmul %427, %428, %cst_187 {dimension_numbers = #tpu.dot_dimension_numbers<[1], [0], [0], [1], [0, 0, 1, 1], [], []>} : vector<18x128xbf16>, vector<128x32xbf16>, vector<18x32xf32> -> vector<18x32xf32>
    %430 = arith.addf %385, %429 : vector<18x32xf32>
    %c23 = arith.constant 23 : index
    %c0_188 = arith.constant 0 : index
    %431 = vector.load %arg4[%c23, %c0_188] : memref<82x32xf32, #tpu.memory_space<vmem>>, vector<1x32xf32>
    %432 = vector.broadcast %431 : vector<1x32xf32> to vector<18x32xf32>
    %433 = arith.addf %430, %432 : vector<18x32xf32>
    %c18_189 = arith.constant 18 : index
    %c0_190 = arith.constant 0 : index
    %434 = vector.load %arg4[%c18_189, %c0_190] : memref<82x32xf32, #tpu.memory_space<vmem>>, vector<1x32xf32>
    %c19_191 = arith.constant 19 : index
    %c0_192 = arith.constant 0 : index
    %435 = vector.load %arg4[%c19_191, %c0_192] : memref<82x32xf32, #tpu.memory_space<vmem>>, vector<1x32xf32>
    %cst_193 = arith.constant dense<0.000000e+00> : vector<18xf32>
    %436 = vector.multi_reduction <add>, %433, %cst_193 [1] : vector<18x32xf32> to vector<18xf32>
    %437 = vector.shape_cast %436 : vector<18xf32> to vector<18x1xf32>
    %cst_194 = arith.constant 3.200000e+01 : f32
    %438 = vector.broadcast %cst_194 : f32 to vector<18x1xf32>
    %439 = arith.divf %437, %438 : vector<18x1xf32>
    %440 = vector.broadcast %439 : vector<18x1xf32> to vector<18x32xf32>
    %441 = arith.subf %433, %440 : vector<18x32xf32>
    %442 = arith.mulf %441, %441 : vector<18x32xf32>
    %cst_195 = arith.constant dense<0.000000e+00> : vector<18xf32>
    %443 = vector.multi_reduction <add>, %442, %cst_195 [1] : vector<18x32xf32> to vector<18xf32>
    %444 = vector.shape_cast %443 : vector<18xf32> to vector<18x1xf32>
    %cst_196 = arith.constant 3.200000e+01 : f32
    %445 = vector.broadcast %cst_196 : f32 to vector<18x1xf32>
    %446 = arith.divf %444, %445 : vector<18x1xf32>
    %cst_197 = arith.constant 9.99999974E-6 : f32
    %447 = vector.broadcast %cst_197 : f32 to vector<18x1xf32>
    %448 = arith.addf %446, %447 : vector<18x1xf32>
    %449 = math.rsqrt %448 : vector<18x1xf32>
    %450 = vector.broadcast %449 : vector<18x1xf32> to vector<18x32xf32>
    %451 = arith.mulf %441, %450 : vector<18x32xf32>
    %452 = vector.broadcast %434 : vector<1x32xf32> to vector<18x32xf32>
    %453 = arith.mulf %451, %452 : vector<18x32xf32>
    %454 = vector.broadcast %435 : vector<1x32xf32> to vector<18x32xf32>
    %455 = arith.addf %453, %454 : vector<18x32xf32>
    %456 = arith.truncf %455 : vector<18x32xf32> to vector<18x32xbf16>
    %cst_198 = arith.constant 0.000000e+00 : f32
    %457 = vector.broadcast %cst_198 : f32 to vector<18x32xf32>
    %c640_199 = arith.constant 640 : index
    %c0_200 = arith.constant 0 : index
    %458 = vector.load %arg2[%c640_199, %c0_200] : memref<1152x32xbf16, #tpu.memory_space<vmem>>, vector<32x32xbf16>
    %cst_201 = arith.constant dense<0.000000e+00> : vector<18x32xf32>
    %459 = tpu.matmul %456, %458, %cst_201 {dimension_numbers = #tpu.dot_dimension_numbers<[1], [0], [0], [1], [0, 0, 1, 1], [], []>} : vector<18x32xbf16>, vector<32x32xbf16>, vector<18x32xf32> -> vector<18x32xf32>
    %c28_202 = arith.constant 28 : index
    %c0_203 = arith.constant 0 : index
    %460 = vector.load %arg4[%c28_202, %c0_203] : memref<82x32xf32, #tpu.memory_space<vmem>>, vector<1x32xf32>
    %461 = vector.broadcast %460 : vector<1x32xf32> to vector<18x32xf32>
    %462 = arith.addf %459, %461 : vector<18x32xf32>
    %c768_204 = arith.constant 768 : index
    %c0_205 = arith.constant 0 : index
    %463 = vector.load %arg2[%c768_204, %c0_205] : memref<1152x32xbf16, #tpu.memory_space<vmem>>, vector<32x32xbf16>
    %cst_206 = arith.constant dense<0.000000e+00> : vector<18x32xf32>
    %464 = tpu.matmul %456, %463, %cst_206 {dimension_numbers = #tpu.dot_dimension_numbers<[1], [0], [0], [1], [0, 0, 1, 1], [], []>} : vector<18x32xbf16>, vector<32x32xbf16>, vector<18x32xf32> -> vector<18x32xf32>
    %c32_207 = arith.constant 32 : index
    %c0_208 = arith.constant 0 : index
    %465 = vector.load %arg4[%c32_207, %c0_208] : memref<82x32xf32, #tpu.memory_space<vmem>>, vector<1x32xf32>
    %466 = vector.broadcast %465 : vector<1x32xf32> to vector<18x32xf32>
    %467 = arith.addf %464, %466 : vector<18x32xf32>
    %468 = arith.truncf %30 : vector<18x32xf32> to vector<18x32xbf16>
    %469 = arith.truncf %462 : vector<18x32xf32> to vector<18x32xbf16>
    %cst_209 = arith.constant dense<0.000000e+00> : vector<18x18xf32>
    %470 = tpu.matmul %468, %469, %cst_209 {dimension_numbers = #tpu.dot_dimension_numbers<[1], [1], [0], [0], [0, 0, 1, 0], [], []>} : vector<18x32xbf16>, vector<18x32xbf16>, vector<18x18xf32> -> vector<18x18xf32>
    %c4_210 = arith.constant 4 : index
    %c0_211 = arith.constant 0 : index
    %c0_212 = arith.constant 0 : index
    %471 = vector.load %arg6[%c4_210, %c0_211, %c0_212] : memref<8x18x18xf32, #tpu.memory_space<vmem>>, vector<1x18x18xf32>
    %472 = vector.shape_cast %471 : vector<1x18x18xf32> to vector<18x18xf32>
    %473 = arith.addf %470, %472 : vector<18x18xf32>
    %cst_213 = arith.constant dense<0xFF800000> : vector<18xf32>
    %474 = vector.multi_reduction <maximumf>, %473, %cst_213 [1] : vector<18x18xf32> to vector<18xf32>
    %475 = vector.shape_cast %474 : vector<18xf32> to vector<18x1xf32>
    %476 = vector.broadcast %475 : vector<18x1xf32> to vector<18x18xf32>
    %477 = arith.subf %473, %476 : vector<18x18xf32>
    %478 = math.exp %477 : vector<18x18xf32>
    %cst_214 = arith.constant dense<0.000000e+00> : vector<18xf32>
    %479 = vector.multi_reduction <add>, %478, %cst_214 [1] : vector<18x18xf32> to vector<18xf32>
    %480 = vector.shape_cast %479 : vector<18xf32> to vector<18x1xf32>
    %481 = tpu.reciprocal %480 {approx = true} : vector<18x1xf32> -> vector<18x1xf32>
    %482 = vector.broadcast %481 : vector<18x1xf32> to vector<18x18xf32>
    %483 = arith.mulf %478, %482 : vector<18x18xf32>
    %484 = arith.truncf %483 : vector<18x18xf32> to vector<18x18xbf16>
    %485 = arith.truncf %467 : vector<18x32xf32> to vector<18x32xbf16>
    %cst_215 = arith.constant dense<0.000000e+00> : vector<18x32xf32>
    %486 = tpu.matmul %484, %485, %cst_215 {dimension_numbers = #tpu.dot_dimension_numbers<[1], [0], [0], [1], [0, 0, 1, 1], [], []>} : vector<18x18xbf16>, vector<18x32xbf16>, vector<18x32xf32> -> vector<18x32xf32>
    %487 = arith.addf %457, %486 : vector<18x32xf32>
    %c672_216 = arith.constant 672 : index
    %c0_217 = arith.constant 0 : index
    %488 = vector.load %arg2[%c672_216, %c0_217] : memref<1152x32xbf16, #tpu.memory_space<vmem>>, vector<32x32xbf16>
    %cst_218 = arith.constant dense<0.000000e+00> : vector<18x32xf32>
    %489 = tpu.matmul %456, %488, %cst_218 {dimension_numbers = #tpu.dot_dimension_numbers<[1], [0], [0], [1], [0, 0, 1, 1], [], []>} : vector<18x32xbf16>, vector<32x32xbf16>, vector<18x32xf32> -> vector<18x32xf32>
    %c29_219 = arith.constant 29 : index
    %c0_220 = arith.constant 0 : index
    %490 = vector.load %arg4[%c29_219, %c0_220] : memref<82x32xf32, #tpu.memory_space<vmem>>, vector<1x32xf32>
    %491 = vector.broadcast %490 : vector<1x32xf32> to vector<18x32xf32>
    %492 = arith.addf %489, %491 : vector<18x32xf32>
    %c800_221 = arith.constant 800 : index
    %c0_222 = arith.constant 0 : index
    %493 = vector.load %arg2[%c800_221, %c0_222] : memref<1152x32xbf16, #tpu.memory_space<vmem>>, vector<32x32xbf16>
    %cst_223 = arith.constant dense<0.000000e+00> : vector<18x32xf32>
    %494 = tpu.matmul %456, %493, %cst_223 {dimension_numbers = #tpu.dot_dimension_numbers<[1], [0], [0], [1], [0, 0, 1, 1], [], []>} : vector<18x32xbf16>, vector<32x32xbf16>, vector<18x32xf32> -> vector<18x32xf32>
    %c33_224 = arith.constant 33 : index
    %c0_225 = arith.constant 0 : index
    %495 = vector.load %arg4[%c33_224, %c0_225] : memref<82x32xf32, #tpu.memory_space<vmem>>, vector<1x32xf32>
    %496 = vector.broadcast %495 : vector<1x32xf32> to vector<18x32xf32>
    %497 = arith.addf %494, %496 : vector<18x32xf32>
    %498 = arith.truncf %65 : vector<18x32xf32> to vector<18x32xbf16>
    %499 = arith.truncf %492 : vector<18x32xf32> to vector<18x32xbf16>
    %cst_226 = arith.constant dense<0.000000e+00> : vector<18x18xf32>
    %500 = tpu.matmul %498, %499, %cst_226 {dimension_numbers = #tpu.dot_dimension_numbers<[1], [1], [0], [0], [0, 0, 1, 0], [], []>} : vector<18x32xbf16>, vector<18x32xbf16>, vector<18x18xf32> -> vector<18x18xf32>
    %c5_227 = arith.constant 5 : index
    %c0_228 = arith.constant 0 : index
    %c0_229 = arith.constant 0 : index
    %501 = vector.load %arg6[%c5_227, %c0_228, %c0_229] : memref<8x18x18xf32, #tpu.memory_space<vmem>>, vector<1x18x18xf32>
    %502 = vector.shape_cast %501 : vector<1x18x18xf32> to vector<18x18xf32>
    %503 = arith.addf %500, %502 : vector<18x18xf32>
    %cst_230 = arith.constant dense<0xFF800000> : vector<18xf32>
    %504 = vector.multi_reduction <maximumf>, %503, %cst_230 [1] : vector<18x18xf32> to vector<18xf32>
    %505 = vector.shape_cast %504 : vector<18xf32> to vector<18x1xf32>
    %506 = vector.broadcast %505 : vector<18x1xf32> to vector<18x18xf32>
    %507 = arith.subf %503, %506 : vector<18x18xf32>
    %508 = math.exp %507 : vector<18x18xf32>
    %cst_231 = arith.constant dense<0.000000e+00> : vector<18xf32>
    %509 = vector.multi_reduction <add>, %508, %cst_231 [1] : vector<18x18xf32> to vector<18xf32>
    %510 = vector.shape_cast %509 : vector<18xf32> to vector<18x1xf32>
    %511 = tpu.reciprocal %510 {approx = true} : vector<18x1xf32> -> vector<18x1xf32>
    %512 = vector.broadcast %511 : vector<18x1xf32> to vector<18x18xf32>
    %513 = arith.mulf %508, %512 : vector<18x18xf32>
    %514 = arith.truncf %513 : vector<18x18xf32> to vector<18x18xbf16>
    %515 = arith.truncf %497 : vector<18x32xf32> to vector<18x32xbf16>
    %cst_232 = arith.constant dense<0.000000e+00> : vector<18x32xf32>
    %516 = tpu.matmul %514, %515, %cst_232 {dimension_numbers = #tpu.dot_dimension_numbers<[1], [0], [0], [1], [0, 0, 1, 1], [], []>} : vector<18x18xbf16>, vector<18x32xbf16>, vector<18x32xf32> -> vector<18x32xf32>
    %517 = arith.addf %487, %516 : vector<18x32xf32>
    %c704_233 = arith.constant 704 : index
    %c0_234 = arith.constant 0 : index
    %518 = vector.load %arg2[%c704_233, %c0_234] : memref<1152x32xbf16, #tpu.memory_space<vmem>>, vector<32x32xbf16>
    %cst_235 = arith.constant dense<0.000000e+00> : vector<18x32xf32>
    %519 = tpu.matmul %456, %518, %cst_235 {dimension_numbers = #tpu.dot_dimension_numbers<[1], [0], [0], [1], [0, 0, 1, 1], [], []>} : vector<18x32xbf16>, vector<32x32xbf16>, vector<18x32xf32> -> vector<18x32xf32>
    %c30_236 = arith.constant 30 : index
    %c0_237 = arith.constant 0 : index
    %520 = vector.load %arg4[%c30_236, %c0_237] : memref<82x32xf32, #tpu.memory_space<vmem>>, vector<1x32xf32>
    %521 = vector.broadcast %520 : vector<1x32xf32> to vector<18x32xf32>
    %522 = arith.addf %519, %521 : vector<18x32xf32>
    %c832_238 = arith.constant 832 : index
    %c0_239 = arith.constant 0 : index
    %523 = vector.load %arg2[%c832_238, %c0_239] : memref<1152x32xbf16, #tpu.memory_space<vmem>>, vector<32x32xbf16>
    %cst_240 = arith.constant dense<0.000000e+00> : vector<18x32xf32>
    %524 = tpu.matmul %456, %523, %cst_240 {dimension_numbers = #tpu.dot_dimension_numbers<[1], [0], [0], [1], [0, 0, 1, 1], [], []>} : vector<18x32xbf16>, vector<32x32xbf16>, vector<18x32xf32> -> vector<18x32xf32>
    %c34_241 = arith.constant 34 : index
    %c0_242 = arith.constant 0 : index
    %525 = vector.load %arg4[%c34_241, %c0_242] : memref<82x32xf32, #tpu.memory_space<vmem>>, vector<1x32xf32>
    %526 = vector.broadcast %525 : vector<1x32xf32> to vector<18x32xf32>
    %527 = arith.addf %524, %526 : vector<18x32xf32>
    %528 = arith.truncf %100 : vector<18x32xf32> to vector<18x32xbf16>
    %529 = arith.truncf %522 : vector<18x32xf32> to vector<18x32xbf16>
    %cst_243 = arith.constant dense<0.000000e+00> : vector<18x18xf32>
    %530 = tpu.matmul %528, %529, %cst_243 {dimension_numbers = #tpu.dot_dimension_numbers<[1], [1], [0], [0], [0, 0, 1, 0], [], []>} : vector<18x32xbf16>, vector<18x32xbf16>, vector<18x18xf32> -> vector<18x18xf32>
    %c6_244 = arith.constant 6 : index
    %c0_245 = arith.constant 0 : index
    %c0_246 = arith.constant 0 : index
    %531 = vector.load %arg6[%c6_244, %c0_245, %c0_246] : memref<8x18x18xf32, #tpu.memory_space<vmem>>, vector<1x18x18xf32>
    %532 = vector.shape_cast %531 : vector<1x18x18xf32> to vector<18x18xf32>
    %533 = arith.addf %530, %532 : vector<18x18xf32>
    %cst_247 = arith.constant dense<0xFF800000> : vector<18xf32>
    %534 = vector.multi_reduction <maximumf>, %533, %cst_247 [1] : vector<18x18xf32> to vector<18xf32>
    %535 = vector.shape_cast %534 : vector<18xf32> to vector<18x1xf32>
    %536 = vector.broadcast %535 : vector<18x1xf32> to vector<18x18xf32>
    %537 = arith.subf %533, %536 : vector<18x18xf32>
    %538 = math.exp %537 : vector<18x18xf32>
    %cst_248 = arith.constant dense<0.000000e+00> : vector<18xf32>
    %539 = vector.multi_reduction <add>, %538, %cst_248 [1] : vector<18x18xf32> to vector<18xf32>
    %540 = vector.shape_cast %539 : vector<18xf32> to vector<18x1xf32>
    %541 = tpu.reciprocal %540 {approx = true} : vector<18x1xf32> -> vector<18x1xf32>
    %542 = vector.broadcast %541 : vector<18x1xf32> to vector<18x18xf32>
    %543 = arith.mulf %538, %542 : vector<18x18xf32>
    %544 = arith.truncf %543 : vector<18x18xf32> to vector<18x18xbf16>
    %545 = arith.truncf %527 : vector<18x32xf32> to vector<18x32xbf16>
    %cst_249 = arith.constant dense<0.000000e+00> : vector<18x32xf32>
    %546 = tpu.matmul %544, %545, %cst_249 {dimension_numbers = #tpu.dot_dimension_numbers<[1], [0], [0], [1], [0, 0, 1, 1], [], []>} : vector<18x18xbf16>, vector<18x32xbf16>, vector<18x32xf32> -> vector<18x32xf32>
    %547 = arith.addf %517, %546 : vector<18x32xf32>
    %c736_250 = arith.constant 736 : index
    %c0_251 = arith.constant 0 : index
    %548 = vector.load %arg2[%c736_250, %c0_251] : memref<1152x32xbf16, #tpu.memory_space<vmem>>, vector<32x32xbf16>
    %cst_252 = arith.constant dense<0.000000e+00> : vector<18x32xf32>
    %549 = tpu.matmul %456, %548, %cst_252 {dimension_numbers = #tpu.dot_dimension_numbers<[1], [0], [0], [1], [0, 0, 1, 1], [], []>} : vector<18x32xbf16>, vector<32x32xbf16>, vector<18x32xf32> -> vector<18x32xf32>
    %c31_253 = arith.constant 31 : index
    %c0_254 = arith.constant 0 : index
    %550 = vector.load %arg4[%c31_253, %c0_254] : memref<82x32xf32, #tpu.memory_space<vmem>>, vector<1x32xf32>
    %551 = vector.broadcast %550 : vector<1x32xf32> to vector<18x32xf32>
    %552 = arith.addf %549, %551 : vector<18x32xf32>
    %c864_255 = arith.constant 864 : index
    %c0_256 = arith.constant 0 : index
    %553 = vector.load %arg2[%c864_255, %c0_256] : memref<1152x32xbf16, #tpu.memory_space<vmem>>, vector<32x32xbf16>
    %cst_257 = arith.constant dense<0.000000e+00> : vector<18x32xf32>
    %554 = tpu.matmul %456, %553, %cst_257 {dimension_numbers = #tpu.dot_dimension_numbers<[1], [0], [0], [1], [0, 0, 1, 1], [], []>} : vector<18x32xbf16>, vector<32x32xbf16>, vector<18x32xf32> -> vector<18x32xf32>
    %c35_258 = arith.constant 35 : index
    %c0_259 = arith.constant 0 : index
    %555 = vector.load %arg4[%c35_258, %c0_259] : memref<82x32xf32, #tpu.memory_space<vmem>>, vector<1x32xf32>
    %556 = vector.broadcast %555 : vector<1x32xf32> to vector<18x32xf32>
    %557 = arith.addf %554, %556 : vector<18x32xf32>
    %558 = arith.truncf %135 : vector<18x32xf32> to vector<18x32xbf16>
    %559 = arith.truncf %552 : vector<18x32xf32> to vector<18x32xbf16>
    %cst_260 = arith.constant dense<0.000000e+00> : vector<18x18xf32>
    %560 = tpu.matmul %558, %559, %cst_260 {dimension_numbers = #tpu.dot_dimension_numbers<[1], [1], [0], [0], [0, 0, 1, 0], [], []>} : vector<18x32xbf16>, vector<18x32xbf16>, vector<18x18xf32> -> vector<18x18xf32>
    %c7_261 = arith.constant 7 : index
    %c0_262 = arith.constant 0 : index
    %c0_263 = arith.constant 0 : index
    %561 = vector.load %arg6[%c7_261, %c0_262, %c0_263] : memref<8x18x18xf32, #tpu.memory_space<vmem>>, vector<1x18x18xf32>
    %562 = vector.shape_cast %561 : vector<1x18x18xf32> to vector<18x18xf32>
    %563 = arith.addf %560, %562 : vector<18x18xf32>
    %cst_264 = arith.constant dense<0xFF800000> : vector<18xf32>
    %564 = vector.multi_reduction <maximumf>, %563, %cst_264 [1] : vector<18x18xf32> to vector<18xf32>
    %565 = vector.shape_cast %564 : vector<18xf32> to vector<18x1xf32>
    %566 = vector.broadcast %565 : vector<18x1xf32> to vector<18x18xf32>
    %567 = arith.subf %563, %566 : vector<18x18xf32>
    %568 = math.exp %567 : vector<18x18xf32>
    %cst_265 = arith.constant dense<0.000000e+00> : vector<18xf32>
    %569 = vector.multi_reduction <add>, %568, %cst_265 [1] : vector<18x18xf32> to vector<18xf32>
    %570 = vector.shape_cast %569 : vector<18xf32> to vector<18x1xf32>
    %571 = tpu.reciprocal %570 {approx = true} : vector<18x1xf32> -> vector<18x1xf32>
    %572 = vector.broadcast %571 : vector<18x1xf32> to vector<18x18xf32>
    %573 = arith.mulf %568, %572 : vector<18x18xf32>
    %574 = arith.truncf %573 : vector<18x18xf32> to vector<18x18xbf16>
    %575 = arith.truncf %557 : vector<18x32xf32> to vector<18x32xbf16>
    %cst_266 = arith.constant dense<0.000000e+00> : vector<18x32xf32>
    %576 = tpu.matmul %574, %575, %cst_266 {dimension_numbers = #tpu.dot_dimension_numbers<[1], [0], [0], [1], [0, 0, 1, 1], [], []>} : vector<18x18xbf16>, vector<18x32xbf16>, vector<18x32xf32> -> vector<18x32xf32>
    %577 = arith.addf %547, %576 : vector<18x32xf32>
    %578 = arith.addf %433, %577 : vector<18x32xf32>
    %c22_267 = arith.constant 22 : index
    %c0_268 = arith.constant 0 : index
    %579 = vector.load %arg4[%c22_267, %c0_268] : memref<82x32xf32, #tpu.memory_space<vmem>>, vector<1x32xf32>
    %580 = vector.broadcast %579 : vector<1x32xf32> to vector<18x32xf32>
    %581 = arith.addf %578, %580 : vector<18x32xf32>
    %c20_269 = arith.constant 20 : index
    %c0_270 = arith.constant 0 : index
    %582 = vector.load %arg4[%c20_269, %c0_270] : memref<82x32xf32, #tpu.memory_space<vmem>>, vector<1x32xf32>
    %c21_271 = arith.constant 21 : index
    %c0_272 = arith.constant 0 : index
    %583 = vector.load %arg4[%c21_271, %c0_272] : memref<82x32xf32, #tpu.memory_space<vmem>>, vector<1x32xf32>
    %cst_273 = arith.constant dense<0.000000e+00> : vector<18xf32>
    %584 = vector.multi_reduction <add>, %581, %cst_273 [1] : vector<18x32xf32> to vector<18xf32>
    %585 = vector.shape_cast %584 : vector<18xf32> to vector<18x1xf32>
    %cst_274 = arith.constant 3.200000e+01 : f32
    %586 = vector.broadcast %cst_274 : f32 to vector<18x1xf32>
    %587 = arith.divf %585, %586 : vector<18x1xf32>
    %588 = vector.broadcast %587 : vector<18x1xf32> to vector<18x32xf32>
    %589 = arith.subf %581, %588 : vector<18x32xf32>
    %590 = arith.mulf %589, %589 : vector<18x32xf32>
    %cst_275 = arith.constant dense<0.000000e+00> : vector<18xf32>
    %591 = vector.multi_reduction <add>, %590, %cst_275 [1] : vector<18x32xf32> to vector<18xf32>
    %592 = vector.shape_cast %591 : vector<18xf32> to vector<18x1xf32>
    %cst_276 = arith.constant 3.200000e+01 : f32
    %593 = vector.broadcast %cst_276 : f32 to vector<18x1xf32>
    %594 = arith.divf %592, %593 : vector<18x1xf32>
    %cst_277 = arith.constant 9.99999974E-6 : f32
    %595 = vector.broadcast %cst_277 : f32 to vector<18x1xf32>
    %596 = arith.addf %594, %595 : vector<18x1xf32>
    %597 = math.rsqrt %596 : vector<18x1xf32>
    %598 = vector.broadcast %597 : vector<18x1xf32> to vector<18x32xf32>
    %599 = arith.mulf %589, %598 : vector<18x32xf32>
    %600 = vector.broadcast %582 : vector<1x32xf32> to vector<18x32xf32>
    %601 = arith.mulf %599, %600 : vector<18x32xf32>
    %602 = vector.broadcast %583 : vector<1x32xf32> to vector<18x32xf32>
    %603 = arith.addf %601, %602 : vector<18x32xf32>
    %604 = arith.truncf %603 : vector<18x32xf32> to vector<18x32xbf16>
    %c32_278 = arith.constant 32 : index
    %c0_279 = arith.constant 0 : index
    %605 = vector.load %arg3[%c32_278, %c0_279] : memref<128x128xbf16, #tpu.memory_space<vmem>>, vector<32x128xbf16>
    %cst_280 = arith.constant dense<0.000000e+00> : vector<18x128xf32>
    %606 = tpu.matmul %604, %605, %cst_280 {dimension_numbers = #tpu.dot_dimension_numbers<[1], [0], [0], [1], [0, 0, 1, 1], [], []>} : vector<18x32xbf16>, vector<32x128xbf16>, vector<18x128xf32> -> vector<18x128xf32>
    %c1_281 = arith.constant 1 : index
    %c0_282 = arith.constant 0 : index
    %607 = vector.load %arg5[%c1_281, %c0_282] : memref<3x128xf32, #tpu.memory_space<vmem>>, vector<1x128xf32>
    %608 = vector.broadcast %607 : vector<1x128xf32> to vector<18x128xf32>
    %609 = arith.addf %606, %608 : vector<18x128xf32>
    %cst_283 = arith.constant 5.000000e-01 : f32
    %610 = vector.broadcast %cst_283 : f32 to vector<18x128xf32>
    %611 = arith.mulf %610, %609 : vector<18x128xf32>
    %cst_284 = arith.constant 4.471500e-02 : f32
    %612 = vector.broadcast %cst_284 : f32 to vector<18x128xf32>
    %613 = arith.mulf %612, %609 : vector<18x128xf32>
    %614 = arith.mulf %613, %609 : vector<18x128xf32>
    %615 = arith.mulf %614, %609 : vector<18x128xf32>
    %616 = arith.addf %609, %615 : vector<18x128xf32>
    %cst_285 = arith.constant 0.797884583 : f32
    %617 = vector.broadcast %cst_285 : f32 to vector<18x128xf32>
    %618 = arith.mulf %617, %616 : vector<18x128xf32>
    %619 = math.tanh %618 : vector<18x128xf32>
    %cst_286 = arith.constant 1.000000e+00 : f32
    %620 = vector.broadcast %cst_286 : f32 to vector<18x128xf32>
    %621 = arith.addf %620, %619 : vector<18x128xf32>
    %622 = arith.mulf %611, %621 : vector<18x128xf32>
    %623 = arith.truncf %622 : vector<18x128xf32> to vector<18x128xbf16>
    %c896_287 = arith.constant 896 : index
    %c0_288 = arith.constant 0 : index
    %624 = vector.load %arg2[%c896_287, %c0_288] : memref<1152x32xbf16, #tpu.memory_space<vmem>>, vector<128x32xbf16>
    %cst_289 = arith.constant dense<0.000000e+00> : vector<18x32xf32>
    %625 = tpu.matmul %623, %624, %cst_289 {dimension_numbers = #tpu.dot_dimension_numbers<[1], [0], [0], [1], [0, 0, 1, 1], [], []>} : vector<18x128xbf16>, vector<128x32xbf16>, vector<18x32xf32> -> vector<18x32xf32>
    %626 = arith.addf %581, %625 : vector<18x32xf32>
    %c23_290 = arith.constant 23 : index
    %c0_291 = arith.constant 0 : index
    %627 = vector.load %arg4[%c23_290, %c0_291] : memref<82x32xf32, #tpu.memory_space<vmem>>, vector<1x32xf32>
    %628 = vector.broadcast %627 : vector<1x32xf32> to vector<18x32xf32>
    %629 = arith.addf %626, %628 : vector<18x32xf32>
    %630 = arith.truncf %217 : vector<18x32xf32> to vector<18x32xbf16>
    %c64_292 = arith.constant 64 : index
    %c0_293 = arith.constant 0 : index
    %631 = vector.load %arg3[%c64_292, %c0_293] : memref<128x128xbf16, #tpu.memory_space<vmem>>, vector<32x128xbf16>
    %cst_294 = arith.constant dense<0.000000e+00> : vector<18x128xf32>
    %632 = tpu.matmul %630, %631, %cst_294 {dimension_numbers = #tpu.dot_dimension_numbers<[1], [0], [0], [1], [0, 0, 1, 1], [], []>} : vector<18x32xbf16>, vector<32x128xbf16>, vector<18x128xf32> -> vector<18x128xf32>
    %633 = arith.truncf %629 : vector<18x32xf32> to vector<18x32xbf16>
    %c96_295 = arith.constant 96 : index
    %c0_296 = arith.constant 0 : index
    %634 = vector.load %arg3[%c96_295, %c0_296] : memref<128x128xbf16, #tpu.memory_space<vmem>>, vector<32x128xbf16>
    %cst_297 = arith.constant dense<0.000000e+00> : vector<18x128xf32>
    %635 = tpu.matmul %633, %634, %cst_297 {dimension_numbers = #tpu.dot_dimension_numbers<[1], [0], [0], [1], [0, 0, 1, 1], [], []>} : vector<18x32xbf16>, vector<32x128xbf16>, vector<18x128xf32> -> vector<18x128xf32>
    %636 = arith.addf %632, %635 : vector<18x128xf32>
    %c2_298 = arith.constant 2 : index
    %c0_299 = arith.constant 0 : index
    %637 = vector.load %arg5[%c2_298, %c0_299] : memref<3x128xf32, #tpu.memory_space<vmem>>, vector<1x128xf32>
    %638 = vector.broadcast %637 : vector<1x128xf32> to vector<18x128xf32>
    %639 = arith.addf %636, %638 : vector<18x128xf32>
    %cst_300 = arith.constant 5.000000e-01 : f32
    %640 = vector.broadcast %cst_300 : f32 to vector<18x128xf32>
    %641 = arith.mulf %640, %639 : vector<18x128xf32>
    %cst_301 = arith.constant 4.471500e-02 : f32
    %642 = vector.broadcast %cst_301 : f32 to vector<18x128xf32>
    %643 = arith.mulf %642, %639 : vector<18x128xf32>
    %644 = arith.mulf %643, %639 : vector<18x128xf32>
    %645 = arith.mulf %644, %639 : vector<18x128xf32>
    %646 = arith.addf %639, %645 : vector<18x128xf32>
    %cst_302 = arith.constant 0.797884583 : f32
    %647 = vector.broadcast %cst_302 : f32 to vector<18x128xf32>
    %648 = arith.mulf %647, %646 : vector<18x128xf32>
    %649 = math.tanh %648 : vector<18x128xf32>
    %cst_303 = arith.constant 1.000000e+00 : f32
    %650 = vector.broadcast %cst_303 : f32 to vector<18x128xf32>
    %651 = arith.addf %650, %649 : vector<18x128xf32>
    %652 = arith.mulf %641, %651 : vector<18x128xf32>
    %653 = arith.truncf %652 : vector<18x128xf32> to vector<18x128xbf16>
    %c1024 = arith.constant 1024 : index
    %c0_304 = arith.constant 0 : index
    %654 = vector.load %arg2[%c1024, %c0_304] : memref<1152x32xbf16, #tpu.memory_space<vmem>>, vector<128x32xbf16>
    %cst_305 = arith.constant dense<0.000000e+00> : vector<18x32xf32>
    %655 = tpu.matmul %653, %654, %cst_305 {dimension_numbers = #tpu.dot_dimension_numbers<[1], [0], [0], [1], [0, 0, 1, 1], [], []>} : vector<18x128xbf16>, vector<128x32xbf16>, vector<18x32xf32> -> vector<18x32xf32>
    %656 = arith.addf %217, %655 : vector<18x32xf32>
    %c36 = arith.constant 36 : index
    %c0_306 = arith.constant 0 : index
    %657 = vector.load %arg4[%c36, %c0_306] : memref<82x32xf32, #tpu.memory_space<vmem>>, vector<1x32xf32>
    %658 = vector.broadcast %657 : vector<1x32xf32> to vector<18x32xf32>
    %659 = arith.addf %656, %658 : vector<18x32xf32>
    %660 = tpu.iota {dimensions = array<i32: 0>} : vector<2x18xi32>
    %661 = tpu.iota {dimensions = array<i32: 1>} : vector<2x18xi32>
    %c9_i32 = arith.constant 9 : i32
    %662 = vector.broadcast %c9_i32 : i32 to vector<2x18xi32>
    %663 = arith.muli %660, %662 : vector<2x18xi32>
    %664 = arith.cmpi sge, %661, %663 : vector<2x18xi32>
    %c1_i32 = arith.constant 1 : i32
    %665 = vector.broadcast %c1_i32 : i32 to vector<2x18xi32>
    %666 = arith.addi %660, %665 : vector<2x18xi32>
    %c9_i32_307 = arith.constant 9 : i32
    %667 = vector.broadcast %c9_i32_307 : i32 to vector<2x18xi32>
    %668 = arith.muli %666, %667 : vector<2x18xi32>
    %669 = arith.cmpi slt, %661, %668 : vector<2x18xi32>
    %670 = arith.andi %664, %669 : vector<2x18xi1>
    %671 = arith.extui %670 : vector<2x18xi1> to vector<2x18xi32>
    %672 = arith.sitofp %671 : vector<2x18xi32> to vector<2x18xf32>
    %c64_308 = arith.constant 64 : index
    %c0_309 = arith.constant 0 : index
    %673 = vector.load %arg4[%c64_308, %c0_309] : memref<82x32xf32, #tpu.memory_space<vmem>>, vector<18x32xf32>
    %674 = arith.mulf %659, %673 : vector<18x32xf32>
    %c40 = arith.constant 40 : index
    %c0_310 = arith.constant 0 : index
    %675 = vector.load %arg4[%c40, %c0_310] : memref<82x32xf32, #tpu.memory_space<vmem>>, vector<18x32xf32>
    %676 = arith.mulf %433, %675 : vector<18x32xf32>
    %cst_311 = arith.constant dense<0.000000e+00> : vector<2x32xf32>
    %677 = tpu.matmul %672, %674, %cst_311 {dimension_numbers = #tpu.dot_dimension_numbers<[1], [0], [0], [1], [0, 0, 1, 1], [], []>} : vector<2x18xf32>, vector<18x32xf32>, vector<2x32xf32> -> vector<2x32xf32>
    %c38 = arith.constant 38 : index
    %c0_312 = arith.constant 0 : index
    %678 = vector.load %arg4[%c38, %c0_312] : memref<82x32xf32, #tpu.memory_space<vmem>>, vector<1x32xf32>
    %679 = vector.broadcast %678 : vector<1x32xf32> to vector<2x32xf32>
    %680 = arith.addf %677, %679 : vector<2x32xf32>
    %c0_313 = arith.constant 0 : index
    %c0_314 = arith.constant 0 : index
    %681 = vector.load %arg7[%c0_313, %c0_314] : memref<4x32xf32, #tpu.memory_space<vmem>>, vector<2x32xf32>
    tpu.vector_store %arg7[%c0_313, %c0_314], %680 {strides = array<i32>} : memref<4x32xf32, #tpu.memory_space<vmem>>, vector<2x32xf32>,
    %cst_315 = arith.constant dense<0.000000e+00> : vector<2x32xf32>
    %682 = tpu.matmul %672, %676, %cst_315 {dimension_numbers = #tpu.dot_dimension_numbers<[1], [0], [0], [1], [0, 0, 1, 1], [], []>} : vector<2x18xf32>, vector<18x32xf32>, vector<2x32xf32> -> vector<2x32xf32>
    %c37 = arith.constant 37 : index
    %c0_316 = arith.constant 0 : index
    %683 = vector.load %arg4[%c37, %c0_316] : memref<82x32xf32, #tpu.memory_space<vmem>>, vector<1x32xf32>
    %684 = vector.broadcast %683 : vector<1x32xf32> to vector<2x32xf32>
    %685 = arith.addf %682, %684 : vector<2x32xf32>
    %c2_317 = arith.constant 2 : index
    %c0_318 = arith.constant 0 : index
    %686 = vector.load %arg7[%c2_317, %c0_318] : memref<4x32xf32, #tpu.memory_space<vmem>>, vector<2x32xf32>
    tpu.vector_store %arg7[%c2_317, %c0_318], %685 {strides = array<i32>} : memref<4x32xf32, #tpu.memory_space<vmem>>, vector<2x32xf32>,
    return
  }
}

</mosaic_0001>

<bundles_post_ra>
// kernel: transformer_block_forward.1
= control target key start
LH: loop header
LB: loop body
LE: loop exit
PB: predicated region body
PF: predicated region fallthrough
CT: control target
= control target key end

     0   :  { %vm35_vm0 = vcmask 261120   ;;  %vm42_vm1 = vcmask 254976   ;;  %vm373_vm2 = vcmask 146432   ;;  %vm380_vm3 = vcmask 140288   ;;  %s8401_s0 = inlined_call_operand.vmem [shape: f32[18,32], index: 0, kind: input, shape index: {}]   ;;  %s8402_s2 = inlined_call_operand.vmem [shape: bf16[1152,32], index: 2, kind: input, shape index: {}]   ;;  %s8403_s4 = inlined_call_operand.vmem [shape: f32[82,32], index: 4, kind: input, shape index: {}]   ;;  %s8404_s6 = inlined_call_operand.vmem [shape: f32[8,18,18], index: 6, kind: input, shape index: {}]   ;;  %s8405_s1 = inlined_call_operand.vmem [shape: f32[18,32], index: 1, kind: input, shape index: {}]   ;;  %s8406_s3 = inlined_call_operand.vmem [shape: bf16[128,128], index: 3, kind: input, shape index: {}]   ;;  %s8407_s5 = inlined_call_operand.vmem [shape: f32[3,128], index: 5, kind: input, shape index: {}]   ;;  %s8408_s7 = inlined_call_operand.vmem [shape: f32[4,32], index: 7, kind: output, shape index: {}]  }
   0x1   :  { %v27_v0 = vld [vmem:[%s8401_s0] sm:$0xff]  ;;  %v29_v1 = vld [vmem:[%s8401_s0 + $0x10] sm:$0x3]  ;;  %v28_v2 = vld [vmem:[%s8401_s0 + $0x8] sm:$0xff]  ;;  %vm730_vm4 = vcmask 1040384   ;;  %vm6968_vm5 = vmmov 0  }
   0x2   :  { %v36_v3 = vsel %vm35_vm0, %v27_v0, 0.0  ;;  %v43_v4 = vsel %vm42_vm1, %v29_v1, 0.0  ;;  %v39_v5 = vsel %vm35_vm0, %v28_v2, 0.0  ;;  %v6638_v21 = vld [vmem:[%s8402_s2] sm:$0xff]   ;;  %v6640_v23 = vld [vmem:[%s8402_s2 + $0x8] sm:$0xff]   ;;  %v6643_v26 = vld [vmem:[%s8402_s2 + $0x10] sm:$0xff]  }
   0x3   :  { %37 = vadd.xlane.f32.xlu0 %v36_v3  ;;  %44 = vadd.xlane.f32.xlu1 %v43_v4  ;;  %v6639_v22 = vld [vmem:[%s8402_s2 + $0x80] sm:$0xff]   ;;  %v6641_v24 = vld [vmem:[%s8402_s2 + $0x88] sm:$0xff]   ;;  %v6645_v53 = vld [vmem:[%s8402_s2 + $0x18] sm:$0xff]   ;;  %vm5287_vm9 = vcmask 1041408  }
   0x4   :  { %6007 = vmatprep.subr.bf16.mxu1 %v6638_v21  ;;  %6023 = vmatprep.subr.bf16.mxu0 %v6639_v22  ;;  %v6642_v25 = vld [vmem:[%s8402_s2 + $0x40] sm:$0xff]   ;;  %v6644_v52 = vld [vmem:[%s8402_s2 + $0x48] sm:$0xff]   ;;  %v6646_v54 = vld [vmem:[%s8402_s2 + $0x50] sm:$0xff]  }
   0x5   :  { %6008 = vmatpush3.bf16.msra.mxu1 %v6638_v21  ;;  %6024 = vmatpush3.bf16.msra.mxu0 %v6639_v22  ;;  %v5445_v38 = vld [vmem:[%s8403_s4] ss:$0 sm:$0xff]  ;;  %v5446_v44 = vld [vmem:[%s8403_s4 + $0x1] ss:$0 sm:$0xff]  ;;  %v6647_v55 = vld [vmem:[%s8402_s2 + $0x58] sm:$0xff]  }
   0x6   :  { %6009 = vmatprep.subr.bf16.mxu1 %v6640_v23  ;;  %6025 = vmatprep.subr.bf16.mxu0 %v6641_v24  ;;  %v5457_v56 = vld [vmem:[%s8403_s4 + $0xe] ss:$0 sm:$0xff]  ;;  %v5447_v59 = vld [vmem:[%s8403_s4 + $0x6] ss:$0 sm:$0xff] }
   0x7   :  { %40 = vadd.xlane.f32.xlu0 %v39_v5 }
   0x9   :  { %6010 = vmatpush3.bf16.msra.mxu1 %v6640_v23  ;;  %6026 = vmatpush3.bf16.msra.mxu0 %v6641_v24 }
   0xa   :  { %6015 = vmatprep.subr.bf16.mxu1 %v6642_v25  ;;  %6039 = vmatprep.subr.bf16.mxu0 %v6643_v26 }
  0x90   :  { %v38_v6 = vpop.xlane.xlu0 %37  ;;  %v45_v7 = vpop.xlane.xlu1 %44 }
  0x91   :  { %v47_v8 = vmul.f32 0.03125, %v38_v6  ;;  %v49_v9 = vmul.f32 0.03125, %v45_v7 }
  0x93   :  { %v50_v10 = vsub.f32 %v27_v0, %v47_v8  ;;  %v52_v11 = vsub.f32 %v29_v1, %v49_v9 }
  0x94   :  { %v41_v12 = vpop.xlane.xlu0 %40 }
  0x95   :  { %v48_v13 = vmul.f32 0.03125, %v41_v12  ;;  %v53_v14 = vmul.f32 %v50_v10, %v50_v10  ;;  %v55_v15 = vmul.f32 %v52_v11, %v52_v11 }
  0x97   :  { %v51_v16 = vsub.f32 %v28_v2, %v48_v13  ;;  %v56_v17 = vsel %vm35_vm0, %v53_v14, 0.0  ;;  %v62_v18 = vsel %vm42_vm1, %v55_v15, 0.0  ;;  %v5464_v13 = vld [vmem:[%s8403_s4 + $0x7] ss:$0 sm:$0xff] }
  0x98   :  { %57 = vadd.xlane.f32.xlu1 %v56_v17 }
  0x99   :  { %v54_v19 = vmul.f32 %v51_v16, %v51_v16 }
  0x9b   :  { %v59_v20 = vsel %vm35_vm0, %v54_v19, 0.0 }
  0x9c   :  { %63 = vadd.xlane.f32.xlu1 %v62_v18  ;;  %60 = vadd.xlane.f32.xlu0 %v59_v20 }
 0x125   :  { %v58_v27 = vpop.xlane.xlu1 %57 }
 0x126   :  { %v65_v28 = vmul.f32 0.03125, %v58_v27 }
 0x128   :  { %v68_v29 = vadd.f32 1e-05, %v65_v28 }
 0x129   :  { %v64_v30 = vpop.xlane.xlu1 %63  ;;  %v61_v31 = vpop.xlane.xlu0 %60 }
 0x12a   :  { %6718 = vrsqrt.f32 %v68_v29  ;;  %v67_v32 = vmul.f32 0.03125, %v64_v30  ;;  %v66_v33 = vmul.f32 0.03125, %v61_v31  ;;  %v5469_v29 = vld [vmem:[%s8403_s4 + $0xb] ss:$0 sm:$0xff] }
 0x12c   :  { %v70_v34 = vadd.f32 1e-05, %v67_v32  ;;  %v69_v35 = vadd.f32 1e-05, %v66_v33 }
 0x12e   :  { %6720 = vrsqrt.f32 %v70_v34 }
 0x12f   :  { %6722 = vrsqrt.f32 %v69_v35 }
 0x134   :  { %v6719_v36 = vpop.eup %6718 }
 0x135   :  { %v74_v37 = vmul.f32 %v6719_v36, %v50_v10  ;;  %v5452_v10 = vld [vmem:[%s8403_s4 + $0xa] ss:$0 sm:$0xff]  ;;  %v6648_v36 = vld [vmem:[%s8402_s2 + $0x90] sm:$0xff]  }
 0x137   :  { %v81_v42 = vmul.f32 %v5445_v38, %v74_v37 }
 0x138   :  { %v6721_v39 = vpop.eup %6720 }
 0x139   :  { %v6723_v40 = vpop.eup %6722  ;;  %v76_v41 = vmul.f32 %v6721_v39, %v52_v11  ;;  %v88_v48 = vadd.f32 %v5446_v44, %v81_v42 }
 0x13a   :  { %v75_v43 = vmul.f32 %v6723_v40, %v51_v16 }
 0x13b   :  { %v83_v45 = vmul.f32 %v5445_v38, %v76_v41 }
 0x13c   :  { %v82_v46 = vmul.f32 %v5445_v38, %v75_v43  ;;  %v6649_v43 = vld [vmem:[%s8402_s2 + $0x98] sm:$0xff]  }
 0x13d   :  { %v90_v47 = vadd.f32 %v5446_v44, %v83_v45 }
 0x13e   :  { %v89_v49 = vadd.f32 %v5446_v44, %v82_v46  ;;  %v6650_v44 = vld [vmem:[%s8402_s2 + $0x20] sm:$0xff]  }
 0x13f   :  { %v7049_v50 = vpack.c.bf16 %v90_v47, %v90_v47 }
 0x140   :  { %v7051_v51 = vpack.c.bf16 %v89_v49, %v88_v48  ;;  %v6651_v48 = vld [vmem:[%s8402_s2 + $0x28] sm:$0xff]   ;;  %v6652_v49 = vld [vmem:[%s8402_s2 + $0xa0] sm:$0xff]  }
 0x142   :  { %6011 = vmatprep.mubr.msk.bf16.mxu1 %vm35_vm0, %v7051_v51  ;;  %6027 = vmatprep.mubr.msk.bf16.mxu0 %vm35_vm0, %v7051_v51 }
 0x143   :  { %6012 = vmatmul.mubr.msk.bf16.vlgmr.msra.gmra.mrb[0].mxu1 %vm35_vm0, %v7049_v50  ;;  %6028 = vmatmul.mubr.msk.bf16.vlgmr.msra.gmra.mrb[0].mxu0 %vm35_vm0, %v7049_v50 }
 0x144   :  { %6016 = vmatpush3.bf16.msra.mxu1 %v6642_v25  ;;  %6019 = vmatprep.mubr.msk.bf16.mxu1 %vm35_vm0, %v7051_v51 }
 0x145   :  { %6040 = vmatpush3.bf16.msra.mxu0 %v6643_v26  ;;  %6043 = vmatprep.mubr.msk.bf16.mxu0 %vm35_vm0, %v7051_v51 }
 0x146   :  { %6017 = vmatprep.subr.bf16.mxu1 %v6644_v52  ;;  %6041 = vmatprep.subr.bf16.mxu0 %v6645_v53 }
 0x148   :  { %6018 = vmatpush3.bf16.msra.mxu1 %v6644_v52  ;;  %v6653_v52 = vld [vmem:[%s8402_s2 + $0xa8] sm:$0xff]  }
 0x149   :  { %6042 = vmatpush3.bf16.msra.mxu0 %v6645_v53 }
 0x14a   :  { %6047 = vmatprep.subr.bf16.mxu0 %v6646_v54 }
 0x14b   :  { %6020 = vmatmul.mubr.msk.bf16.vlgmr.msra.gmra.mrb[4].mxu1 %vm35_vm0, %v7049_v50 }
 0x14c   :  { %6044 = vmatmul.mubr.msk.bf16.vlgmr.msra.gmra.mrb[4].mxu0 %vm35_vm0, %v7049_v50 }
 0x14d   :  { %6048 = vmatpush3.bf16.msra.mxu0 %v6646_v54  ;;  %6051 = vmatprep.mubr.msk.bf16.mxu0 %vm35_vm0, %v7051_v51 }
 0x14e   :  { %6049 = vmatprep.subr.bf16.mxu0 %v6647_v55 }
 0x151   :  { %6050 = vmatpush3.bf16.msra.mxu0 %v6647_v55 }
 0x154   :  { %6052 = vmatmul.mubr.msk.bf16.vlgmr.msra.gmra.mrb[8].mxu0 %vm35_vm0, %v7049_v50 }
 0x216   :  { %v6013_v57 = vpop.f32.mrb[0].mxu1  ;;  %v6029_v58 = vpop.f32.mrb[0].mxu0 }
 0x217   :  { %v7091_v60 = vadd.f32 %v6029_v58, %v5457_v56  ;;  %v154_v61 = vpop.f32.mrb[1].mxu1  ;;  %v292_v62 = vpop.f32.mrb[1].mxu0  ;;  %v163_v41 = vadd.f32 %v6013_v57, %v5447_v59  ;;  %v5479_v58 = vld [vmem:[%s8404_s6 + $0x18] sm:$0xff] }
 0x218   :  { %v6014_v63 = vpop.f32.mrb[2].mxu1  ;;  %v6030_v0 = vpop.f32.mrb[2].mxu0  ;;  %v155_v3 = vadd.f32 %v5447_v59, %v154_v61  ;;  %v293_v4 = vadd.f32 %v5457_v56, %v292_v62 }
 0x219   :  { %v157_v1 = vpop.f32.mrb[3].mxu1  ;;  %v295_v2 = vpop.f32.mrb[3].mxu0  ;;  %v7122_v42 = vpack.c.bf16 %v163_v41, %v163_v41  ;;  %v5481_v63 = vld [vmem:[%s8404_s6 + $0x28] sm:$0x3] }
 0x21a   :  { %v158_v5 = vadd.f32 %v5447_v59, %v157_v1  ;;  %v296_v6 = vadd.f32 %v5457_v56, %v295_v2  ;;  %v5474_v59 = vld [vmem:[%s8403_s4 + $0xf] ss:$0 sm:$0xff]  ;;  %v5480_v2 = vld [vmem:[%s8404_s6 + $0x20] sm:$0xff] }
 0x21c   :  { %v7093_v7 = vpack.c.bf16 %v158_v5, %v155_v3  ;;  %v7095_v8 = vpack.c.bf16 %v296_v6, %v293_v4  ;;  %v310_v6 = vld [vmem:[%s8404_s6] sm:$0xff] }
 0x21e   :  { %v6021_v9 = vpop.f32.mrb[4].mxu1  ;;  %6035 = vmatprep.mubr.msk.bf16.mxu1 %vm35_vm0, %v7093_v7 }
 0x21f   :  { %v6045_v11 = vpop.f32.mrb[4].mxu0  ;;  %v223_v12 = vpop.f32.mrb[5].mxu1  ;;  %v232_v18 = vadd.f32 %v6021_v9, %v5452_v10 }
 0x220   :  { %v467_v14 = vpop.f32.mrb[5].mxu0  ;;  %v6022_v15 = vpop.f32.mrb[6].mxu1  ;;  %v224_v19 = vadd.f32 %v5452_v10, %v223_v12  ;;  %v476_v46 = vadd.f32 %v6045_v11, %v5464_v13 }
 0x221   :  { %v6046_v16 = vpop.f32.mrb[6].mxu0  ;;  %v226_v17 = vpop.f32.mrb[7].mxu1  ;;  %v468_v22 = vadd.f32 %v5464_v13, %v467_v14  ;;  %v309_v26 = vpack.c.bf16 %v232_v18, %v232_v18 }
 0x222   :  { %v227_v20 = vadd.f32 %v5452_v10, %v226_v17  ;;  %v470_v21 = vpop.f32.mrb[7].mxu0  ;;  %v7135_v47 = vpack.c.bf16 %v476_v46, %v476_v46  ;;  %v311_v16 = vld [vmem:[%s8404_s6 + $0x8] sm:$0xff] }
 0x223   :  { %v471_v23 = vadd.f32 %v5464_v13, %v470_v21  ;;  %v323_v38 = vsel %vm35_vm0, %v309_v26, 0  ;;  %v312_v21 = vld [vmem:[%s8404_s6 + $0x10] sm:$0x3] }
 0x224   :  { %v308_v24 = vpack.c.bf16 %v227_v20, %v224_v19  ;;  %v5488_v20 = vld [vmem:[%s8403_s4 + $0x8] ss:$0 sm:$0xff] }
 0x225   :  { %v7105_v25 = vpack.c.bf16 %v471_v23, %v468_v22 }
 0x226   :  { %6599 = vmatprep.subr.msk.bf16.mxu1 %vm35_vm0, %v308_v24  ;;  %v320_v27 = vsel %vm35_vm0, %v308_v24, 0 }
 0x227   :  { %v6053_v28 = vpop.f32.mrb[8].mxu0  ;;  %6067 = vmatprep.mubr.msk.bf16.mxu0 %vm35_vm0, %v7105_v25  ;;  %6032 = vmatpush3.bf16.xpose.msra.mxu1 %v320_v27 }
 0x228   :  { %v536_v30 = vpop.f32.mrb[9].mxu0  ;;  %6600 = vmatprep.subr.msk.bf16.mxu1 %vm35_vm0, %v309_v26  ;;  %v545_v33 = vadd.f32 %v6053_v28, %v5469_v29 }
 0x229   :  { %v6054_v31 = vpop.f32.mrb[10].mxu0  ;;  %v537_v34 = vadd.f32 %v5469_v29, %v536_v30 }
 0x22a   :  { %v539_v32 = vpop.f32.mrb[11].mxu0  ;;  %v622_v39 = vpack.c.bf16 %v545_v33, %v545_v33 }
 0x22b   :  { %v540_v35 = vadd.f32 %v5469_v29, %v539_v32 }
 0x22c   :  { %v637_v45 = vsel %vm35_vm0, %v622_v39, 0 }
 0x22d   :  { %v621_v37 = vpack.c.bf16 %v540_v35, %v537_v34 }
 0x22f   :  { %6601 = vmatprep.subr.msk.bf16.mxu0 %vm35_vm0, %v621_v37  ;;  %6034 = vmatpush3.bf16.xpose.msra.mxu1 %v323_v38  ;;  %v634_v40 = vsel %vm35_vm0, %v621_v37, 0 }
 0x230   :  { %6064 = vmatpush3.bf16.xpose.msra.mxu0 %v634_v40  ;;  %6055 = vmatprep.subr.bf16.mxu1 %v6648_v36  ;;  %v5498_v40 = vld [vmem:[%s8403_s4 + $0x10] ss:$0 sm:$0xff] }
 0x231   :  { %6602 = vmatprep.subr.msk.bf16.mxu0 %vm35_vm0, %v622_v39 }
 0x236   :  { %6036 = vmatmul.mubr.msk.bf16.vlgmr.msra.gmra.mrb[8].mxu1 %vm35_vm0, %v7122_v42 }
 0x237   :  { %6056 = vmatpush3.bf16.msra.mxu1 %v6648_v36  ;;  %6059 = vmatprep.mubr.msk.bf16.mxu1 %vm35_vm0, %v7051_v51 }
 0x238   :  { %6066 = vmatpush3.bf16.xpose.msra.mxu0 %v637_v45  ;;  %6057 = vmatprep.subr.bf16.mxu1 %v6649_v43 }
 0x239   :  { %6087 = vmatprep.subr.bf16.mxu0 %v6650_v44 }
 0x23b   :  { %6058 = vmatpush3.bf16.msra.mxu1 %v6649_v43 }
 0x23e   :  { %6060 = vmatmul.mubr.msk.bf16.vlgmr.msra.gmra.mrb[12].mxu1 %vm35_vm0, %v7049_v50 }
 0x23f   :  { %6068 = vmatmul.mubr.msk.bf16.vlgmr.msra.gmra.mrb[12].mxu0 %vm35_vm0, %v7135_v47 }
 0x240   :  { %6088 = vmatpush3.bf16.msra.mxu0 %v6650_v44  ;;  %6091 = vmatprep.mubr.msk.bf16.mxu0 %vm35_vm0, %v7051_v51 }
 0x241   :  { %6089 = vmatprep.subr.bf16.mxu0 %v6651_v48 }
 0x244   :  { %6090 = vmatpush3.bf16.msra.mxu0 %v6651_v48 }
 0x245   :  { %6103 = vmatprep.subr.bf16.mxu0 %v6652_v49 }
 0x247   :  { %6092 = vmatmul.mubr.msk.bf16.vlgmr.msra.gmra.mrb[16].mxu0 %vm35_vm0, %v7049_v50 }
 0x248   :  { %6104 = vmatpush3.bf16.msra.mxu0 %v6652_v49  ;;  %6107 = vmatprep.mubr.msk.bf16.mxu0 %vm35_vm0, %v7051_v51 }
 0x249   :  { %6105 = vmatprep.subr.bf16.mxu0 %v6653_v52 }
 0x24c   :  { %6106 = vmatpush3.bf16.msra.mxu0 %v6653_v52 }
 0x24f   :  { %6108 = vmatmul.mubr.msk.bf16.vlgmr.msra.gmra.mrb[20].mxu0 %vm35_vm0, %v7049_v50 }
 0x309   :  { %v6037_v53 = vpop.f32.mrb[8].mxu1 }
 0x30a   :  { %v359_v54 = vpop.f32.mrb[9].mxu1  ;;  %v368_v29 = vadd.f32 %v6037_v53, %v312_v21 }
 0x30b   :  { %v6038_v55 = vpop.f32.mrb[10].mxu1  ;;  %v360_v18 = vadd.f32 %v359_v54, %v310_v6 }
 0x30c   :  { %v362_v56 = vpop.f32.mrb[11].mxu1  ;;  %v381_v38 = vsel %vm380_vm3, %v368_v29, -inf }
 0x30d   :  { %v363_v23 = vadd.f32 %v362_v56, %v311_v16  ;;  %v374_v31 = vsel %vm373_vm2, %v360_v18, -inf }
 0x30f   :  { %v377_v36 = vsel %vm373_vm2, %v363_v23, -inf }
 0x311   :  { %v6061_v57 = vpop.f32.mrb[12].mxu1 }
 0x312   :  { %v6069_v61 = vpop.f32.mrb[12].mxu0  ;;  %v605_v62 = vpop.f32.mrb[13].mxu1  ;;  %v614_v9 = vadd.f32 %v6061_v57, %v5474_v59 }
 0x313   :  { %v673_v0 = vpop.f32.mrb[13].mxu0  ;;  %v6062_v1 = vpop.f32.mrb[14].mxu1  ;;  %v606_v10 = vadd.f32 %v5474_v59, %v605_v62  ;;  %v7175_v13 = vadd.f32 %v6069_v61, %v5481_v63 }
 0x314   :  { %v7170_v3 = vadd.f32 %v5479_v58, %v673_v0  ;;  %v6070_v4 = vpop.f32.mrb[14].mxu0  ;;  %v608_v5 = vpop.f32.mrb[15].mxu1  ;;  %v723_v22 = vpack.c.bf16 %v614_v9, %v614_v9 }
 0x315   :  { %v609_v11 = vadd.f32 %v5474_v59, %v608_v5  ;;  %v676_v12 = vpop.f32.mrb[15].mxu0  ;;  %v693_v26 = vsel %vm380_vm3, %v7175_v13, -inf }
 0x316   :  { %v677_v14 = vadd.f32 %v5480_v2, %v676_v12  ;;  %v687_v15 = vsel %vm373_vm2, %v7170_v3, -inf  ;;  %v732_v32 = vsel %vm730_vm4, %v723_v22, 0 }
 0x317   :  { %v722_v17 = vpack.c.bf16 %v609_v11, %v606_v10  ;;  %688 = vmax.xlane.f32.xlu0 %v687_v15 }
 0x318   :  { %v690_v19 = vsel %vm373_vm2, %v677_v14, -inf }
 0x319   :  { %691 = vmax.xlane.f32.xlu1 %v690_v19  ;;  %6071 = vmatprep.subr.bf16.mxu1 %v722_v17 }
 0x31a   :  { %v6093_v24 = vpop.f32.mrb[16].mxu0  ;;  %6072 = vmatpush3.bf16.msra.mxu1 %v722_v17 }
 0x31b   :  { %v7191_v27 = vadd.f32 %v6093_v24, %v5488_v20  ;;  %v894_v28 = vpop.f32.mrb[17].mxu0  ;;  %694 = vmax.xlane.f32.xlu0 %v693_v26  ;;  %6603 = vmatprep.subr.msk.bf16.mxu1 %vm730_vm4, %v723_v22 }
 0x31c   :  { %v6094_v30 = vpop.f32.mrb[18].mxu0  ;;  %v895_v34 = vadd.f32 %v5488_v20, %v894_v28 }
 0x31d   :  { %v897_v33 = vpop.f32.mrb[19].mxu0  ;;  %375 = vmax.xlane.f32.xlu1 %v374_v31 }
 0x31e   :  { %v898_v35 = vadd.f32 %v5488_v20, %v897_v33  ;;  %6074 = vmatpush3.bf16.msra.mxu1 %v732_v32 }
 0x31f   :  { %378 = vmax.xlane.f32.xlu0 %v377_v36  ;;  %6079 = vmatprep.subr.bf16.mxu1 %v7095_v8 }
 0x320   :  { %v7198_v37 = vpack.c.bf16 %v898_v35, %v895_v34 }
 0x321   :  { %382 = vmax.xlane.f32.xlu1 %v381_v38 }
 0x322   :  { %v6109_v39 = vpop.f32.mrb[20].mxu0 }
 0x323   :  { %v1032_v41 = vpop.f32.mrb[21].mxu0  ;;  %v1041_v45 = vadd.f32 %v6109_v39, %v5498_v40 }
 0x324   :  { %v6110_v43 = vpop.f32.mrb[22].mxu0  ;;  %v1033_v46 = vadd.f32 %v5498_v40, %v1032_v41 }
 0x325   :  { %v1035_v44 = vpop.f32.mrb[23].mxu0  ;;  %v1150_v52 = vpack.c.bf16 %v1041_v45, %v1041_v45  ;;  %v411_v43 = vpack.c.bf16 %v7091_v60, %v7091_v60 }
 0x326   :  { %v1036_v48 = vadd.f32 %v5498_v40, %v1035_v44 }
 0x327   :  { %v1158_v53 = vsel %vm730_vm4, %v1150_v52, 0 }
 0x328   :  { %v1149_v49 = vpack.c.bf16 %v1036_v48, %v1033_v46 }
 0x32a   :  { %6119 = vmatprep.subr.bf16.mxu0 %v1149_v49 }
 0x32b   :  { %6120 = vmatpush3.bf16.msra.mxu0 %v1149_v49 }
 0x32c   :  { %6607 = vmatprep.subr.msk.bf16.mxu0 %vm730_vm4, %v1150_v52  ;;  %v6654_v52 = vld [vmem:[%s8402_s2 + $0x60] sm:$0xff]  }
 0x32f   :  { %6122 = vmatpush3.bf16.msra.mxu0 %v1158_v53  ;;  %v789_v53 = vsel %vm730_vm4, %v411_v43, 0 }
 0x3a4   :  { %v689_v54 = vpop.xlane.xlu0 %688 }
 0x3a5   :  { %v696_v55 = vsub.f32 %v7170_v3, %v689_v54  ;;  %v6655_v54 = vld [vmem:[%s8402_s2 + $0x68] sm:$0xff]  }
 0x3a6   :  { %v692_v56 = vpop.xlane.xlu1 %691 }
 0x3a7   :  { %v699_v57 = vmul.f32 1.442695, %v696_v55  ;;  %v697_v58 = vsub.f32 %v677_v14, %v692_v56 }
 0x3a8   :  { %v695_v59 = vpop.xlane.xlu0 %694 }
 0x3a9   :  { %6724 = vpow2.f32 %v699_v57  ;;  %v701_v61 = vmul.f32 1.442695, %v697_v58  ;;  %v698_v62 = vsub.f32 %v7175_v13, %v695_v59 }
 0x3aa   :  { %v376_v63 = vpop.xlane.xlu1 %375 }
 0x3ab   :  { %6726 = vpow2.f32 %v701_v61  ;;  %v703_v0 = vmul.f32 1.442695, %v698_v62  ;;  %v384_v1 = vsub.f32 %v360_v18, %v376_v63 }
 0x3ac   :  { %v379_v2 = vpop.xlane.xlu0 %378 }
 0x3ad   :  { %6728 = vpow2.f32 %v703_v0  ;;  %v387_v4 = vmul.f32 1.442695, %v384_v1  ;;  %v385_v5 = vsub.f32 %v363_v23, %v379_v2 }
 0x3ae   :  { %v383_v6 = vpop.xlane.xlu1 %382 }
 0x3af   :  { %6730 = vpow2.f32 %v387_v4  ;;  %v389_v9 = vmul.f32 1.442695, %v385_v5  ;;  %v386_v3 = vsub.f32 %v368_v29, %v383_v6  ;;  %v5493_v4 = vld [vmem:[%s8403_s4 + $0xc] ss:$0 sm:$0xff] }
 0x3b1   :  { %6732 = vpow2.f32 %v389_v9  ;;  %v391_v10 = vmul.f32 1.442695, %v386_v3 }
 0x3b3   :  { %v6725_v11 = vpop.eup %6724  ;;  %6734 = vpow2.f32 %v391_v10 }
 0x3b4   :  { %v705_v12 = vsel %vm373_vm2, %v6725_v11, 0.0 }
 0x3b5   :  { %v6727_v14 = vpop.eup %6726  ;;  %706 = vadd.xlane.f32.xlu0 %v705_v12 }
 0x3b6   :  { %v708_v13 = vsel %vm373_vm2, %v6727_v14, 0.0 }
 0x3b7   :  { %v6729_v15 = vpop.eup %6728  ;;  %709 = vadd.xlane.f32.xlu1 %v708_v13 }
 0x3b8   :  { %v711_v16 = vsel %vm380_vm3, %v6729_v15, 0.0 }
 0x3b9   :  { %v6731_v17 = vpop.eup %6730  ;;  %712 = vadd.xlane.f32.xlu0 %v711_v16 }
 0x3ba   :  { %v393_v18 = vsel %vm373_vm2, %v6731_v17, 0.0 }
 0x3bb   :  { %v6733_v19 = vpop.eup %6732  ;;  %394 = vadd.xlane.f32.xlu1 %v393_v18  ;;  %v6657_v18 = vld [vmem:[%s8402_s2 + $0x78] sm:$0xff]  }
 0x3bc   :  { %v396_v20 = vsel %vm373_vm2, %v6733_v19, 0.0 }
 0x3bd   :  { %v6735_v21 = vpop.eup %6734  ;;  %397 = vadd.xlane.f32.xlu0 %v396_v20  ;;  %v5505_v20 = vld [vmem:[%s8404_s6 + $0x40] sm:$0x3] }
 0x3be   :  { %v399_v22 = vsel %vm380_vm3, %v6735_v21, 0.0 }
 0x3bf   :  { %400 = vadd.xlane.f32.xlu1 %v399_v22  ;;  %v5504_v22 = vld [vmem:[%s8404_s6 + $0x38] sm:$0xff] }
 0x442   :  { %v707_v23 = vpop.xlane.xlu0 %706 }
 0x443   :  { %6736 = vrcp.f32 %v707_v23 }
 0x444   :  { %v710_v24 = vpop.xlane.xlu1 %709 }
 0x445   :  { %6738 = vrcp.f32 %v710_v24 }
 0x446   :  { %v713_v26 = vpop.xlane.xlu0 %712 }
 0x447   :  { %6740 = vrcp.f32 %v713_v26 }
 0x448   :  { %v395_v28 = vpop.xlane.xlu1 %394 }
 0x449   :  { %6742 = vrcp.f32 %v395_v28 }
 0x44a   :  { %v398_v29 = vpop.xlane.xlu0 %397 }
 0x44b   :  { %6744 = vrcp.f32 %v398_v29 }
 0x44c   :  { %v401_v30 = vpop.xlane.xlu1 %400 }
 0x44d   :  { %v6737_v31 = vpop.eup %6736  ;;  %6746 = vrcp.f32 %v401_v30 }
 0x44e   :  { %v717_v33 = vmul.f32 %v6737_v31, %v6725_v11 }
 0x44f   :  { %v6739_v32 = vpop.eup %6738 }
 0x450   :  { %v718_v34 = vmul.f32 %v6739_v32, %v6727_v14 }
 0x451   :  { %v6741_v35 = vpop.eup %6740 }
 0x452   :  { %v719_v36 = vmul.f32 %v6741_v35, %v6729_v15  ;;  %v720_v38 = vpack.c.bf16 %v718_v34, %v717_v33  ;;  %v6656_v15 = vld [vmem:[%s8402_s2 + $0x70] sm:$0xff]   ;;  %v5515_v34 = vld [vmem:[%s8403_s4 + $0xd] ss:$0 sm:$0xff] }
 0x453   :  { %v6743_v39 = vpop.eup %6742 }
 0x454   :  { %6075 = vmatprep.mubr.msk.bf16.mxu1 %vm373_vm2, %v720_v38  ;;  %v721_v40 = vpack.c.bf16 %v719_v36, %v719_v36  ;;  %v405_v44 = vmul.f32 %v6743_v39, %v6731_v17  ;;  %v7253_v17 = vpack.c.bf16 %v7191_v27, %v7191_v27  ;;  %v5503_v27 = vld [vmem:[%s8404_s6 + $0x30] sm:$0xff] }
 0x455   :  { %v6745_v41 = vpop.eup %6744 }
 0x456   :  { %6076 = vmatmul.mubr.msk.bf16.vlgmr.msra.gmra.mrb[16].mxu1 %vm373_vm2, %v721_v40  ;;  %v406_v45 = vmul.f32 %v6745_v41, %v6733_v19 }
 0x457   :  { %v6747_v46 = vpop.eup %6746  ;;  %6080 = vmatpush3.bf16.msra.mxu1 %v7095_v8 }
 0x458   :  { %v407_v48 = vmul.f32 %v6747_v46, %v6735_v21  ;;  %6604 = vmatprep.subr.msk.bf16.mxu1 %vm730_vm4, %v411_v43  ;;  %v408_v49 = vpack.c.bf16 %v406_v45, %v405_v44 }
 0x45a   :  { %6083 = vmatprep.mubr.msk.bf16.mxu1 %vm373_vm2, %v408_v49  ;;  %v409_v60 = vpack.c.bf16 %v407_v48, %v407_v48 }
 0x45b   :  { %6082 = vmatpush3.bf16.msra.mxu1 %v789_v53 }
 0x45c   :  { %6095 = vmatprep.subr.bf16.mxu1 %v6654_v52 }
 0x45e   :  { %6084 = vmatmul.mubr.msk.bf16.vlgmr.msra.gmra.mrb[20].mxu1 %vm373_vm2, %v409_v60 }
 0x45f   :  { %6096 = vmatpush3.bf16.msra.mxu1 %v6654_v52  ;;  %6099 = vmatprep.mubr.msk.bf16.mxu1 %vm35_vm0, %v7051_v51 }
 0x460   :  { %6097 = vmatprep.subr.bf16.mxu1 %v6655_v54 }
 0x463   :  { %6098 = vmatpush3.bf16.msra.mxu1 %v6655_v54 }
 0x466   :  { %6100 = vmatmul.mubr.msk.bf16.vlgmr.msra.gmra.mrb[24].mxu1 %vm35_vm0, %v7049_v50 }
 0x467   :  { %6115 = vmatprep.mubr.msk.bf16.mxu1 %vm35_vm0, %v7198_v37 }
 0x529   :  { %v6077_v8 = vpop.f32.mrb[16].mxu1 }
 0x52a   :  { %v768_v55 = vpop.f32.mrb[17].mxu1 }
 0x52b   :  { %v6078_v56 = vpop.f32.mrb[18].mxu1 }
 0x52c   :  { %v771_v57 = vpop.f32.mrb[19].mxu1 }
 0x531   :  { %v6085_v58 = vpop.f32.mrb[20].mxu1 }
 0x532   :  { %v7235_v59 = vadd.f32 %v6085_v58, %v6077_v8  ;;  %v825_v61 = vpop.f32.mrb[21].mxu1 }
 0x533   :  { %v7237_v62 = vadd.f32 %v825_v61, %v768_v55  ;;  %v6086_v63 = vpop.f32.mrb[22].mxu1 }
 0x534   :  { %v828_v0 = vpop.f32.mrb[23].mxu1 }
 0x535   :  { %v7239_v1 = vadd.f32 %v828_v0, %v771_v57 }
 0x539   :  { %v6101_v2 = vpop.f32.mrb[24].mxu1 }
 0x53a   :  { %v963_v5 = vpop.f32.mrb[25].mxu1  ;;  %v972_v3 = vadd.f32 %v6101_v2, %v5493_v4 }
 0x53b   :  { %v6102_v6 = vpop.f32.mrb[26].mxu1  ;;  %v964_v10 = vadd.f32 %v5493_v4, %v963_v5 }
 0x53c   :  { %v966_v9 = vpop.f32.mrb[27].mxu1  ;;  %v1049_v14 = vpack.c.bf16 %v972_v3, %v972_v3 }
 0x53d   :  { %v967_v11 = vadd.f32 %v5493_v4, %v966_v9  ;;  %v6658_v4 = vld [vmem:[%s8402_s2 + $0x30] sm:$0xff]  }
 0x53e   :  { %v1064_v16 = vsel %vm35_vm0, %v1049_v14, 0  ;;  %6127 = vmatprep.subr.bf16.mxu0 %v6658_v4 }
 0x53f   :  { %v1048_v12 = vpack.c.bf16 %v967_v11, %v964_v10 }
 0x541   :  { %6605 = vmatprep.subr.msk.bf16.mxu1 %vm35_vm0, %v1048_v12  ;;  %v1061_v13 = vsel %vm35_vm0, %v1048_v12, 0 }
 0x542   :  { %6112 = vmatpush3.bf16.xpose.msra.mxu1 %v1061_v13 }
 0x543   :  { %6606 = vmatprep.subr.msk.bf16.mxu1 %vm35_vm0, %v1049_v14 }
 0x54a   :  { %6114 = vmatpush3.bf16.xpose.msra.mxu1 %v1064_v16 }
 0x54b   :  { %6135 = vmatprep.subr.bf16.mxu1 %v6656_v15 }
 0x551   :  { %6116 = vmatmul.mubr.msk.bf16.vlgmr.msra.gmra.mrb[28].mxu1 %vm35_vm0, %v7253_v17 }
 0x552   :  { %6136 = vmatpush3.bf16.msra.mxu1 %v6656_v15  ;;  %6139 = vmatprep.mubr.msk.bf16.mxu1 %vm35_vm0, %v7051_v51 }
 0x553   :  { %6137 = vmatprep.subr.bf16.mxu1 %v6657_v18 }
 0x556   :  { %6138 = vmatpush3.bf16.msra.mxu1 %v6657_v18  ;;  %v6659_v18 = vld [vmem:[%s8402_s2 + $0x38] sm:$0xff]  }
 0x559   :  { %6140 = vmatmul.mubr.msk.bf16.vlgmr.msra.gmra.mrb[32].mxu1 %vm35_vm0, %v7049_v50 }
 0x624   :  { %v6117_v19 = vpop.f32.mrb[28].mxu1 }
 0x625   :  { %v1100_v21 = vpop.f32.mrb[29].mxu1  ;;  %v1109_v28 = vadd.f32 %v6117_v19, %v5505_v20  ;;  %v6661_v19 = vld [vmem:[%s8402_s2 + $0xb8] sm:$0xff]  }
 0x626   :  { %v1101_v23 = vadd.f32 %v5503_v27, %v1100_v21  ;;  %v6118_v24 = vpop.f32.mrb[30].mxu1  ;;  %v6660_v27 = vld [vmem:[%s8402_s2 + $0xb0] sm:$0xff]  }
 0x627   :  { %v1103_v26 = vpop.f32.mrb[31].mxu1  ;;  %v1120_v33 = vsel %vm380_vm3, %v1109_v28, -inf }
 0x628   :  { %v1104_v29 = vadd.f32 %v5504_v22, %v1103_v26  ;;  %v1114_v30 = vsel %vm373_vm2, %v1101_v23, -inf }
 0x629   :  { %1115 = vmax.xlane.f32.xlu0 %v1114_v30 }
 0x62a   :  { %v1117_v31 = vsel %vm373_vm2, %v1104_v29, -inf }
 0x62b   :  { %1118 = vmax.xlane.f32.xlu1 %v1117_v31 }
 0x62c   :  { %v6141_v32 = vpop.f32.mrb[32].mxu1 }
 0x62d   :  { %v1335_v35 = vpop.f32.mrb[33].mxu1  ;;  %1121 = vmax.xlane.f32.xlu0 %v1120_v33  ;;  %v1344_v39 = vadd.f32 %v6141_v32, %v5515_v34 }
 0x62e   :  { %v6142_v36 = vpop.f32.mrb[34].mxu1  ;;  %v1336_v40 = vadd.f32 %v5515_v34, %v1335_v35 }
 0x62f   :  { %v1338_v38 = vpop.f32.mrb[35].mxu1  ;;  %v1421_v44 = vpack.c.bf16 %v1344_v39, %v1344_v39 }
 0x630   :  { %v1339_v41 = vadd.f32 %v5515_v34, %v1338_v38 }
 0x631   :  { %v1436_v46 = vsel %vm35_vm0, %v1421_v44, 0 }
 0x632   :  { %v1420_v43 = vpack.c.bf16 %v1339_v41, %v1336_v40 }
 0x634   :  { %6608 = vmatprep.subr.msk.bf16.mxu1 %vm35_vm0, %v1420_v43  ;;  %v1433_v45 = vsel %vm35_vm0, %v1420_v43, 0 }
 0x635   :  { %6152 = vmatpush3.bf16.xpose.msra.mxu1 %v1433_v45 }
 0x636   :  { %6609 = vmatprep.subr.msk.bf16.mxu1 %vm35_vm0, %v1421_v44 }
 0x63d   :  { %6154 = vmatpush3.bf16.xpose.msra.mxu1 %v1436_v46 }
 0x6b6   :  { %v1116_v48 = vpop.xlane.xlu0 %1115 }
 0x6b7   :  { %v1123_v49 = vsub.f32 %v1101_v23, %v1116_v48  ;;  %v5525_v48 = vld [vmem:[%s8404_s6 + $0x48] sm:$0xff] }
 0x6b8   :  { %v1119_v52 = vpop.xlane.xlu1 %1118 }
 0x6b9   :  { %v1126_v53 = vmul.f32 1.442695, %v1123_v49  ;;  %v1124_v60 = vsub.f32 %v1104_v29, %v1119_v52  ;;  %v5527_v52 = vld [vmem:[%s8404_s6 + $0x58] sm:$0x3] }
 0x6ba   :  { %v1122_v54 = vpop.xlane.xlu0 %1121 }
 0x6bb   :  { %6748 = vpow2.f32 %v1126_v53  ;;  %v1128_v8 = vmul.f32 1.442695, %v1124_v60  ;;  %v1125_v55 = vsub.f32 %v1109_v28, %v1122_v54  ;;  %v5526_v60 = vld [vmem:[%s8404_s6 + $0x50] sm:$0xff] }
 0x6bd   :  { %6750 = vpow2.f32 %v1128_v8  ;;  %v1130_v56 = vmul.f32 1.442695, %v1125_v55 }
 0x6bf   :  { %6752 = vpow2.f32 %v1130_v56 }
 0x6c5   :  { %v6749_v57 = vpop.eup %6748 }
 0x6c6   :  { %v1132_v58 = vsel %vm373_vm2, %v6749_v57, 0.0 }
 0x6c7   :  { %v6751_v61 = vpop.eup %6750  ;;  %1133 = vadd.xlane.f32.xlu1 %v1132_v58 }
 0x6c8   :  { %v1135_v63 = vsel %vm373_vm2, %v6751_v61, 0.0 }
 0x6c9   :  { %v6753_v0 = vpop.eup %6752  ;;  %1136 = vadd.xlane.f32.xlu0 %v1135_v63 }
 0x6ca   :  { %v1138_v2 = vsel %vm380_vm3, %v6753_v0, 0.0 }
 0x6cb   :  { %1139 = vadd.xlane.f32.xlu1 %v1138_v2 }
 0x754   :  { %v1134_v5 = vpop.xlane.xlu1 %1133 }
 0x755   :  { %6754 = vrcp.f32 %v1134_v5 }
 0x756   :  { %v1137_v6 = vpop.xlane.xlu0 %1136 }
 0x757   :  { %6756 = vrcp.f32 %v1137_v6 }
 0x758   :  { %v1140_v9 = vpop.xlane.xlu1 %1139 }
 0x759   :  { %6758 = vrcp.f32 %v1140_v9 }
 0x75f   :  { %v6755_v3 = vpop.eup %6754 }
 0x760   :  { %v1144_v11 = vmul.f32 %v6755_v3, %v6749_v57 }
 0x761   :  { %v6757_v10 = vpop.eup %6756 }
 0x762   :  { %v1145_v12 = vmul.f32 %v6757_v10, %v6751_v61 }
 0x763   :  { %v6759_v14 = vpop.eup %6758 }
 0x764   :  { %v1146_v13 = vmul.f32 %v6759_v14, %v6753_v0  ;;  %v1147_v15 = vpack.c.bf16 %v1145_v12, %v1144_v11 }
 0x766   :  { %6123 = vmatprep.mubr.msk.bf16.mxu0 %vm373_vm2, %v1147_v15  ;;  %v1148_v16 = vpack.c.bf16 %v1146_v13, %v1146_v13 }
 0x768   :  { %6124 = vmatmul.mubr.msk.bf16.vlgmr.msra.gmra.mrb[24].mxu0 %vm373_vm2, %v1148_v16 }
 0x769   :  { %6128 = vmatpush3.bf16.msra.mxu0 %v6658_v4  ;;  %6131 = vmatprep.mubr.msk.bf16.mxu0 %vm35_vm0, %v7051_v51 }
 0x76a   :  { %6129 = vmatprep.subr.bf16.mxu0 %v6659_v18 }
 0x76d   :  { %6130 = vmatpush3.bf16.msra.mxu0 %v6659_v18 }
 0x76e   :  { %6143 = vmatprep.subr.bf16.mxu0 %v6660_v27 }
 0x770   :  { %6132 = vmatmul.mubr.msk.bf16.vlgmr.msra.gmra.mrb[28].mxu0 %vm35_vm0, %v7049_v50 }
 0x771   :  { %6144 = vmatpush3.bf16.msra.mxu0 %v6660_v27  ;;  %6147 = vmatprep.mubr.msk.bf16.mxu0 %vm35_vm0, %v7051_v51  ;;  %v5510_v51 = vld [vmem:[%s8403_s4 + $0x9] ss:$0 sm:$0xff] }
 0x772   :  { %6145 = vmatprep.subr.bf16.mxu0 %v6661_v19 }
 0x775   :  { %6146 = vmatpush3.bf16.msra.mxu0 %v6661_v19 }
 0x778   :  { %6148 = vmatmul.mubr.msk.bf16.vlgmr.msra.gmra.mrb[32].mxu0 %vm35_vm0, %v7049_v50 }
 0x83b   :  { %v6125_v20 = vpop.f32.mrb[24].mxu0 }
 0x83c   :  { %v7309_v21 = vadd.f32 %v6125_v20, %v7235_v59  ;;  %v1194_v22 = vpop.f32.mrb[25].mxu0 }
 0x83d   :  { %v7312_v23 = vadd.f32 %v1194_v22, %v7237_v62  ;;  %v6126_v24 = vpop.f32.mrb[26].mxu0 }
 0x83e   :  { %v1197_v26 = vpop.f32.mrb[27].mxu0 }
 0x83f   :  { %v7315_v28 = vadd.f32 %v1197_v26, %v7239_v1  ;;  %v5520_v1 = vld [vmem:[%s8403_s4 + $0x11] ss:$0 sm:$0xff] }
 0x843   :  { %v6133_v29 = vpop.f32.mrb[28].mxu0 }
 0x844   :  { %v1266_v30 = vpop.f32.mrb[29].mxu0  ;;  %v1275_v31 = vadd.f32 %v6133_v29, %v5510_v51 }
 0x845   :  { %v6134_v50 = vpop.f32.mrb[30].mxu0  ;;  %v1267_v59 = vadd.f32 %v5510_v51, %v1266_v30 }
 0x846   :  { %v1269_v32 = vpop.f32.mrb[31].mxu0  ;;  %v7322_v62 = vpack.c.bf16 %v1275_v31, %v1275_v31 }
 0x847   :  { %v1270_v33 = vadd.f32 %v5510_v51, %v1269_v32 }
 0x849   :  { %v7320_v34 = vpack.c.bf16 %v1270_v33, %v1267_v59 }
 0x84b   :  { %v6149_v35 = vpop.f32.mrb[32].mxu0  ;;  %6155 = vmatprep.mubr.msk.bf16.mxu1 %vm35_vm0, %v7320_v34 }
 0x84c   :  { %v1404_v36 = vpop.f32.mrb[33].mxu0  ;;  %6156 = vmatmul.mubr.msk.bf16.vlgmr.msra.gmra.mrb[36].mxu1 %vm35_vm0, %v7322_v62  ;;  %v1413_v40 = vadd.f32 %v6149_v35, %v5520_v1 }
 0x84d   :  { %v6150_v38 = vpop.f32.mrb[34].mxu0  ;;  %v1405_v41 = vadd.f32 %v5520_v1, %v1404_v36  ;;  %v5532_v36 = vld [vmem:[%s8403_s4 + $0x4] ss:$0 sm:$0xff] }
 0x84e   :  { %v1407_v39 = vpop.f32.mrb[35].mxu0  ;;  %v1522_v45 = vpack.c.bf16 %v1413_v40, %v1413_v40 }
 0x84f   :  { %v1408_v43 = vadd.f32 %v5520_v1, %v1407_v39  ;;  %v6922_v39 = vld [vmem:[%s8401_s0 + $0x10] sm:$0x3] }
 0x850   :  { %v1530_v46 = vsel %vm730_vm4, %v1522_v45, 0 }
 0x851   :  { %v1521_v44 = vpack.c.bf16 %v1408_v43, %v1405_v41  ;;  %v6923_v41 = vld [vmem:[%s8401_s0] sm:$0xff] }
 0x853   :  { %6159 = vmatprep.subr.bf16.mxu0 %v1521_v44 }
 0x854   :  { %6160 = vmatpush3.bf16.msra.mxu0 %v1521_v44 }
 0x855   :  { %6610 = vmatprep.subr.msk.bf16.mxu0 %vm730_vm4, %v1522_v45 }
 0x858   :  { %6162 = vmatpush3.bf16.msra.mxu0 %v1530_v46 }
 0x91f   :  { %v6157_v49 = vpop.f32.mrb[36].mxu1 }
 0x920   :  { %v1472_v53 = vpop.f32.mrb[37].mxu1  ;;  %v1481_v56 = vadd.f32 %v6157_v49, %v5527_v52 }
 0x921   :  { %v1473_v54 = vadd.f32 %v5525_v48, %v1472_v53  ;;  %v6158_v8 = vpop.f32.mrb[38].mxu1 }
 0x922   :  { %v1475_v55 = vpop.f32.mrb[39].mxu1  ;;  %v1492_v63 = vsel %vm380_vm3, %v1481_v56, -inf }
 0x923   :  { %v1476_v57 = vadd.f32 %v5526_v60, %v1475_v55  ;;  %v1486_v58 = vsel %vm373_vm2, %v1473_v54, -inf }
 0x924   :  { %1487 = vmax.xlane.f32.xlu0 %v1486_v58 }
 0x925   :  { %v1489_v61 = vsel %vm373_vm2, %v1476_v57, -inf }
 0x926   :  { %1490 = vmax.xlane.f32.xlu1 %v1489_v61 }
 0x928   :  { %1493 = vmax.xlane.f32.xlu0 %v1492_v63 }
 0x9b1   :  { %v1488_v0 = vpop.xlane.xlu0 %1487 }
 0x9b2   :  { %v1495_v2 = vsub.f32 %v1473_v54, %v1488_v0 }
 0x9b3   :  { %v1491_v4 = vpop.xlane.xlu1 %1490 }
 0x9b4   :  { %v1498_v5 = vmul.f32 1.442695, %v1495_v2  ;;  %v1496_v6 = vsub.f32 %v1476_v57, %v1491_v4  ;;  %v30_v4 = vld [vmem:[%s8405_s1] sm:$0xff] }
 0x9b5   :  { %v1494_v9 = vpop.xlane.xlu0 %1493 }
 0x9b6   :  { %6760 = vpow2.f32 %v1498_v5  ;;  %v1500_v3 = vmul.f32 1.442695, %v1496_v6  ;;  %v1497_v10 = vsub.f32 %v1481_v56, %v1494_v9  ;;  %v31_v9 = vld [vmem:[%s8405_s1 + $0x8] sm:$0xff] }
 0x9b8   :  { %6762 = vpow2.f32 %v1500_v3  ;;  %v1502_v11 = vmul.f32 1.442695, %v1497_v10  ;;  %v1880_v10 = vsel %vm35_vm0, %v30_v4, 0.0 }
 0x9ba   :  { %6764 = vpow2.f32 %v1502_v11  ;;  %v32_v11 = vld [vmem:[%s8405_s1 + $0x10] sm:$0x3] }
 0x9c0   :  { %v6761_v12 = vpop.eup %6760 }
 0x9c1   :  { %v1504_v14 = vsel %vm373_vm2, %v6761_v12, 0.0 }
 0x9c2   :  { %v6763_v13 = vpop.eup %6762  ;;  %1505 = vadd.xlane.f32.xlu1 %v1504_v14  ;;  %v1886_v14 = vsel %vm42_vm1, %v32_v11, 0.0 }
 0x9c3   :  { %v1507_v15 = vsel %vm373_vm2, %v6763_v13, 0.0 }
 0x9c4   :  { %v6765_v16 = vpop.eup %6764  ;;  %1508 = vadd.xlane.f32.xlu0 %v1507_v15  ;;  %v6663_v15 = vld [vmem:[%s8406_s3 + $0x8] sm:$0xff]  }
 0x9c5   :  { %v1510_v18 = vsel %vm380_vm3, %v6765_v16, 0.0 }
 0x9c6   :  { %1511 = vadd.xlane.f32.xlu1 %v1510_v18 }
 0xa4f   :  { %v1506_v27 = vpop.xlane.xlu1 %1505 }
 0xa50   :  { %6766 = vrcp.f32 %v1506_v27 }
 0xa51   :  { %v1509_v19 = vpop.xlane.xlu0 %1508 }
 0xa52   :  { %6768 = vrcp.f32 %v1509_v19 }
 0xa53   :  { %v1512_v20 = vpop.xlane.xlu1 %1511 }
 0xa54   :  { %6770 = vrcp.f32 %v1512_v20 }
 0xa5a   :  { %v6767_v22 = vpop.eup %6766 }
 0xa5b   :  { %v1516_v26 = vmul.f32 %v6767_v22, %v6761_v12  ;;  %v1883_v12 = vsel %vm35_vm0, %v31_v9, 0.0 }
 0xa5c   :  { %v6769_v24 = vpop.eup %6768 }
 0xa5d   :  { %v1517_v29 = vmul.f32 %v6769_v24, %v6763_v13  ;;  %v6662_v13 = vld [vmem:[%s8406_s3] sm:$0xff]  }
 0xa5e   :  { %v6771_v51 = vpop.eup %6770  ;;  %6167 = vmatprep.subr.bf16.mxu0 %v6662_v13 }
 0xa5f   :  { %v1518_v30 = vmul.f32 %v6771_v51, %v6765_v16  ;;  %v1519_v50 = vpack.c.bf16 %v1517_v29, %v1516_v26 }
 0xa61   :  { %6163 = vmatprep.mubr.msk.bf16.mxu0 %vm373_vm2, %v1519_v50  ;;  %v1520_v31 = vpack.c.bf16 %v1518_v30, %v1518_v30 }
 0xa63   :  { %6164 = vmatmul.mubr.msk.bf16.vlgmr.msra.gmra.mrb[36].mxu0 %vm373_vm2, %v1520_v31 }
 0xa64   :  { %6168 = vmatpush3.bf16.msra.mxu0 %v6662_v13  ;;  %v7465_v13 = vld [vmem:[%s8402_s2 + $0x110] sm:$0xff]  }
 0xa65   :  { %6169 = vmatprep.subr.bf16.mxu0 %v6663_v15 }
 0xa68   :  { %6170 = vmatpush3.bf16.msra.mxu0 %v6663_v15 }
 0xb36   :  { %v6165_v32 = vpop.f32.mrb[36].mxu0 }
 0xb37   :  { %v1582_v59 = vadd.f32 %v6165_v32, %v7309_v21  ;;  %v1566_v33 = vpop.f32.mrb[37].mxu0 }
 0xb38   :  { %v1580_v35 = vadd.f32 %v1566_v33, %v7312_v23  ;;  %v6166_v1 = vpop.f32.mrb[38].mxu0  ;;  %v6924_v23 = vld [vmem:[%s8401_s0 + $0x8] sm:$0xff] }
 0xb39   :  { %v1569_v38 = vpop.f32.mrb[39].mxu0  ;;  %v1585_v40 = vadd.f32 %v6922_v39, %v1582_v59 }
 0xb3a   :  { %v1583_v43 = vadd.f32 %v6923_v41, %v1580_v35  ;;  %v1581_v21 = vadd.f32 %v1569_v38, %v7315_v28 }
 0xb3b   :  { %v7367_v46 = vadd.f32 %v5532_v36, %v1585_v40 }
 0xb3c   :  { %v7362_v44 = vadd.f32 %v5532_v36, %v1583_v43  ;;  %v1584_v45 = vadd.f32 %v6924_v23, %v1581_v21  ;;  %v5533_v21 = vld [vmem:[%s8403_s4 + $0x2] ss:$0 sm:$0xff] }
 0xb3d   :  { %v1602_v28 = vsel %vm42_vm1, %v7367_v46, 0.0 }
 0xb3e   :  { %v7369_v48 = vadd.f32 %v5532_v36, %v1584_v45  ;;  %v1596_v49 = vsel %vm35_vm0, %v7362_v44, 0.0 }
 0xb3f   :  { %1597 = vadd.xlane.f32.xlu0 %v1596_v49 }
 0xb40   :  { %v1599_v52 = vsel %vm35_vm0, %v7369_v48, 0.0 }
 0xb41   :  { %1600 = vadd.xlane.f32.xlu1 %v1599_v52 }
 0xb43   :  { %1603 = vadd.xlane.f32.xlu0 %v1602_v28 }
 0xbcc   :  { %v1598_v53 = vpop.xlane.xlu0 %1597 }
 0xbcd   :  { %v1605_v60 = vmul.f32 0.03125, %v1598_v53 }
 0xbce   :  { %v1601_v54 = vpop.xlane.xlu1 %1600 }
 0xbcf   :  { %v1608_v8 = vsub.f32 %v7362_v44, %v1605_v60  ;;  %v1606_v55 = vmul.f32 0.03125, %v1601_v54  ;;  %v5534_v60 = vld [vmem:[%s8403_s4 + $0x3] ss:$0 sm:$0xff] }
 0xbd0   :  { %v1604_v56 = vpop.xlane.xlu0 %1603 }
 0xbd1   :  { %v1609_v57 = vsub.f32 %v7369_v48, %v1606_v55  ;;  %v1607_v58 = vmul.f32 0.03125, %v1604_v56  ;;  %v1611_v61 = vmul.f32 %v1608_v8, %v1608_v8 }
 0xbd3   :  { %v7380_v63 = vsub.f32 %v7367_v46, %v1607_v58  ;;  %v1614_v0 = vsel %vm35_vm0, %v1611_v61, 0.0  ;;  %v1612_v2 = vmul.f32 %v1609_v57, %v1609_v57 }
 0xbd4   :  { %1615 = vadd.xlane.f32.xlu1 %v1614_v0 }
 0xbd5   :  { %v1617_v5 = vsel %vm35_vm0, %v1612_v2, 0.0  ;;  %v1613_v6 = vmul.f32 %v7380_v63, %v7380_v63 }
 0xbd6   :  { %1618 = vadd.xlane.f32.xlu0 %v1617_v5  ;;  %v6670_v5 = vld [vmem:[%s8402_s2 + $0xc0] sm:$0xff]  }
 0xbd7   :  { %v1620_v3 = vsel %vm42_vm1, %v1613_v6, 0.0  ;;  %6175 = vmatprep.subr.bf16.mxu1 %v6670_v5  ;;  %v6671_v6 = vld [vmem:[%s8402_s2 + $0xc8] sm:$0xff]  }
 0xbd8   :  { %1621 = vadd.xlane.f32.xlu1 %v1620_v3  ;;  %6176 = vmatpush3.bf16.msra.mxu1 %v6670_v5  ;;  %v6673_v3 = vld [vmem:[%s8402_s2 + $0xd8] sm:$0xff]  }
 0xbd9   :  { %6177 = vmatprep.subr.bf16.mxu1 %v6671_v6 }
 0xbda   :  { %1881 = vadd.xlane.f32.xlu0 %v1880_v10  ;;  %v6674_v10 = vld [vmem:[%s8402_s2 + $0xe0] sm:$0xff]  }
 0xbdc   :  { %1884 = vadd.xlane.f32.xlu1 %v1883_v12  ;;  %6178 = vmatpush3.bf16.msra.mxu1 %v6671_v6  ;;  %v6676_v12 = vld [vmem:[%s8402_s2 + $0xf0] sm:$0xff]  }
 0xbde   :  { %1887 = vadd.xlane.f32.xlu0 %v1886_v14  ;;  %v6677_v14 = vld [vmem:[%s8402_s2 + $0xf8] sm:$0xff]  }
 0xc61   :  { %v1616_v16 = vpop.xlane.xlu1 %1615 }
 0xc62   :  { %v1623_v18 = vmul.f32 0.03125, %v1616_v16 }
 0xc63   :  { %v1619_v27 = vpop.xlane.xlu0 %1618 }
 0xc64   :  { %v1626_v19 = vadd.f32 1e-05, %v1623_v18  ;;  %v1624_v20 = vmul.f32 0.03125, %v1619_v27 }
 0xc65   :  { %v1622_v22 = vpop.xlane.xlu1 %1621 }
 0xc66   :  { %6772 = vrsqrt.f32 %v1626_v19  ;;  %v1627_v24 = vadd.f32 1e-05, %v1624_v20  ;;  %v1625_v26 = vmul.f32 0.03125, %v1622_v22 }
 0xc67   :  { %v1882_v29 = vpop.xlane.xlu0 %1881 }
 0xc68   :  { %6774 = vrsqrt.f32 %v1627_v24  ;;  %v1628_v51 = vadd.f32 1e-05, %v1625_v26  ;;  %v1889_v30 = vmul.f32 0.03125, %v1882_v29 }
 0xc69   :  { %v1885_v50 = vpop.xlane.xlu1 %1884 }
 0xc6a   :  { %6776 = vrsqrt.f32 %v1628_v51  ;;  %v7405_v31 = vsub.f32 %v30_v4, %v1889_v30  ;;  %v1890_v32 = vmul.f32 0.03125, %v1885_v50  ;;  %v6666_v4 = vld [vmem:[%s8402_s2 + $0x140] sm:$0xff]   ;;  %v5549_v51 = vld [vmem:[%s8403_s4 + $0x12] ss:$0 sm:$0xff] }
 0xc6b   :  { %v1888_v59 = vpop.xlane.xlu0 %1887 }
 0xc6c   :  { %v7407_v33 = vsub.f32 %v31_v9, %v1890_v32  ;;  %v1891_v35 = vmul.f32 0.03125, %v1888_v59  ;;  %v1895_v1 = vmul.f32 %v7405_v31, %v7405_v31  ;;  %v6672_v9 = vld [vmem:[%s8402_s2 + $0xd0] sm:$0xff]  }
 0xc6d   :  { %6179 = vmatprep.subr.bf16.mxu1 %v6672_v9 }
 0xc6e   :  { %v7411_v36 = vsub.f32 %v32_v11, %v1891_v35  ;;  %v1898_v38 = vsel %vm35_vm0, %v1895_v1, 0.0  ;;  %v1896_v39 = vmul.f32 %v7407_v33, %v7407_v33  ;;  %6180 = vmatpush3.bf16.msra.mxu1 %v6672_v9  ;;  %v6675_v11 = vld [vmem:[%s8402_s2 + $0xe8] sm:$0xff]   ;;  %v5550_v1 = vld [vmem:[%s8403_s4 + $0x13] ss:$0 sm:$0xff] }
 0xc6f   :  { %1899 = vadd.xlane.f32.xlu1 %v1898_v38  ;;  %6181 = vmatprep.subr.bf16.mxu1 %v6673_v3 }
 0xc70   :  { %v6773_v40 = vpop.eup %6772  ;;  %v1901_v41 = vsel %vm35_vm0, %v1896_v39, 0.0  ;;  %v1897_v43 = vmul.f32 %v7411_v36, %v7411_v36 }
 0xc71   :  { %v1632_v23 = vmul.f32 %v6773_v40, %v1608_v8  ;;  %1902 = vadd.xlane.f32.xlu0 %v1901_v41 }
 0xc72   :  { %v6775_v45 = vpop.eup %6774  ;;  %v1904_v49 = vsel %vm42_vm1, %v1897_v43, 0.0  ;;  %6182 = vmatpush3.bf16.msra.mxu1 %v6673_v3 }
 0xc73   :  { %v1633_v52 = vmul.f32 %v6775_v45, %v1609_v57  ;;  %1905 = vadd.xlane.f32.xlu1 %v1904_v49  ;;  %v1639_v28 = vmul.f32 %v5533_v21, %v1632_v23  ;;  %v6664_v57 = vld [vmem:[%s8402_s2 + $0x100] sm:$0xff]   ;;  %6183 = vmatprep.subr.bf16.mxu1 %v6674_v10 }
 0xc74   :  { %v6777_v53 = vpop.eup %6776  ;;  %6195 = vmatprep.subr.bf16.mxu0 %v6664_v57  ;;  %v5535_v49 = vld [vmem:[%s8407_s5] ss:$0 sm:$0xff] }
 0xc75   :  { %v1634_v54 = vmul.f32 %v6777_v53, %v7380_v63  ;;  %v1640_v55 = vmul.f32 %v5533_v21, %v1633_v52  ;;  %v1646_v56 = vadd.f32 %v5534_v60, %v1639_v28  ;;  %v6665_v63 = vld [vmem:[%s8402_s2 + $0x108] sm:$0xff]  }
 0xc76   :  { %6184 = vmatpush3.bf16.msra.mxu1 %v6674_v10 }
 0xc77   :  { %v1647_v58 = vadd.f32 %v5534_v60, %v1640_v55  ;;  %v1641_v61 = vmul.f32 %v5533_v21, %v1634_v54  ;;  %6185 = vmatprep.subr.bf16.mxu1 %v6675_v11 }
 0xc79   :  { %v1649_v0 = vpack.c.bf16 %v1647_v58, %v1646_v56  ;;  %v1648_v8 = vadd.f32 %v5534_v60, %v1641_v61 }
 0xc7a   :  { %6186 = vmatpush3.bf16.msra.mxu1 %v6675_v11 }
 0xc7b   :  { %6171 = vmatprep.mubr.msk.bf16.mxu0 %vm35_vm0, %v1649_v0  ;;  %v1650_v2 = vpack.c.bf16 %v1648_v8, %v1648_v8  ;;  %6187 = vmatprep.subr.bf16.mxu1 %v6676_v12 }
 0xc7d   :  { %6172 = vmatmul.mubr.msk.bf16.vlgmr.msra.gmra.mrb[40].mxu0 %vm35_vm0, %v1650_v2 }
 0xc7e   :  { %6196 = vmatpush3.bf16.msra.mxu0 %v6664_v57  ;;  %6188 = vmatpush3.bf16.msra.mxu1 %v6676_v12 }
 0xc7f   :  { %6197 = vmatprep.subr.bf16.mxu0 %v6665_v63  ;;  %6189 = vmatprep.subr.bf16.mxu1 %v6677_v14 }
 0xc82   :  { %6198 = vmatpush3.bf16.msra.mxu0 %v6665_v63  ;;  %6190 = vmatpush3.bf16.msra.mxu1 %v6677_v14 }
 0xc83   :  { %6203 = vmatprep.subr.bf16.mxu0 %v6666_v4  ;;  %6227 = vmatprep.subr.bf16.mxu1 %v7465_v13 }
 0xcfc   :  { %v1900_v15 = vpop.xlane.xlu1 %1899 }
 0xcfd   :  { %v1907_v16 = vmul.f32 0.03125, %v1900_v15 }
 0xcfe   :  { %v1903_v18 = vpop.xlane.xlu0 %1902 }
 0xcff   :  { %v1910_v27 = vadd.f32 1e-05, %v1907_v16  ;;  %v1908_v19 = vmul.f32 0.03125, %v1903_v18 }
 0xd00   :  { %v1906_v20 = vpop.xlane.xlu1 %1905 }
 0xd01   :  { %6778 = vrsqrt.f32 %v1910_v27  ;;  %v1911_v22 = vadd.f32 1e-05, %v1908_v19  ;;  %v1909_v24 = vmul.f32 0.03125, %v1906_v20 }
 0xd03   :  { %6780 = vrsqrt.f32 %v1911_v22  ;;  %v1912_v26 = vadd.f32 1e-05, %v1909_v24 }
 0xd05   :  { %6782 = vrsqrt.f32 %v1912_v26 }
 0xd0b   :  { %v6779_v29 = vpop.eup %6778 }
 0xd0c   :  { %v1916_v30 = vmul.f32 %v6779_v29, %v7405_v31  ;;  %v6667_v31 = vld [vmem:[%s8402_s2 + $0x148] sm:$0xff]  }
 0xd0d   :  { %v6781_v50 = vpop.eup %6780 }
 0xd0e   :  { %v1923_v32 = vmul.f32 %v5549_v51, %v1916_v30  ;;  %v1917_v59 = vmul.f32 %v6781_v50, %v7407_v33  ;;  %v6668_v33 = vld [vmem:[%s8402_s2 + $0x180] sm:$0xff]  }
 0xd0f   :  { %v6783_v35 = vpop.eup %6782 }
 0xd10   :  { %v1924_v38 = vmul.f32 %v5549_v51, %v1917_v59  ;;  %v1918_v39 = vmul.f32 %v6783_v35, %v7411_v36  ;;  %v1930_v40 = vadd.f32 %v5550_v1, %v1923_v32  ;;  %v6669_v36 = vld [vmem:[%s8402_s2 + $0x188] sm:$0xff]   ;;  %v6679_v32 = vld [vmem:[%s8402_s2 + $0x118] sm:$0xff]   ;;  %v6680_v59 = vld [vmem:[%s8402_s2 + $0x150] sm:$0xff]  }
 0xd11   :  { %v6681_v35 = vld [vmem:[%s8402_s2 + $0x158] sm:$0xff]  }
 0xd12   :  { %v1931_v41 = vadd.f32 %v5550_v1, %v1924_v38  ;;  %v1925_v43 = vmul.f32 %v5549_v51, %v1918_v39 }
 0xd14   :  { %v7477_v21 = vpack.c.bf16 %v1931_v41, %v1930_v40  ;;  %v1932_v23 = vadd.f32 %v5550_v1, %v1925_v43  ;;  %v5551_v1 = vld [vmem:[%s8403_s4 + $0x18] ss:$0 sm:$0xff] }
 0xd16   :  { %v7479_v45 = vpack.c.bf16 %v1932_v23, %v1932_v23  ;;  %6199 = vmatprep.mubr.msk.bf16.mxu0 %vm35_vm0, %v7477_v21 }
 0xd18   :  { %6200 = vmatmul.mubr.msk.bf16.vlgmr.msra.gmra.mrb[44].mxu0 %vm35_vm0, %v7479_v45 }
 0xd19   :  { %6204 = vmatpush3.bf16.msra.mxu0 %v6666_v4  ;;  %6207 = vmatprep.mubr.msk.bf16.mxu0 %vm35_vm0, %v7477_v21 }
 0xd1a   :  { %6205 = vmatprep.subr.bf16.mxu0 %v6667_v31 }
 0xd1d   :  { %6206 = vmatpush3.bf16.msra.mxu0 %v6667_v31 }
 0xd1e   :  { %6211 = vmatprep.subr.bf16.mxu0 %v6668_v33 }
 0xd20   :  { %6208 = vmatmul.mubr.msk.bf16.vlgmr.msra.gmra.mrb[48].mxu0 %vm35_vm0, %v7479_v45 }
 0xd21   :  { %6212 = vmatpush3.bf16.msra.mxu0 %v6668_v33  ;;  %6215 = vmatprep.mubr.msk.bf16.mxu0 %vm35_vm0, %v7477_v21  ;;  %v5556_v33 = vld [vmem:[%s8403_s4 + $0x1c] ss:$0 sm:$0xff] }
 0xd22   :  { %6213 = vmatprep.subr.bf16.mxu0 %v6669_v36 }
 0xd25   :  { %6214 = vmatpush3.bf16.msra.mxu0 %v6669_v36 }
 0xd28   :  { %6216 = vmatmul.mubr.msk.bf16.vlgmr.msra.gmra.mrb[52].mxu0 %vm35_vm0, %v7479_v45 }
 0xd50   :  { %v6173_v52 = vpop.f32.mrb[40].mxu0 }
 0xd51   :  { %v1721_v28 = vadd.f32 %v6173_v52, %v5535_v49  ;;  %v1712_v53 = vpop.f32.mrb[41].mxu0 }
 0xd52   :  { %v1713_v60 = vadd.f32 %v5535_v49, %v1712_v53  ;;  %v6174_v54 = vpop.f32.mrb[42].mxu0 }
 0xd53   :  { %v1731_v55 = vmul.f32 0.044715, %v1721_v28  ;;  %v1715_v56 = vpop.f32.mrb[43].mxu0  ;;  %v1728_v19 = vmul.f32 0.5, %v1721_v28 }
 0xd54   :  { %v1729_v58 = vmul.f32 0.044715, %v1713_v60  ;;  %v1716_v61 = vadd.f32 %v5535_v49, %v1715_v56  ;;  %v1726_v20 = vmul.f32 0.5, %v1713_v60 }
 0xd55   :  { %v1734_v0 = vmul.f32 %v1731_v55, %v1721_v28 }
 0xd56   :  { %v1732_v8 = vmul.f32 %v1729_v58, %v1713_v60  ;;  %v1730_v2 = vmul.f32 0.044715, %v1716_v61  ;;  %v1727_v22 = vmul.f32 0.5, %v1716_v61 }
 0xd57   :  { %v1737_v57 = vmul.f32 %v1734_v0, %v1721_v28 }
 0xd58   :  { %v1735_v63 = vmul.f32 %v1732_v8, %v1713_v60  ;;  %v1733_v4 = vmul.f32 %v1730_v2, %v1716_v61 }
 0xd59   :  { %v1740_v5 = vadd.f32 %v1737_v57, %v1721_v28 }
 0xd5a   :  { %v1736_v6 = vmul.f32 %v1733_v4, %v1716_v61  ;;  %v1738_v9 = vadd.f32 %v1735_v63, %v1713_v60 }
 0xd5b   :  { %v1743_v3 = vmul.f32 0.7978846, %v1740_v5  ;;  %v6682_v5 = vld [vmem:[%s8402_s2 + $0x190] sm:$0xff]  }
 0xd5c   :  { %v1739_v10 = vadd.f32 %v1736_v6, %v1716_v61  ;;  %v1741_v11 = vmul.f32 0.7978846, %v1738_v9  ;;  %v7537_v61 = vld [vmem:[%s8403_s4 + $0x20] ss:$0 sm:$0xff] }
 0xd5d   :  { %6784 = vtanh.f32 %v1743_v3 }
 0xd5e   :  { %v1742_v12 = vmul.f32 0.7978846, %v1739_v10  ;;  %6786 = vtanh.f32 %v1741_v11  ;;  %v6683_v10 = vld [vmem:[%s8402_s2 + $0x198] sm:$0xff]  }
 0xd60   :  { %6788 = vtanh.f32 %v1742_v12 }
 0xd67   :  { %v6785_v14 = vpop.eup %6784 }
 0xd68   :  { %v6787_v15 = vpop.eup %6786  ;;  %v1749_v16 = vadd.f32 1.0, %v6785_v14 }
 0xd69   :  { %v1747_v18 = vadd.f32 1.0, %v6787_v15 }
 0xd6a   :  { %v6789_v27 = vpop.eup %6788  ;;  %v1752_v26 = vmul.f32 %v1749_v16, %v1728_v19 }
 0xd6b   :  { %v1748_v24 = vadd.f32 1.0, %v6789_v27  ;;  %v1750_v29 = vmul.f32 %v1747_v18, %v1726_v20  ;;  %v5571_v18 = vld [vmem:[%s8403_s4 + $0x19] ss:$0 sm:$0xff] }
 0xd6c   :  { %v1754_v50 = vpack.c.bf16 %v1752_v26, %v1752_v26 }
 0xd6d   :  { %v1751_v51 = vmul.f32 %v1748_v24, %v1727_v22 }
 0xd6f   :  { %v1753_v30 = vpack.c.bf16 %v1751_v51, %v1750_v29  ;;  %v5576_v51 = vld [vmem:[%s8403_s4 + $0x1d] ss:$0 sm:$0xff] }
 0xd71   :  { %6191 = vmatprep.mubr.bf16.mxu1 %v1753_v30 }
 0xd72   :  { %6192 = vmatmul.mubr.bf16.vlgmr.msra.gmra.mrb[40].mxu1 %v1754_v50 }
 0xd73   :  { %6228 = vmatpush3.bf16.msra.mxu1 %v7465_v13  ;;  %6231 = vmatprep.mubr.msk.bf16.mxu1 %vm35_vm0, %v7477_v21 }
 0xd74   :  { %6229 = vmatprep.subr.bf16.mxu1 %v6679_v32 }
 0xd77   :  { %6230 = vmatpush3.bf16.msra.mxu1 %v6679_v32 }
 0xd78   :  { %6235 = vmatprep.subr.bf16.mxu1 %v6680_v59 }
 0xd7a   :  { %6232 = vmatmul.mubr.msk.bf16.vlgmr.msra.gmra.mrb[44].mxu1 %vm35_vm0, %v7479_v45 }
 0xd7b   :  { %6236 = vmatpush3.bf16.msra.mxu1 %v6680_v59  ;;  %6239 = vmatprep.mubr.msk.bf16.mxu1 %vm35_vm0, %v7477_v21 }
 0xd7c   :  { %6237 = vmatprep.subr.bf16.mxu1 %v6681_v35 }
 0xd7f   :  { %6238 = vmatpush3.bf16.msra.mxu1 %v6681_v35 }
 0xd82   :  { %6240 = vmatmul.mubr.msk.bf16.vlgmr.msra.gmra.mrb[48].mxu1 %vm35_vm0, %v7479_v45 }
 0xdeb   :  { %v6201_v13 = vpop.f32.mrb[44].mxu0 }
 0xdec   :  { %v1996_v38 = vpop.f32.mrb[45].mxu0  ;;  %v2005_v9 = vadd.f32 %v6201_v13, %v5551_v1 }
 0xded   :  { %v6202_v39 = vpop.f32.mrb[46].mxu0  ;;  %v1997_v41 = vadd.f32 %v5551_v1, %v1996_v38 }
 0xdee   :  { %v1999_v40 = vpop.f32.mrb[47].mxu0  ;;  %v2149_v3 = vpack.c.bf16 %v2005_v9, %v2005_v9  ;;  %v5586_v9 = vld [vmem:[%s8404_s6 + $0x78] sm:$0xff] }
 0xdef   :  { %v2000_v43 = vadd.f32 %v5551_v1, %v1999_v40  ;;  %v6684_v40 = vld [vmem:[%s8402_s2 + $0x120] sm:$0xff]  }
 0xdf1   :  { %v2148_v23 = vpack.c.bf16 %v2000_v43, %v1997_v41 }
 0xdf3   :  { %v6209_v31 = vpop.f32.mrb[48].mxu0  ;;  %6223 = vmatprep.mubr.msk.bf16.mxu0 %vm35_vm0, %v2148_v23 }
 0xdf4   :  { %v2065_v36 = vpop.f32.mrb[49].mxu0  ;;  %v2074_v28 = vadd.f32 %v6209_v31, %v5556_v33  ;;  %v6685_v31 = vld [vmem:[%s8402_s2 + $0x128] sm:$0xff]  }
 0xdf5   :  { %v6210_v49 = vpop.f32.mrb[50].mxu0  ;;  %v2066_v53 = vadd.f32 %v5556_v33, %v2065_v36  ;;  %v6687_v36 = vld [vmem:[%s8402_s2 + $0x1a8] sm:$0xff]  }
 0xdf6   :  { %v2068_v52 = vpop.f32.mrb[51].mxu0  ;;  %v2151_v55 = vpack.c.bf16 %v2074_v28, %v2074_v28 }
 0xdf7   :  { %v2069_v60 = vadd.f32 %v5556_v33, %v2068_v52  ;;  %v6686_v33 = vld [vmem:[%s8402_s2 + $0x1a0] sm:$0xff]  }
 0xdf8   :  { %v2166_v6 = vsel %vm35_vm0, %v2151_v55, 0 }
 0xdf9   :  { %v2150_v54 = vpack.c.bf16 %v2069_v60, %v2066_v53 }
 0xdfb   :  { %v7530_v56 = vpop.f32.mrb[52].mxu0  ;;  %6611 = vmatprep.subr.msk.bf16.mxu0 %vm35_vm0, %v2150_v54  ;;  %v2163_v58 = vsel %vm35_vm0, %v2150_v54, 0  ;;  %v5581_v54 = vld [vmem:[%s8403_s4 + $0x21] ss:$0 sm:$0xff] }
 0xdfc   :  { %v2134_v0 = vpop.f32.mrb[53].mxu0  ;;  %6220 = vmatpush3.bf16.xpose.msra.mxu0 %v2163_v58 }
 0xdfd   :  { %v6218_v8 = vpop.f32.mrb[54].mxu0  ;;  %6612 = vmatprep.subr.msk.bf16.mxu0 %vm35_vm0, %v2151_v55  ;;  %v2135_v57 = vadd.f32 %v7537_v61, %v2134_v0 }
 0xdfe   :  { %v2137_v2 = vpop.f32.mrb[55].mxu0 }
 0xdff   :  { %v2138_v63 = vadd.f32 %v7537_v61, %v2137_v2 }
 0xe01   :  { %v7542_v4 = vpack.c.bf16 %v2138_v63, %v2135_v57 }
 0xe04   :  { %6222 = vmatpush3.bf16.xpose.msra.mxu0 %v2166_v6 }
 0xe05   :  { %6243 = vmatprep.subr.bf16.mxu0 %v6682_v5 }
 0xe0b   :  { %6224 = vmatmul.mubr.msk.bf16.vlgmr.msra.gmra.mrb[56].mxu0 %vm35_vm0, %v2149_v3 }
 0xe0c   :  { %6244 = vmatpush3.bf16.msra.mxu0 %v6682_v5  ;;  %6247 = vmatprep.mubr.msk.bf16.mxu0 %vm35_vm0, %v7477_v21 }
 0xe0d   :  { %6245 = vmatprep.subr.bf16.mxu0 %v6683_v10 }
 0xe10   :  { %6246 = vmatpush3.bf16.msra.mxu0 %v6683_v10  ;;  %v5588_v10 = vld [vmem:[%s8404_s6 + $0x88] sm:$0x3] }
 0xe13   :  { %6248 = vmatmul.mubr.msk.bf16.vlgmr.msra.gmra.mrb[60].mxu0 %vm35_vm0, %v7479_v45 }
 0xe45   :  { %v7556_v11 = vpop.f32.mrb[40].mxu1 }
 0xe46   :  { %v7558_v12 = vpop.f32.mrb[41].mxu1 }
 0xe47   :  { %v6194_v14 = vpop.f32.mrb[42].mxu1 }
 0xe48   :  { %v7560_v15 = vpop.f32.mrb[43].mxu1 }
 0xe4d   :  { %v6233_v16 = vpop.f32.mrb[44].mxu1 }
 0xe4e   :  { %v2308_v27 = vpop.f32.mrb[45].mxu1  ;;  %v2317_v43 = vadd.f32 %v6233_v16, %v5571_v18  ;;  %v5587_v16 = vld [vmem:[%s8404_s6 + $0x80] sm:$0xff] }
 0xe4f   :  { %v6234_v19 = vpop.f32.mrb[46].mxu1  ;;  %v2309_v22 = vadd.f32 %v5571_v18, %v2308_v27 }
 0xe50   :  { %v2311_v20 = vpop.f32.mrb[47].mxu1  ;;  %v2461_v23 = vpack.c.bf16 %v2317_v43, %v2317_v43  ;;  %v5566_v19 = vld [vmem:[%s8404_s6 + $0x60] sm:$0xff] }
 0xe51   :  { %v2312_v24 = vadd.f32 %v5571_v18, %v2311_v20 }
 0xe53   :  { %v2460_v26 = vpack.c.bf16 %v2312_v24, %v2309_v22 }
 0xe55   :  { %v6241_v29 = vpop.f32.mrb[48].mxu1  ;;  %6255 = vmatprep.mubr.msk.bf16.mxu1 %vm35_vm0, %v2460_v26 }
 0xe56   :  { %v2377_v30 = vpop.f32.mrb[49].mxu1  ;;  %v2386_v59 = vadd.f32 %v6241_v29, %v5576_v51  ;;  %v5567_v29 = vld [vmem:[%s8404_s6 + $0x68] sm:$0xff] }
 0xe57   :  { %v6242_v50 = vpop.f32.mrb[50].mxu1  ;;  %v2378_v35 = vadd.f32 %v5576_v51, %v2377_v30 }
 0xe58   :  { %v2380_v32 = vpop.f32.mrb[51].mxu1  ;;  %v2463_v38 = vpack.c.bf16 %v2386_v59, %v2386_v59  ;;  %v5595_v50 = vld [vmem:[%s8403_s4 + $0x1a] ss:$0 sm:$0xff] }
 0xe59   :  { %v2381_v13 = vadd.f32 %v5576_v51, %v2380_v32  ;;  %v5568_v32 = vld [vmem:[%s8404_s6 + $0x70] sm:$0x3] }
 0xe5a   :  { %v2478_v41 = vsel %vm35_vm0, %v2463_v38, 0 }
 0xe5b   :  { %v2462_v1 = vpack.c.bf16 %v2381_v13, %v2378_v35 }
 0xe5d   :  { %6613 = vmatprep.subr.msk.bf16.mxu1 %vm35_vm0, %v2462_v1  ;;  %v2475_v39 = vsel %vm35_vm0, %v2462_v1, 0 }
 0xe5e   :  { %6252 = vmatpush3.bf16.xpose.msra.mxu1 %v2475_v39 }
 0xe5f   :  { %6614 = vmatprep.subr.msk.bf16.mxu1 %vm35_vm0, %v2463_v38 }
 0xe66   :  { %6254 = vmatpush3.bf16.xpose.msra.mxu1 %v2478_v41 }
 0xe67   :  { %6275 = vmatprep.subr.bf16.mxu1 %v6684_v40 }
 0xe6d   :  { %6256 = vmatmul.mubr.msk.bf16.vlgmr.msra.gmra.mrb[52].mxu1 %vm35_vm0, %v2461_v23 }
 0xe6e   :  { %6276 = vmatpush3.bf16.msra.mxu1 %v6684_v40  ;;  %6279 = vmatprep.mubr.msk.bf16.mxu1 %vm35_vm0, %v7477_v21 }
 0xe6f   :  { %6277 = vmatprep.subr.bf16.mxu1 %v6685_v31 }
 0xe72   :  { %6278 = vmatpush3.bf16.msra.mxu1 %v6685_v31 }
 0xe73   :  { %6291 = vmatprep.subr.bf16.mxu1 %v6686_v33 }
 0xe75   :  { %6280 = vmatmul.mubr.msk.bf16.vlgmr.msra.gmra.mrb[56].mxu1 %vm35_vm0, %v7479_v45 }
 0xe76   :  { %6292 = vmatpush3.bf16.msra.mxu1 %v6686_v33  ;;  %6295 = vmatprep.mubr.msk.bf16.mxu1 %vm35_vm0, %v7477_v21 }
 0xe77   :  { %6293 = vmatprep.subr.bf16.mxu1 %v6687_v36 }
 0xe7a   :  { %6294 = vmatpush3.bf16.msra.mxu1 %v6687_v36 }
 0xe7d   :  { %6296 = vmatmul.mubr.msk.bf16.vlgmr.msra.gmra.mrb[60].mxu1 %vm35_vm0, %v7479_v45 }
 0xede   :  { %v6225_v49 = vpop.f32.mrb[56].mxu0 }
 0xedf   :  { %v2202_v52 = vpop.f32.mrb[57].mxu0  ;;  %v2211_v39 = vadd.f32 %v6225_v49, %v5568_v32  ;;  %v5605_v49 = vld [vmem:[%s8403_s4 + $0x22] ss:$0 sm:$0xff] }
 0xee0   :  { %v6226_v28 = vpop.f32.mrb[58].mxu0  ;;  %v2203_v51 = vadd.f32 %v5566_v19, %v2202_v52 }
 0xee1   :  { %v2205_v53 = vpop.f32.mrb[59].mxu0  ;;  %v2222_v52 = vsel %vm380_vm3, %v2211_v39, -inf }
 0xee2   :  { %v2206_v59 = vadd.f32 %v5567_v29, %v2205_v53  ;;  %v2216_v41 = vsel %vm373_vm2, %v2203_v51, -inf }
 0xee4   :  { %v2219_v33 = vsel %vm373_vm2, %v2206_v59, -inf }
 0xee6   :  { %v6249_v60 = vpop.f32.mrb[60].mxu0 }
 0xee7   :  { %v2446_v55 = vpop.f32.mrb[61].mxu0  ;;  %v2455_v8 = vadd.f32 %v6249_v60, %v5581_v54 }
 0xee8   :  { %v6250_v58 = vpop.f32.mrb[62].mxu0  ;;  %v2447_v2 = vadd.f32 %v5581_v54, %v2446_v55 }
 0xee9   :  { %v2449_v0 = vpop.f32.mrb[63].mxu0  ;;  %v2564_v5 = vpack.c.bf16 %v2455_v8, %v2455_v8 }
 0xeea   :  { %v2450_v57 = vadd.f32 %v5581_v54, %v2449_v0 }
 0xeeb   :  { %v2572_v6 = vsel %vm730_vm4, %v2564_v5, 0 }
 0xeec   :  { %v2563_v63 = vpack.c.bf16 %v2450_v57, %v2447_v2 }
 0xeee   :  { %6259 = vmatprep.subr.bf16.mxu0 %v2563_v63 }
 0xeef   :  { %6260 = vmatpush3.bf16.msra.mxu0 %v2563_v63 }
 0xef0   :  { %6615 = vmatprep.subr.msk.bf16.mxu0 %vm730_vm4, %v2564_v5 }
 0xef3   :  { %6262 = vmatpush3.bf16.msra.mxu0 %v2572_v6 }
 0xef4   :  { %6267 = vmatprep.subr.bf16.mxu0 %v7542_v4 }
 0xf40   :  { %v6257_v3 = vpop.f32.mrb[52].mxu1 }
 0xf41   :  { %v2514_v14 = vpop.f32.mrb[53].mxu1  ;;  %v2523_v22 = vadd.f32 %v6257_v3, %v5588_v10 }
 0xf42   :  { %v2515_v18 = vadd.f32 %v5586_v9, %v2514_v14  ;;  %v6258_v27 = vpop.f32.mrb[54].mxu1 }
 0xf43   :  { %v2517_v20 = vpop.f32.mrb[55].mxu1  ;;  %v2534_v13 = vsel %vm380_vm3, %v2523_v22, -inf }
 0xf44   :  { %v2518_v24 = vadd.f32 %v5587_v16, %v2517_v20  ;;  %v2528_v26 = vsel %vm373_vm2, %v2515_v18, -inf }
 0xf45   :  { %2529 = vmax.xlane.f32.xlu0 %v2528_v26 }
 0xf46   :  { %v2531_v30 = vsel %vm373_vm2, %v2518_v24, -inf }
 0xf47   :  { %2532 = vmax.xlane.f32.xlu1 %v2531_v30 }
 0xf48   :  { %v6281_v35 = vpop.f32.mrb[56].mxu1 }
 0xf49   :  { %v7624_v1 = vadd.f32 %v6281_v35, %v5595_v50  ;;  %v2734_v38 = vpop.f32.mrb[57].mxu1  ;;  %2535 = vmax.xlane.f32.xlu0 %v2534_v13 }
 0xf4a   :  { %v6282_v40 = vpop.f32.mrb[58].mxu1  ;;  %v7627_v23 = vadd.f32 %v5595_v50, %v2734_v38 }
 0xf4b   :  { %v2737_v43 = vpop.f32.mrb[59].mxu1  ;;  %2217 = vmax.xlane.f32.xlu1 %v2216_v41 }
 0xf4c   :  { %v7629_v31 = vadd.f32 %v5595_v50, %v2737_v43 }
 0xf4d   :  { %2220 = vmax.xlane.f32.xlu0 %v2219_v33 }
 0xf4e   :  { %v2886_v36 = vpack.c.bf16 %v7629_v31, %v7627_v23  ;;  %v7686_v23 = vld [vmem:[%s8403_s4 + $0x1e] ss:$0 sm:$0xff] }
 0xf4f   :  { %2223 = vmax.xlane.f32.xlu1 %v2222_v52 }
 0xf50   :  { %v6297_v28 = vpop.f32.mrb[60].mxu1 }
 0xf51   :  { %v2872_v53 = vpop.f32.mrb[61].mxu1  ;;  %v2881_v55 = vadd.f32 %v6297_v28, %v5605_v49 }
 0xf52   :  { %v6298_v60 = vpop.f32.mrb[62].mxu1  ;;  %v2873_v58 = vadd.f32 %v5605_v49, %v2872_v53 }
 0xf53   :  { %v2875_v54 = vpop.f32.mrb[63].mxu1  ;;  %v2990_v2 = vpack.c.bf16 %v2881_v55, %v2881_v55 }
 0xf54   :  { %v2876_v0 = vadd.f32 %v5605_v49, %v2875_v54 }
 0xf55   :  { %v2998_v57 = vsel %vm730_vm4, %v2990_v2, 0 }
 0xf56   :  { %v2989_v8 = vpack.c.bf16 %v2876_v0, %v2873_v58 }
 0xf58   :  { %6307 = vmatprep.subr.bf16.mxu1 %v2989_v8 }
 0xf59   :  { %6308 = vmatpush3.bf16.msra.mxu1 %v2989_v8 }
 0xf5a   :  { %6619 = vmatprep.subr.msk.bf16.mxu1 %vm730_vm4, %v2990_v2 }
 0xf5d   :  { %6310 = vmatpush3.bf16.msra.mxu1 %v2998_v57 }
 0xfd2   :  { %v2530_v63 = vpop.xlane.xlu0 %2529 }
 0xfd3   :  { %v2537_v5 = vsub.f32 %v2515_v18, %v2530_v63  ;;  %v2143_v63 = vadd.f32 %v7530_v56, %v7537_v61  ;;  %v7655_v56 = vld [vmem:[%s8402_s2 + $0x160] sm:$0xff]  }
 0xfd4   :  { %v2533_v6 = vpop.xlane.xlu1 %2532 }
 0xfd5   :  { %v2540_v9 = vmul.f32 1.442695, %v2537_v5  ;;  %v2538_v3 = vsub.f32 %v2518_v24, %v2533_v6 }
 0xfd6   :  { %v2536_v10 = vpop.xlane.xlu0 %2535 }
 0xfd7   :  { %6790 = vpow2.f32 %v2540_v9  ;;  %v2542_v14 = vmul.f32 1.442695, %v2538_v3  ;;  %v2539_v16 = vsub.f32 %v2523_v22, %v2536_v10 }
 0xfd8   :  { %v2218_v27 = vpop.xlane.xlu1 %2217 }
 0xfd9   :  { %6792 = vpow2.f32 %v2542_v14  ;;  %v2544_v19 = vmul.f32 1.442695, %v2539_v16  ;;  %v2225_v20 = vsub.f32 %v2203_v51, %v2218_v27  ;;  %v2252_v14 = vpack.c.bf16 %v2143_v63, %v2143_v63 }
 0xfda   :  { %v2221_v26 = vpop.xlane.xlu0 %2220 }
 0xfdb   :  { %6794 = vpow2.f32 %v2544_v19  ;;  %v2228_v29 = vmul.f32 1.442695, %v2225_v20  ;;  %v2226_v30 = vsub.f32 %v2206_v59, %v2221_v26  ;;  %v2629_v61 = vsel %vm730_vm4, %v2252_v14, 0 }
 0xfdc   :  { %v2224_v50 = vpop.xlane.xlu1 %2223 }
 0xfdd   :  { %6796 = vpow2.f32 %v2228_v29  ;;  %v2230_v32 = vmul.f32 1.442695, %v2226_v30  ;;  %v2227_v35 = vsub.f32 %v2211_v39, %v2224_v50 }
 0xfdf   :  { %6798 = vpow2.f32 %v2230_v32  ;;  %v2232_v18 = vmul.f32 1.442695, %v2227_v35 }
 0xfe1   :  { %v6791_v13 = vpop.eup %6790  ;;  %6800 = vpow2.f32 %v2232_v18 }
 0xfe2   :  { %v2546_v24 = vsel %vm373_vm2, %v6791_v13, 0.0 }
 0xfe3   :  { %v6793_v38 = vpop.eup %6792  ;;  %2547 = vadd.xlane.f32.xlu0 %v2546_v24 }
 0xfe4   :  { %v2549_v22 = vsel %vm373_vm2, %v6793_v38, 0.0 }
 0xfe5   :  { %v6795_v40 = vpop.eup %6794  ;;  %2550 = vadd.xlane.f32.xlu1 %v2549_v22 }
 0xfe6   :  { %v2552_v51 = vsel %vm380_vm3, %v6795_v40, 0.0 }
 0xfe7   :  { %v6797_v41 = vpop.eup %6796  ;;  %2553 = vadd.xlane.f32.xlu0 %v2552_v51 }
 0xfe8   :  { %v2234_v59 = vsel %vm373_vm2, %v6797_v41, 0.0 }
 0xfe9   :  { %v6799_v43 = vpop.eup %6798  ;;  %2235 = vadd.xlane.f32.xlu1 %v2234_v59 }
 0xfea   :  { %v2237_v39 = vsel %vm373_vm2, %v6799_v43, 0.0 }
 0xfeb   :  { %v6801_v33 = vpop.eup %6800  ;;  %2238 = vadd.xlane.f32.xlu0 %v2237_v39 }
 0xfec   :  { %v2240_v52 = vsel %vm380_vm3, %v6801_v33, 0.0 }
 0xfed   :  { %2241 = vadd.xlane.f32.xlu1 %v2240_v52 }
0x1070   :  { %v2548_v28 = vpop.xlane.xlu0 %2547 }
0x1071   :  { %6802 = vrcp.f32 %v2548_v28 }
0x1072   :  { %v2551_v49 = vpop.xlane.xlu1 %2550 }
0x1073   :  { %6804 = vrcp.f32 %v2551_v49 }
0x1074   :  { %v2554_v53 = vpop.xlane.xlu0 %2553 }
0x1075   :  { %6806 = vrcp.f32 %v2554_v53  ;;  %v6690_v53 = vld [vmem:[%s8402_s2 + $0x170] sm:$0xff]  }
0x1076   :  { %v2236_v60 = vpop.xlane.xlu1 %2235 }
0x1077   :  { %6808 = vrcp.f32 %v2236_v60 }
0x1078   :  { %v2239_v54 = vpop.xlane.xlu0 %2238 }
0x1079   :  { %6810 = vrcp.f32 %v2239_v54  ;;  %v2887_v54 = vpack.c.bf16 %v7624_v1, %v7624_v1 }
0x107a   :  { %v2242_v55 = vpop.xlane.xlu1 %2241 }
0x107b   :  { %v6803_v58 = vpop.eup %6802  ;;  %6812 = vrcp.f32 %v2242_v55  ;;  %v6691_v55 = vld [vmem:[%s8402_s2 + $0x178] sm:$0xff]  }
0x107c   :  { %v2558_v8 = vmul.f32 %v6803_v58, %v6791_v13  ;;  %v5610_v58 = vld [vmem:[%s8404_s6 + $0x90] sm:$0xff] }
0x107d   :  { %v6805_v0 = vpop.eup %6804 }
0x107e   :  { %v2559_v2 = vmul.f32 %v6805_v0, %v6793_v38  ;;  %v5612_v0 = vld [vmem:[%s8404_s6 + $0xa0] sm:$0x3] }
0x107f   :  { %v6807_v57 = vpop.eup %6806 }
0x1080   :  { %v2560_v5 = vmul.f32 %v6807_v57, %v6795_v40  ;;  %v2561_v6 = vpack.c.bf16 %v2559_v2, %v2558_v8  ;;  %v5611_v2 = vld [vmem:[%s8404_s6 + $0x98] sm:$0xff] }
0x1081   :  { %v6809_v9 = vpop.eup %6808 }
0x1082   :  { %6263 = vmatprep.mubr.msk.bf16.mxu0 %vm373_vm2, %v2561_v6  ;;  %v2562_v3 = vpack.c.bf16 %v2560_v5, %v2560_v5  ;;  %v2246_v16 = vmul.f32 %v6809_v9, %v6797_v41 }
0x1083   :  { %v6811_v10 = vpop.eup %6810 }
0x1084   :  { %6264 = vmatmul.mubr.msk.bf16.vlgmr.msra.gmra.mrb[64].mxu0 %vm373_vm2, %v2562_v3  ;;  %v2247_v27 = vmul.f32 %v6811_v10, %v6799_v43 }
0x1085   :  { %v6813_v19 = vpop.eup %6812  ;;  %6268 = vmatpush3.bf16.msra.mxu0 %v7542_v4  ;;  %v7663_v4 = vld [vmem:[%s8402_s2 + $0x168] sm:$0xff]  }
0x1086   :  { %v2248_v20 = vmul.f32 %v6813_v19, %v6801_v33  ;;  %6616 = vmatprep.subr.msk.bf16.mxu0 %vm730_vm4, %v2252_v14  ;;  %v2249_v26 = vpack.c.bf16 %v2247_v27, %v2246_v16  ;;  %v5622_v27 = vld [vmem:[%s8403_s4 + $0x1f] ss:$0 sm:$0xff] }
0x1088   :  { %6271 = vmatprep.mubr.msk.bf16.mxu0 %vm373_vm2, %v2249_v26  ;;  %v2250_v29 = vpack.c.bf16 %v2248_v20, %v2248_v20 }
0x1089   :  { %6270 = vmatpush3.bf16.msra.mxu0 %v2629_v61 }
0x108a   :  { %6283 = vmatprep.subr.bf16.mxu0 %v7655_v56 }
0x108c   :  { %6272 = vmatmul.mubr.msk.bf16.vlgmr.msra.gmra.mrb[68].mxu0 %vm373_vm2, %v2250_v29 }
0x108d   :  { %6284 = vmatpush3.bf16.msra.mxu0 %v7655_v56  ;;  %6287 = vmatprep.mubr.msk.bf16.mxu0 %vm35_vm0, %v7477_v21 }
0x108e   :  { %6285 = vmatprep.subr.bf16.mxu0 %v7663_v4 }
0x1091   :  { %6286 = vmatpush3.bf16.msra.mxu0 %v7663_v4 }
0x1094   :  { %6288 = vmatmul.mubr.msk.bf16.vlgmr.msra.gmra.mrb[72].mxu0 %vm35_vm0, %v7479_v45 }
0x1095   :  { %6303 = vmatprep.mubr.msk.bf16.mxu0 %vm35_vm0, %v2886_v36 }
0x1157   :  { %v6265_v30 = vpop.f32.mrb[64].mxu0 }
0x1158   :  { %v2608_v50 = vpop.f32.mrb[65].mxu0 }
0x1159   :  { %v6266_v32 = vpop.f32.mrb[66].mxu0 }
0x115a   :  { %v2611_v35 = vpop.f32.mrb[67].mxu0 }
0x115f   :  { %v6273_v18 = vpop.f32.mrb[68].mxu0 }
0x1160   :  { %v7677_v13 = vadd.f32 %v6273_v18, %v6265_v30  ;;  %v2665_v24 = vpop.f32.mrb[69].mxu0 }
0x1161   :  { %v7679_v38 = vadd.f32 %v2665_v24, %v2608_v50  ;;  %v6274_v22 = vpop.f32.mrb[70].mxu0 }
0x1162   :  { %v2668_v40 = vpop.f32.mrb[71].mxu0 }
0x1163   :  { %v7681_v51 = vadd.f32 %v2668_v40, %v2611_v35 }
0x1167   :  { %v6289_v41 = vpop.f32.mrb[72].mxu0 }
0x1168   :  { %v2803_v31 = vpop.f32.mrb[73].mxu0  ;;  %v2812_v43 = vadd.f32 %v6289_v41, %v7686_v23 }
0x1169   :  { %v6290_v36 = vpop.f32.mrb[74].mxu0  ;;  %v2804_v39 = vadd.f32 %v7686_v23, %v2803_v31 }
0x116a   :  { %v2806_v59 = vpop.f32.mrb[75].mxu0  ;;  %v2889_v28 = vpack.c.bf16 %v2812_v43, %v2812_v43 }
0x116b   :  { %v2807_v33 = vadd.f32 %v7686_v23, %v2806_v59 }
0x116c   :  { %v2904_v60 = vsel %vm35_vm0, %v2889_v28, 0 }
0x116d   :  { %v2888_v52 = vpack.c.bf16 %v2807_v33, %v2804_v39 }
0x116f   :  { %6617 = vmatprep.subr.msk.bf16.mxu0 %vm35_vm0, %v2888_v52  ;;  %v2901_v49 = vsel %vm35_vm0, %v2888_v52, 0 }
0x1170   :  { %6300 = vmatpush3.bf16.xpose.msra.mxu0 %v2901_v49 }
0x1171   :  { %6618 = vmatprep.subr.msk.bf16.mxu0 %vm35_vm0, %v2889_v28 }
0x1178   :  { %6302 = vmatpush3.bf16.xpose.msra.mxu0 %v2904_v60 }
0x1179   :  { %6323 = vmatprep.subr.bf16.mxu0 %v6690_v53 }
0x117f   :  { %6304 = vmatmul.mubr.msk.bf16.vlgmr.msra.gmra.mrb[76].mxu0 %vm35_vm0, %v2887_v54  ;;  %v6692_v54 = vld [vmem:[%s8402_s2 + $0x130] sm:$0xff]  }
0x1180   :  { %6324 = vmatpush3.bf16.msra.mxu0 %v6690_v53  ;;  %6327 = vmatprep.mubr.msk.bf16.mxu0 %vm35_vm0, %v7477_v21 }
0x1181   :  { %6325 = vmatprep.subr.bf16.mxu0 %v6691_v55  ;;  %6315 = vmatprep.subr.bf16.mxu1 %v6692_v54 }
0x1184   :  { %6326 = vmatpush3.bf16.msra.mxu0 %v6691_v55 }
0x1187   :  { %6328 = vmatmul.mubr.msk.bf16.vlgmr.msra.gmra.mrb[80].mxu0 %vm35_vm0, %v7479_v45 }
0x1252   :  { %v6305_v1 = vpop.f32.mrb[76].mxu0 }
0x1253   :  { %v2940_v8 = vpop.f32.mrb[77].mxu0  ;;  %v2949_v6 = vadd.f32 %v6305_v1, %v5612_v0 }
0x1254   :  { %v2941_v57 = vadd.f32 %v5610_v58, %v2940_v8  ;;  %v6306_v63 = vpop.f32.mrb[78].mxu0 }
0x1255   :  { %v2943_v5 = vpop.f32.mrb[79].mxu0  ;;  %v2960_v16 = vsel %vm380_vm3, %v2949_v6, -inf }
0x1256   :  { %v2944_v9 = vadd.f32 %v5611_v2, %v2943_v5  ;;  %v2954_v3 = vsel %vm373_vm2, %v2941_v57, -inf }
0x1257   :  { %2955 = vmax.xlane.f32.xlu0 %v2954_v3  ;;  %v6693_v3 = vld [vmem:[%s8402_s2 + $0x138] sm:$0xff]  }
0x1258   :  { %v2957_v10 = vsel %vm373_vm2, %v2944_v9, -inf }
0x1259   :  { %2958 = vmax.xlane.f32.xlu1 %v2957_v10  ;;  %v7743_v10 = vld [vmem:[%s8402_s2 + $0x1b0] sm:$0xff]  }
0x125a   :  { %v6329_v14 = vpop.f32.mrb[80].mxu0 }
0x125b   :  { %v3175_v19 = vpop.f32.mrb[81].mxu0  ;;  %2961 = vmax.xlane.f32.xlu0 %v2960_v16  ;;  %v3184_v61 = vadd.f32 %v6329_v14, %v5622_v27  ;;  %v7749_v14 = vld [vmem:[%s8402_s2 + $0x1b8] sm:$0xff]  }
0x125c   :  { %v6330_v20 = vpop.f32.mrb[82].mxu0  ;;  %v3176_v29 = vadd.f32 %v5622_v27, %v3175_v19 }
0x125d   :  { %v3178_v26 = vpop.f32.mrb[83].mxu0  ;;  %v3261_v32 = vpack.c.bf16 %v3184_v61, %v3184_v61 }
0x125e   :  { %v3179_v30 = vadd.f32 %v5622_v27, %v3178_v26 }
0x125f   :  { %v3276_v18 = vsel %vm35_vm0, %v3261_v32, 0 }
0x1260   :  { %v3260_v50 = vpack.c.bf16 %v3179_v30, %v3176_v29  ;;  %v5617_v30 = vld [vmem:[%s8403_s4 + $0x1b] ss:$0 sm:$0xff] }
0x1262   :  { %6620 = vmatprep.subr.msk.bf16.mxu0 %vm35_vm0, %v3260_v50  ;;  %v3273_v35 = vsel %vm35_vm0, %v3260_v50, 0 }
0x1263   :  { %6340 = vmatpush3.bf16.xpose.msra.mxu0 %v3273_v35 }
0x1264   :  { %6621 = vmatprep.subr.msk.bf16.mxu0 %vm35_vm0, %v3261_v32 }
0x126b   :  { %6342 = vmatpush3.bf16.xpose.msra.mxu0 %v3276_v18 }
0x12e4   :  { %v2956_v24 = vpop.xlane.xlu0 %2955 }
0x12e5   :  { %v2963_v22 = vsub.f32 %v2941_v57, %v2956_v24 }
0x12e6   :  { %v2959_v40 = vpop.xlane.xlu1 %2958 }
0x12e7   :  { %v2966_v41 = vmul.f32 1.442695, %v2963_v22  ;;  %v2964_v31 = vsub.f32 %v2944_v9, %v2959_v40 }
0x12e8   :  { %v2962_v36 = vpop.xlane.xlu0 %2961 }
0x12e9   :  { %6814 = vpow2.f32 %v2966_v41  ;;  %v2968_v59 = vmul.f32 1.442695, %v2964_v31  ;;  %v2965_v43 = vsub.f32 %v2949_v6, %v2962_v36 }
0x12eb   :  { %6816 = vpow2.f32 %v2968_v59  ;;  %v2970_v39 = vmul.f32 1.442695, %v2965_v43 }
0x12ed   :  { %6818 = vpow2.f32 %v2970_v39 }
0x12f3   :  { %v6815_v33 = vpop.eup %6814 }
0x12f4   :  { %v2972_v52 = vsel %vm373_vm2, %v6815_v33, 0.0 }
0x12f5   :  { %v6817_v28 = vpop.eup %6816  ;;  %2973 = vadd.xlane.f32.xlu1 %v2972_v52 }
0x12f6   :  { %v2975_v49 = vsel %vm373_vm2, %v6817_v28, 0.0 }
0x12f7   :  { %v6819_v53 = vpop.eup %6818  ;;  %2976 = vadd.xlane.f32.xlu0 %v2975_v49 }
0x12f8   :  { %v2978_v60 = vsel %vm380_vm3, %v6819_v53, 0.0 }
0x12f9   :  { %2979 = vadd.xlane.f32.xlu1 %v2978_v60 }
0x1382   :  { %v2974_v55 = vpop.xlane.xlu1 %2973 }
0x1383   :  { %6820 = vrcp.f32 %v2974_v55 }
0x1384   :  { %v2977_v58 = vpop.xlane.xlu0 %2976 }
0x1385   :  { %6822 = vrcp.f32 %v2977_v58 }
0x1386   :  { %v2980_v1 = vpop.xlane.xlu1 %2979 }
0x1387   :  { %6824 = vrcp.f32 %v2980_v1 }
0x138d   :  { %v6821_v0 = vpop.eup %6820 }
0x138e   :  { %v2984_v2 = vmul.f32 %v6821_v0, %v6815_v33 }
0x138f   :  { %v6823_v8 = vpop.eup %6822 }
0x1390   :  { %v2985_v57 = vmul.f32 %v6823_v8, %v6817_v28  ;;  %v5632_v28 = vld [vmem:[%s8404_s6 + $0xa8] sm:$0xff] }
0x1391   :  { %v6825_v63 = vpop.eup %6824 }
0x1392   :  { %v2986_v5 = vmul.f32 %v6825_v63, %v6819_v53  ;;  %v2987_v6 = vpack.c.bf16 %v2985_v57, %v2984_v2  ;;  %v5634_v53 = vld [vmem:[%s8404_s6 + $0xb8] sm:$0x3] }
0x1394   :  { %6311 = vmatprep.mubr.msk.bf16.mxu1 %vm373_vm2, %v2987_v6  ;;  %v2988_v9 = vpack.c.bf16 %v2986_v5, %v2986_v5 }
0x1396   :  { %6312 = vmatmul.mubr.msk.bf16.vlgmr.msra.gmra.mrb[64].mxu1 %vm373_vm2, %v2988_v9 }
0x1397   :  { %6316 = vmatpush3.bf16.msra.mxu1 %v6692_v54  ;;  %6319 = vmatprep.mubr.msk.bf16.mxu1 %vm35_vm0, %v7477_v21  ;;  %v5633_v54 = vld [vmem:[%s8404_s6 + $0xb0] sm:$0xff] }
0x1398   :  { %6317 = vmatprep.subr.bf16.mxu1 %v6693_v3 }
0x139b   :  { %6318 = vmatpush3.bf16.msra.mxu1 %v6693_v3 }
0x139c   :  { %6331 = vmatprep.subr.bf16.mxu1 %v7743_v10 }
0x139e   :  { %6320 = vmatmul.mubr.msk.bf16.vlgmr.msra.gmra.mrb[68].mxu1 %vm35_vm0, %v7479_v45 }
0x139f   :  { %6332 = vmatpush3.bf16.msra.mxu1 %v7743_v10  ;;  %6335 = vmatprep.mubr.msk.bf16.mxu1 %vm35_vm0, %v7477_v21 }
0x13a0   :  { %6333 = vmatprep.subr.bf16.mxu1 %v7749_v14 }
0x13a3   :  { %6334 = vmatpush3.bf16.msra.mxu1 %v7749_v14 }
0x13a6   :  { %6336 = vmatmul.mubr.msk.bf16.vlgmr.msra.gmra.mrb[72].mxu1 %vm35_vm0, %v7479_v45 }
0x1469   :  { %v6313_v16 = vpop.f32.mrb[64].mxu1 }
0x146a   :  { %v7761_v27 = vadd.f32 %v6313_v16, %v7677_v13  ;;  %v3034_v19 = vpop.f32.mrb[65].mxu1 }
0x146b   :  { %v7764_v20 = vadd.f32 %v3034_v19, %v7679_v38  ;;  %v6314_v26 = vpop.f32.mrb[66].mxu1 }
0x146c   :  { %v3037_v61 = vpop.f32.mrb[67].mxu1 }
0x146d   :  { %v7767_v29 = vadd.f32 %v3037_v61, %v7681_v51  ;;  %v7776_v51 = vld [vmem:[%s8403_s4 + $0x23] ss:$0 sm:$0xff] }
0x1471   :  { %v6321_v21 = vpop.f32.mrb[68].mxu1 }
0x1472   :  { %v3106_v50 = vpop.f32.mrb[69].mxu1  ;;  %v3115_v32 = vadd.f32 %v6321_v21, %v5617_v30 }
0x1473   :  { %v6322_v45 = vpop.f32.mrb[70].mxu1  ;;  %v3107_v13 = vadd.f32 %v5617_v30, %v3106_v50 }
0x1474   :  { %v3109_v35 = vpop.f32.mrb[71].mxu1  ;;  %v3259_v22 = vpack.c.bf16 %v3115_v32, %v3115_v32 }
0x1475   :  { %v3110_v18 = vadd.f32 %v5617_v30, %v3109_v35 }
0x1477   :  { %v3258_v24 = vpack.c.bf16 %v3110_v18, %v3107_v13 }
0x1479   :  { %v6337_v38 = vpop.f32.mrb[72].mxu1  ;;  %6343 = vmatprep.mubr.msk.bf16.mxu0 %vm35_vm0, %v3258_v24 }
0x147a   :  { %v3244_v40 = vpop.f32.mrb[73].mxu1  ;;  %6344 = vmatmul.mubr.msk.bf16.vlgmr.msra.gmra.mrb[84].mxu0 %vm35_vm0, %v3259_v22  ;;  %v3253_v36 = vadd.f32 %v6337_v38, %v7776_v51 }
0x147b   :  { %v6338_v41 = vpop.f32.mrb[74].mxu1  ;;  %v3245_v59 = vadd.f32 %v7776_v51, %v3244_v40 }
0x147c   :  { %v3247_v31 = vpop.f32.mrb[75].mxu1  ;;  %v3362_v33 = vpack.c.bf16 %v3253_v36, %v3253_v36 }
0x147d   :  { %v3248_v43 = vadd.f32 %v7776_v51, %v3247_v31 }
0x147e   :  { %v3370_v52 = vsel %vm730_vm4, %v3362_v33, 0 }
0x147f   :  { %v3361_v39 = vpack.c.bf16 %v3248_v43, %v3245_v59 }
0x1481   :  { %6347 = vmatprep.subr.bf16.mxu1 %v3361_v39 }
0x1482   :  { %6348 = vmatpush3.bf16.msra.mxu1 %v3361_v39 }
0x1483   :  { %6622 = vmatprep.subr.msk.bf16.mxu1 %vm730_vm4, %v3362_v33 }
0x1486   :  { %6350 = vmatpush3.bf16.msra.mxu1 %v3370_v52 }
0x154d   :  { %v6345_v49 = vpop.f32.mrb[84].mxu0 }
0x154e   :  { %v3312_v60 = vpop.f32.mrb[85].mxu0  ;;  %v3321_v0 = vadd.f32 %v6345_v49, %v5634_v53 }
0x154f   :  { %v3313_v55 = vadd.f32 %v5632_v28, %v3312_v60  ;;  %v6346_v58 = vpop.f32.mrb[86].mxu0  ;;  %v5639_v60 = vld [vmem:[%s8403_s4 + $0x16] ss:$0 sm:$0xff] }
0x1550   :  { %v3315_v1 = vpop.f32.mrb[87].mxu0  ;;  %v3332_v63 = vsel %vm380_vm3, %v3321_v0, -inf }
0x1551   :  { %v3316_v8 = vadd.f32 %v5633_v54, %v3315_v1  ;;  %v3326_v2 = vsel %vm373_vm2, %v3313_v55, -inf  ;;  %v6926_v1 = vld [vmem:[%s8405_s1] sm:$0xff] }
0x1552   :  { %3327 = vmax.xlane.f32.xlu0 %v3326_v2 }
0x1553   :  { %v3329_v57 = vsel %vm373_vm2, %v3316_v8, -inf }
0x1554   :  { %3330 = vmax.xlane.f32.xlu1 %v3329_v57 }
0x1556   :  { %3333 = vmax.xlane.f32.xlu0 %v3332_v63 }
0x15df   :  { %v3328_v5 = vpop.xlane.xlu0 %3327 }
0x15e0   :  { %v3335_v6 = vsub.f32 %v3313_v55, %v3328_v5  ;;  %v6925_v55 = vld [vmem:[%s8405_s1 + $0x10] sm:$0x3] }
0x15e1   :  { %v3331_v9 = vpop.xlane.xlu1 %3330 }
0x15e2   :  { %v3338_v3 = vmul.f32 1.442695, %v3335_v6  ;;  %v3336_v16 = vsub.f32 %v3316_v8, %v3331_v9 }
0x15e3   :  { %v3334_v19 = vpop.xlane.xlu0 %3333 }
0x15e4   :  { %6826 = vpow2.f32 %v3338_v3  ;;  %v3340_v26 = vmul.f32 1.442695, %v3336_v16  ;;  %v3337_v61 = vsub.f32 %v3321_v0, %v3334_v19 }
0x15e6   :  { %6828 = vpow2.f32 %v3340_v26  ;;  %v3342_v21 = vmul.f32 1.442695, %v3337_v61 }
0x15e8   :  { %6830 = vpow2.f32 %v3342_v21 }
0x15ee   :  { %v6827_v30 = vpop.eup %6826 }
0x15ef   :  { %v3344_v50 = vsel %vm373_vm2, %v6827_v30, 0.0 }
0x15f0   :  { %v6829_v45 = vpop.eup %6828  ;;  %3345 = vadd.xlane.f32.xlu1 %v3344_v50 }
0x15f1   :  { %v3347_v32 = vsel %vm373_vm2, %v6829_v45, 0.0 }
0x15f2   :  { %v6831_v35 = vpop.eup %6830  ;;  %3348 = vadd.xlane.f32.xlu0 %v3347_v32 }
0x15f3   :  { %v3350_v13 = vsel %vm380_vm3, %v6831_v35, 0.0 }
0x15f4   :  { %3351 = vadd.xlane.f32.xlu1 %v3350_v13 }
0x167d   :  { %v3346_v18 = vpop.xlane.xlu1 %3345 }
0x167e   :  { %6832 = vrcp.f32 %v3346_v18 }
0x167f   :  { %v3349_v24 = vpop.xlane.xlu0 %3348 }
0x1680   :  { %6834 = vrcp.f32 %v3349_v24 }
0x1681   :  { %v3352_v22 = vpop.xlane.xlu1 %3351 }
0x1682   :  { %6836 = vrcp.f32 %v3352_v22  ;;  %v7837_v22 = vld [vmem:[%s8406_s3 + $0x10] sm:$0xff]  }
0x1683   :  { %6355 = vmatprep.subr.bf16.mxu1 %v7837_v22 }
0x1688   :  { %v6833_v38 = vpop.eup %6832 }
0x1689   :  { %v3356_v41 = vmul.f32 %v6833_v38, %v6827_v30  ;;  %v6697_v38 = vld [vmem:[%s8406_s3 + $0x18] sm:$0xff]  }
0x168a   :  { %v6835_v40 = vpop.eup %6834 }
0x168b   :  { %v3357_v31 = vmul.f32 %v6835_v40, %v6829_v45  ;;  %v6928_v40 = vld [vmem:[%s8402_s2 + $0x140] sm:$0xff]  }
0x168c   :  { %v6837_v36 = vpop.eup %6836 }
0x168d   :  { %v3358_v59 = vmul.f32 %v6837_v36, %v6831_v35  ;;  %v3359_v43 = vpack.c.bf16 %v3357_v31, %v3356_v41 }
0x168f   :  { %6351 = vmatprep.mubr.msk.bf16.mxu1 %vm373_vm2, %v3359_v43  ;;  %v3360_v39 = vpack.c.bf16 %v3358_v59, %v3358_v59 }
0x1691   :  { %6352 = vmatmul.mubr.msk.bf16.vlgmr.msra.gmra.mrb[76].mxu1 %vm373_vm2, %v3360_v39 }
0x1692   :  { %6356 = vmatpush3.bf16.msra.mxu1 %v7837_v22 }
0x1693   :  { %6357 = vmatprep.subr.bf16.mxu1 %v6697_v38 }
0x1696   :  { %6358 = vmatpush3.bf16.msra.mxu1 %v6697_v38 }
0x1697   :  { %6383 = vmatprep.subr.bf16.mxu1 %v6928_v40 }
0x1764   :  { %v6353_v33 = vpop.f32.mrb[76].mxu1 }
0x1765   :  { %v3422_v52 = vadd.f32 %v6353_v33, %v7761_v27  ;;  %v3406_v28 = vpop.f32.mrb[77].mxu1 }
0x1766   :  { %v3420_v49 = vadd.f32 %v3406_v28, %v7764_v20  ;;  %v6354_v53 = vpop.f32.mrb[78].mxu1  ;;  %v6927_v20 = vld [vmem:[%s8405_s1 + $0x8] sm:$0xff] }
0x1767   :  { %v3409_v54 = vpop.f32.mrb[79].mxu1  ;;  %v3425_v58 = vadd.f32 %v6925_v55, %v3422_v52  ;;  %v5640_v53 = vld [vmem:[%s8403_s4 + $0x14] ss:$0 sm:$0xff] }
0x1768   :  { %v3423_v0 = vadd.f32 %v6926_v1, %v3420_v49  ;;  %v3421_v27 = vadd.f32 %v3409_v54, %v7767_v29 }
0x1769   :  { %v7818_v57 = vadd.f32 %v5639_v60, %v3425_v58 }
0x176a   :  { %v7813_v8 = vadd.f32 %v5639_v60, %v3423_v0  ;;  %v3424_v2 = vadd.f32 %v6927_v20, %v3421_v27  ;;  %v5641_v0 = vld [vmem:[%s8403_s4 + $0x15] ss:$0 sm:$0xff] }
0x176b   :  { %v3442_v29 = vsel %vm42_vm1, %v7818_v57, 0.0 }
0x176c   :  { %v7820_v63 = vadd.f32 %v5639_v60, %v3424_v2  ;;  %v3436_v5 = vsel %vm35_vm0, %v7813_v8, 0.0 }
0x176d   :  { %3437 = vadd.xlane.f32.xlu0 %v3436_v5 }
0x176e   :  { %v3439_v6 = vsel %vm35_vm0, %v7820_v63, 0.0 }
0x176f   :  { %3440 = vadd.xlane.f32.xlu1 %v3439_v6 }
0x1771   :  { %3443 = vadd.xlane.f32.xlu0 %v3442_v29 }
0x17fa   :  { %v3438_v9 = vpop.xlane.xlu0 %3437 }
0x17fb   :  { %v3445_v3 = vmul.f32 0.03125, %v3438_v9 }
0x17fc   :  { %v3441_v16 = vpop.xlane.xlu1 %3440 }
0x17fd   :  { %v3448_v19 = vsub.f32 %v7813_v8, %v3445_v3  ;;  %v3446_v26 = vmul.f32 0.03125, %v3441_v16  ;;  %v6929_v16 = vld [vmem:[%s8402_s2 + $0x148] sm:$0xff]  }
0x17fe   :  { %v3444_v61 = vpop.xlane.xlu0 %3443 }
0x17ff   :  { %v3449_v21 = vsub.f32 %v7820_v63, %v3446_v26  ;;  %v3447_v30 = vmul.f32 0.03125, %v3444_v61  ;;  %v3451_v50 = vmul.f32 %v3448_v19, %v3448_v19  ;;  %v7867_v26 = vld [vmem:[%s8402_s2 + $0x1c0] sm:$0xff]   ;;  %v7874_v61 = vld [vmem:[%s8402_s2 + $0x1c8] sm:$0xff]  }
0x1800   :  { %6363 = vmatprep.subr.bf16.mxu0 %v7867_v26 }
0x1801   :  { %v3450_v45 = vsub.f32 %v7818_v57, %v3447_v30  ;;  %v3454_v32 = vsel %vm35_vm0, %v3451_v50, 0.0  ;;  %v3452_v35 = vmul.f32 %v3449_v21, %v3449_v21  ;;  %6364 = vmatpush3.bf16.msra.mxu0 %v7867_v26  ;;  %v7886_v30 = vld [vmem:[%s8402_s2 + $0x1d8] sm:$0xff]   ;;  %v7894_v50 = vld [vmem:[%s8402_s2 + $0x1e0] sm:$0xff]  }
0x1802   :  { %3455 = vadd.xlane.f32.xlu1 %v3454_v32  ;;  %6365 = vmatprep.subr.bf16.mxu0 %v7874_v61  ;;  %v7908_v32 = vld [vmem:[%s8402_s2 + $0x1f0] sm:$0xff]  }
0x1803   :  { %v3457_v13 = vsel %vm35_vm0, %v3452_v35, 0.0  ;;  %v3453_v18 = vmul.f32 %v3450_v45, %v3450_v45  ;;  %v7915_v35 = vld [vmem:[%s8402_s2 + $0x1f8] sm:$0xff]  }
0x1804   :  { %3458 = vadd.xlane.f32.xlu0 %v3457_v13  ;;  %v6931_v13 = vld [vmem:[%s8402_s2 + $0x150] sm:$0xff]  }
0x1805   :  { %v3460_v24 = vsel %vm42_vm1, %v3453_v18, 0.0  ;;  %6366 = vmatpush3.bf16.msra.mxu0 %v7874_v61  ;;  %v5642_v18 = vld [vmem:[%s8407_s5 + $0x1] ss:$0 sm:$0xff] }
0x1806   :  { %3461 = vadd.xlane.f32.xlu1 %v3460_v24 }
0x188f   :  { %v3456_v41 = vpop.xlane.xlu1 %3455 }
0x1890   :  { %v3463_v31 = vmul.f32 0.03125, %v3456_v41 }
0x1891   :  { %v3459_v36 = vpop.xlane.xlu0 %3458 }
0x1892   :  { %v3466_v59 = vadd.f32 1e-05, %v3463_v31  ;;  %v3464_v43 = vmul.f32 0.03125, %v3459_v36 }
0x1893   :  { %v3462_v39 = vpop.xlane.xlu1 %3461 }
0x1894   :  { %6838 = vrsqrt.f32 %v3466_v59  ;;  %v3467_v33 = vadd.f32 1e-05, %v3464_v43  ;;  %v3465_v52 = vmul.f32 0.03125, %v3462_v39 }
0x1896   :  { %6840 = vrsqrt.f32 %v3467_v33  ;;  %v3468_v28 = vadd.f32 1e-05, %v3465_v52 }
0x1898   :  { %6842 = vrsqrt.f32 %v3468_v28 }
0x189e   :  { %v6839_v49 = vpop.eup %6838 }
0x189f   :  { %v3472_v60 = vmul.f32 %v6839_v49, %v3448_v19  ;;  %v7861_v19 = vld [vmem:[%s8402_s2 + $0x180] sm:$0xff]  }
0x18a0   :  { %v6841_v54 = vpop.eup %6840 }
0x18a1   :  { %v3473_v55 = vmul.f32 %v6841_v54, %v3449_v21  ;;  %v3479_v58 = vmul.f32 %v5640_v53, %v3472_v60  ;;  %v7881_v21 = vld [vmem:[%s8402_s2 + $0x1d0] sm:$0xff]  }
0x18a2   :  { %v6843_v1 = vpop.eup %6842  ;;  %6367 = vmatprep.subr.bf16.mxu0 %v7881_v21 }
0x18a3   :  { %v3474_v27 = vmul.f32 %v6843_v1, %v3450_v45  ;;  %v3480_v20 = vmul.f32 %v5640_v53, %v3473_v55  ;;  %v3486_v2 = vadd.f32 %v5641_v0, %v3479_v58  ;;  %6368 = vmatpush3.bf16.msra.mxu0 %v7881_v21  ;;  %v7901_v45 = vld [vmem:[%s8402_s2 + $0x1e8] sm:$0xff]  }
0x18a4   :  { %6369 = vmatprep.subr.bf16.mxu0 %v7886_v30 }
0x18a5   :  { %v3487_v5 = vadd.f32 %v5641_v0, %v3480_v20  ;;  %v3481_v6 = vmul.f32 %v5640_v53, %v3474_v27 }
0x18a7   :  { %v3489_v29 = vpack.c.bf16 %v3487_v5, %v3486_v2  ;;  %v3488_v9 = vadd.f32 %v5641_v0, %v3481_v6  ;;  %6370 = vmatpush3.bf16.msra.mxu0 %v7886_v30 }
0x18a8   :  { %6371 = vmatprep.subr.bf16.mxu0 %v7894_v50 }
0x18a9   :  { %6359 = vmatprep.mubr.msk.bf16.mxu1 %vm35_vm0, %v3489_v29  ;;  %v3490_v3 = vpack.c.bf16 %v3488_v9, %v3488_v9 }
0x18ab   :  { %6360 = vmatmul.mubr.msk.bf16.vlgmr.msra.gmra.mrb[80].mxu1 %vm35_vm0, %v3490_v3  ;;  %6372 = vmatpush3.bf16.msra.mxu0 %v7894_v50 }
0x18ac   :  { %6384 = vmatpush3.bf16.msra.mxu1 %v6928_v40  ;;  %6373 = vmatprep.subr.bf16.mxu0 %v7901_v45 }
0x18ad   :  { %6385 = vmatprep.subr.bf16.mxu1 %v6929_v16 }
0x18af   :  { %6374 = vmatpush3.bf16.msra.mxu0 %v7901_v45 }
0x18b0   :  { %6386 = vmatpush3.bf16.msra.mxu1 %v6929_v16  ;;  %6375 = vmatprep.subr.bf16.mxu0 %v7908_v32 }
0x18b1   :  { %6391 = vmatprep.subr.bf16.mxu1 %v7861_v19 }
0x18b3   :  { %6376 = vmatpush3.bf16.msra.mxu0 %v7908_v32 }
0x18b4   :  { %6377 = vmatprep.subr.bf16.mxu0 %v7915_v35 }
0x18b7   :  { %6378 = vmatpush3.bf16.msra.mxu0 %v7915_v35 }
0x18b8   :  { %6407 = vmatprep.subr.bf16.mxu0 %v6931_v13 }
0x197e   :  { %v6361_v24 = vpop.f32.mrb[80].mxu1 }
0x197f   :  { %v3561_v38 = vadd.f32 %v6361_v24, %v5642_v18  ;;  %v3552_v40 = vpop.f32.mrb[81].mxu1 }
0x1980   :  { %v3553_v41 = vadd.f32 %v5642_v18, %v3552_v40  ;;  %v6362_v31 = vpop.f32.mrb[82].mxu1 }
0x1981   :  { %v3571_v36 = vmul.f32 0.044715, %v3561_v38  ;;  %v3555_v59 = vpop.f32.mrb[83].mxu1  ;;  %v3568_v3 = vmul.f32 0.5, %v3561_v38 }
0x1982   :  { %v3569_v43 = vmul.f32 0.044715, %v3553_v41  ;;  %v3556_v39 = vadd.f32 %v5642_v18, %v3555_v59  ;;  %v3566_v16 = vmul.f32 0.5, %v3553_v41 }
0x1983   :  { %v3574_v33 = vmul.f32 %v3571_v36, %v3561_v38 }
0x1984   :  { %v3572_v52 = vmul.f32 %v3569_v43, %v3553_v41  ;;  %v3570_v28 = vmul.f32 0.044715, %v3556_v39  ;;  %v3567_v18 = vmul.f32 0.5, %v3556_v39 }
0x1985   :  { %v3577_v49 = vmul.f32 %v3574_v33, %v3561_v38  ;;  %v6932_v33 = vld [vmem:[%s8402_s2 + $0x158] sm:$0xff]  }
0x1986   :  { %v3575_v53 = vmul.f32 %v3572_v52, %v3553_v41  ;;  %v3573_v60 = vmul.f32 %v3570_v28, %v3556_v39 }
0x1987   :  { %v3580_v54 = vadd.f32 %v3577_v49, %v3561_v38  ;;  %v5655_v38 = vld [vmem:[%s8403_s4 + $0x17] ss:$0 sm:$0xff] }
0x1988   :  { %v3576_v55 = vmul.f32 %v3573_v60, %v3556_v39  ;;  %v3578_v58 = vadd.f32 %v3575_v53, %v3553_v41 }
0x1989   :  { %v3583_v1 = vmul.f32 0.7978846, %v3580_v54 }
0x198a   :  { %v3579_v0 = vadd.f32 %v3576_v55, %v3556_v39  ;;  %v3581_v27 = vmul.f32 0.7978846, %v3578_v58 }
0x198b   :  { %6844 = vtanh.f32 %v3583_v1 }
0x198c   :  { %v3582_v20 = vmul.f32 0.7978846, %v3579_v0  ;;  %6846 = vtanh.f32 %v3581_v27 }
0x198e   :  { %6848 = vtanh.f32 %v3582_v20 }
0x1995   :  { %v6845_v2 = vpop.eup %6844 }
0x1996   :  { %v6847_v5 = vpop.eup %6846  ;;  %v3589_v6 = vadd.f32 1.0, %v6845_v2 }
0x1997   :  { %v3587_v29 = vadd.f32 1.0, %v6847_v5 }
0x1998   :  { %v6849_v9 = vpop.eup %6848  ;;  %v3592_v40 = vmul.f32 %v3589_v6, %v3568_v3 }
0x1999   :  { %v3588_v24 = vadd.f32 1.0, %v6849_v9  ;;  %v3590_v31 = vmul.f32 %v3587_v29, %v3566_v16 }
0x199a   :  { %v3594_v43 = vpack.c.bf16 %v3592_v40, %v3592_v40 }
0x199b   :  { %v3591_v36 = vmul.f32 %v3588_v24, %v3567_v18 }
0x199d   :  { %v3593_v59 = vpack.c.bf16 %v3591_v36, %v3590_v31 }
0x199f   :  { %6379 = vmatprep.mubr.bf16.mxu0 %v3593_v59 }
0x19a0   :  { %6380 = vmatmul.mubr.bf16.vlgmr.msra.gmra.mrb[88].mxu0 %v3594_v43 }
0x19a1   :  { %6408 = vmatpush3.bf16.msra.mxu0 %v6931_v13 }
0x19a2   :  { %6409 = vmatprep.subr.bf16.mxu0 %v6932_v33 }
0x19a5   :  { %6410 = vmatpush3.bf16.msra.mxu0 %v6932_v33 }
0x1a73   :  { %v6381_v52 = vpop.f32.mrb[88].mxu0 }
0x1a74   :  { %v3693_v41 = vpop.f32.mrb[89].mxu0  ;;  %v3709_v39 = vadd.f32 %v6381_v52, %v7818_v57 }
0x1a75   :  { %v3707_v28 = vadd.f32 %v3693_v41, %v7813_v8  ;;  %v6382_v49 = vpop.f32.mrb[90].mxu0 }
0x1a76   :  { %v3696_v53 = vpop.f32.mrb[91].mxu0  ;;  %v7937_v54 = vadd.f32 %v5655_v38, %v3709_v39 }
0x1a77   :  { %v7934_v60 = vadd.f32 %v5655_v38, %v3707_v28  ;;  %v3708_v13 = vadd.f32 %v3696_v53, %v7820_v63 }
0x1a78   :  { %v3724_v8 = vsel %vm42_vm1, %v7937_v54, 0.0 }
0x1a79   :  { %v7939_v55 = vadd.f32 %v5655_v38, %v3708_v13  ;;  %v3718_v58 = vsel %vm35_vm0, %v7934_v60, 0.0  ;;  %v6933_v13 = vld [vmem:[%s8403_s4 + $0x12] ss:$0 sm:$0xff] }
0x1a7a   :  { %3719 = vadd.xlane.f32.xlu0 %v3718_v58 }
0x1a7b   :  { %v3721_v1 = vsel %vm35_vm0, %v7939_v55, 0.0 }
0x1a7c   :  { %3722 = vadd.xlane.f32.xlu1 %v3721_v1 }
0x1a7e   :  { %3725 = vadd.xlane.f32.xlu0 %v3724_v8 }
0x1b07   :  { %v3720_v57 = vpop.xlane.xlu0 %3719 }
0x1b08   :  { %v3727_v0 = vmul.f32 0.03125, %v3720_v57 }
0x1b09   :  { %v3723_v27 = vpop.xlane.xlu1 %3722 }
0x1b0a   :  { %v3730_v63 = vsub.f32 %v7934_v60, %v3727_v0  ;;  %v3728_v20 = vmul.f32 0.03125, %v3723_v27  ;;  %v6934_v27 = vld [vmem:[%s8403_s4 + $0x13] ss:$0 sm:$0xff] }
0x1b0b   :  { %v3726_v2 = vpop.xlane.xlu0 %3725 }
0x1b0c   :  { %v3731_v5 = vsub.f32 %v7939_v55, %v3728_v20  ;;  %v3729_v6 = vmul.f32 0.03125, %v3726_v2  ;;  %v3733_v29 = vmul.f32 %v3730_v63, %v3730_v63 }
0x1b0e   :  { %v3732_v9 = vsub.f32 %v7937_v54, %v3729_v6  ;;  %v3736_v3 = vsel %vm35_vm0, %v3733_v29, 0.0  ;;  %v3734_v16 = vmul.f32 %v3731_v5, %v3731_v5 }
0x1b0f   :  { %3737 = vadd.xlane.f32.xlu1 %v3736_v3 }
0x1b10   :  { %v3739_v18 = vsel %vm35_vm0, %v3734_v16, 0.0  ;;  %v3735_v24 = vmul.f32 %v3732_v9, %v3732_v9 }
0x1b11   :  { %3740 = vadd.xlane.f32.xlu0 %v3739_v18 }
0x1b12   :  { %v3742_v40 = vsel %vm42_vm1, %v3735_v24, 0.0 }
0x1b13   :  { %3743 = vadd.xlane.f32.xlu1 %v3742_v40 }
0x1b9c   :  { %v3738_v31 = vpop.xlane.xlu1 %3737 }
0x1b9d   :  { %v3745_v36 = vmul.f32 0.03125, %v3738_v31 }
0x1b9e   :  { %v3741_v59 = vpop.xlane.xlu0 %3740 }
0x1b9f   :  { %v3748_v43 = vadd.f32 1e-05, %v3745_v36  ;;  %v3746_v33 = vmul.f32 0.03125, %v3741_v59  ;;  %v6937_v36 = vld [vmem:[%s8403_s4 + $0x1d] ss:$0 sm:$0xff] }
0x1ba0   :  { %v3744_v52 = vpop.xlane.xlu1 %3743 }
0x1ba1   :  { %6850 = vrsqrt.f32 %v3748_v43  ;;  %v3749_v38 = vadd.f32 1e-05, %v3746_v33  ;;  %v3747_v41 = vmul.f32 0.03125, %v3744_v52 }
0x1ba3   :  { %6852 = vrsqrt.f32 %v3749_v38  ;;  %v3750_v39 = vadd.f32 1e-05, %v3747_v41 }
0x1ba5   :  { %6854 = vrsqrt.f32 %v3750_v39 }
0x1bab   :  { %v6851_v28 = vpop.eup %6850 }
0x1bac   :  { %v3754_v49 = vmul.f32 %v6851_v28, %v3730_v63 }
0x1bad   :  { %v6853_v53 = vpop.eup %6852 }
0x1bae   :  { %v3757_v58 = vmul.f32 %v6933_v13, %v3754_v49  ;;  %v3755_v1 = vmul.f32 %v6853_v53, %v3731_v5  ;;  %v6935_v5 = vld [vmem:[%s8402_s2 + $0x188] sm:$0xff]  }
0x1baf   :  { %v6855_v8 = vpop.eup %6854 }
0x1bb0   :  { %v3758_v57 = vmul.f32 %v6933_v13, %v3755_v1  ;;  %v3756_v0 = vmul.f32 %v6855_v8, %v3732_v9  ;;  %v3760_v20 = vadd.f32 %v6934_v27, %v3757_v58 }
0x1bb2   :  { %v3761_v2 = vadd.f32 %v6934_v27, %v3758_v57  ;;  %v3759_v6 = vmul.f32 %v6933_v13, %v3756_v0 }
0x1bb4   :  { %v7959_v29 = vpack.c.bf16 %v3761_v2, %v3760_v20  ;;  %v3762_v63 = vadd.f32 %v6934_v27, %v3759_v6  ;;  %v8000_v27 = vld [vmem:[%s8403_s4 + $0x20] ss:$0 sm:$0xff] }
0x1bb6   :  { %v7961_v3 = vpack.c.bf16 %v3762_v63, %v3762_v63  ;;  %6387 = vmatprep.mubr.msk.bf16.mxu1 %vm35_vm0, %v7959_v29  ;;  %6411 = vmatprep.mubr.msk.bf16.mxu0 %vm35_vm0, %v7959_v29 }
0x1bb8   :  { %6388 = vmatmul.mubr.msk.bf16.vlgmr.msra.gmra.mrb[84].mxu1 %vm35_vm0, %v7961_v3  ;;  %6412 = vmatmul.mubr.msk.bf16.vlgmr.msra.gmra.mrb[92].mxu0 %vm35_vm0, %v7961_v3 }
0x1bb9   :  { %6392 = vmatpush3.bf16.msra.mxu1 %v7861_v19  ;;  %6395 = vmatprep.mubr.msk.bf16.mxu1 %vm35_vm0, %v7959_v29 }
0x1bba   :  { %6427 = vmatprep.mubr.msk.bf16.mxu0 %vm35_vm0, %v7105_v25  ;;  %6393 = vmatprep.subr.bf16.mxu1 %v6935_v5  ;;  %v6936_v25 = vld [vmem:[%s8403_s4 + $0x1c] ss:$0 sm:$0xff] }
0x1bbd   :  { %6394 = vmatpush3.bf16.msra.mxu1 %v6935_v5 }
0x1bc0   :  { %6396 = vmatmul.mubr.msk.bf16.vlgmr.msra.gmra.mrb[88].mxu1 %vm35_vm0, %v7961_v3 }
0x1bc1   :  { %6403 = vmatprep.mubr.msk.bf16.mxu1 %vm35_vm0, %v7093_v7 }
0x1c8b   :  { %v6389_v9 = vpop.f32.mrb[84].mxu1  ;;  %v6413_v19 = vpop.f32.mrb[92].mxu0 }
0x1c8c   :  { %v3805_v16 = vpop.f32.mrb[85].mxu1  ;;  %v3994_v18 = vpop.f32.mrb[93].mxu0  ;;  %v3814_v31 = vadd.f32 %v6936_v25, %v6389_v9  ;;  %v4003_v59 = vadd.f32 %v6937_v36, %v6413_v19  ;;  %v6939_v9 = vld [vmem:[%s8402_s2 + $0x190] sm:$0xff]   ;;  %v6940_v19 = vld [vmem:[%s8402_s2 + $0x198] sm:$0xff]  }
0x1c8d   :  { %v6390_v24 = vpop.f32.mrb[86].mxu1  ;;  %v6414_v40 = vpop.f32.mrb[94].mxu0  ;;  %v3806_v52 = vadd.f32 %v6936_v25, %v3805_v16  ;;  %v3995_v7 = vadd.f32 %v6937_v36, %v3994_v18  ;;  %v6941_v18 = vld [vmem:[%s8404_s6 + $0x78] sm:$0xff] }
0x1c8e   :  { %v3808_v43 = vpop.f32.mrb[87].mxu1  ;;  %v3997_v33 = vpop.f32.mrb[95].mxu0  ;;  %v3868_v49 = vpack.c.bf16 %v3814_v31, %v3814_v31  ;;  %v4057_v53 = vpack.c.bf16 %v4003_v59, %v4003_v59 }
0x1c8f   :  { %v3809_v38 = vadd.f32 %v6936_v25, %v3808_v43  ;;  %v3998_v41 = vadd.f32 %v6937_v36, %v3997_v33  ;;  %v6942_v36 = vld [vmem:[%s8404_s6 + $0x88] sm:$0x3] }
0x1c90   :  { %v3873_v63 = vsel %vm35_vm0, %v3868_v49, 0  ;;  %v4062_v5 = vsel %vm35_vm0, %v4057_v53, 0 }
0x1c91   :  { %v3867_v39 = vpack.c.bf16 %v3809_v38, %v3806_v52  ;;  %v4056_v28 = vpack.c.bf16 %v3998_v41, %v3995_v7  ;;  %v6944_v52 = vld [vmem:[%s8404_s6 + $0x60] sm:$0xff]  ;;  %v6945_v41 = vld [vmem:[%s8404_s6 + $0x68] sm:$0xff] }
0x1c93   :  { %v7989_v13 = vpop.f32.mrb[88].mxu1  ;;  %6623 = vmatprep.subr.msk.bf16.mxu1 %vm35_vm0, %v3867_v39  ;;  %6625 = vmatprep.subr.msk.bf16.mxu0 %vm35_vm0, %v4056_v28  ;;  %v3870_v58 = vsel %vm35_vm0, %v3867_v39, 0  ;;  %v4059_v1 = vsel %vm35_vm0, %v4056_v28, 0 }
0x1c94   :  { %v3853_v8 = vpop.f32.mrb[89].mxu1  ;;  %6400 = vmatpush3.bf16.xpose.msra.mxu1 %v3870_v58  ;;  %6424 = vmatpush3.bf16.xpose.msra.mxu0 %v4059_v1  ;;  %v6946_v1 = vld [vmem:[%s8404_s6 + $0x70] sm:$0x3] }
0x1c95   :  { %v6398_v57 = vpop.f32.mrb[90].mxu1  ;;  %6624 = vmatprep.subr.msk.bf16.mxu1 %vm35_vm0, %v3868_v49  ;;  %6626 = vmatprep.subr.msk.bf16.mxu0 %vm35_vm0, %v4057_v53  ;;  %v3854_v20 = vadd.f32 %v8000_v27, %v3853_v8 }
0x1c96   :  { %v3856_v0 = vpop.f32.mrb[91].mxu1 }
0x1c97   :  { %v3857_v2 = vadd.f32 %v8000_v27, %v3856_v0 }
0x1c99   :  { %v8004_v6 = vpack.c.bf16 %v3857_v2, %v3854_v20 }
0x1c9c   :  { %6402 = vmatpush3.bf16.xpose.msra.mxu1 %v3873_v63  ;;  %6426 = vmatpush3.bf16.xpose.msra.mxu0 %v4062_v5  ;;  %v6947_v5 = vld [vmem:[%s8403_s4 + $0x21] ss:$0 sm:$0xff] }
0x1c9d   :  { %6415 = vmatprep.subr.bf16.mxu1 %v6939_v9  ;;  %6447 = vmatprep.subr.bf16.mxu0 %v7655_v56 }
0x1ca3   :  { %6404 = vmatmul.mubr.msk.bf16.vlgmr.msra.gmra.mrb[92].mxu1 %vm35_vm0, %v7122_v42  ;;  %6428 = vmatmul.mubr.msk.bf16.vlgmr.msra.gmra.mrb[96].mxu0 %vm35_vm0, %v7135_v47 }
0x1ca4   :  { %6416 = vmatpush3.bf16.msra.mxu1 %v6939_v9  ;;  %6419 = vmatprep.mubr.msk.bf16.mxu1 %vm35_vm0, %v7959_v29 }
0x1ca5   :  { %6448 = vmatpush3.bf16.msra.mxu0 %v7655_v56  ;;  %6451 = vmatprep.mubr.msk.bf16.mxu0 %vm35_vm0, %v7959_v29 }
0x1ca6   :  { %6417 = vmatprep.subr.bf16.mxu1 %v6940_v19  ;;  %6449 = vmatprep.subr.bf16.mxu0 %v7663_v4 }
0x1ca8   :  { %6418 = vmatpush3.bf16.msra.mxu1 %v6940_v19 }
0x1ca9   :  { %6450 = vmatpush3.bf16.msra.mxu0 %v7663_v4 }
0x1cab   :  { %6420 = vmatmul.mubr.msk.bf16.vlgmr.msra.gmra.mrb[96].mxu1 %vm35_vm0, %v7961_v3 }
0x1cac   :  { %6452 = vmatmul.mubr.msk.bf16.vlgmr.msra.gmra.mrb[100].mxu0 %vm35_vm0, %v7961_v3 }
0x1cad   :  { %6467 = vmatprep.mubr.msk.bf16.mxu0 %vm35_vm0, %v7198_v37  ;;  %v6943_v37 = vld [vmem:[%s8404_s6 + $0x80] sm:$0xff] }
0x1d76   :  { %v6405_v42 = vpop.f32.mrb[92].mxu1  ;;  %v6429_v47 = vpop.f32.mrb[96].mxu0 }
0x1d77   :  { %v3909_v56 = vpop.f32.mrb[93].mxu1  ;;  %v4098_v16 = vpop.f32.mrb[97].mxu0  ;;  %v8040_v59 = vadd.f32 %v6942_v36, %v6429_v47  ;;  %v8066_v8 = vadd.f32 %v6946_v1, %v6405_v42 }
0x1d78   :  { %v8035_v24 = vadd.f32 %v6941_v18, %v4098_v16  ;;  %v6406_v4 = vpop.f32.mrb[94].mxu1  ;;  %v6430_v40 = vpop.f32.mrb[98].mxu0  ;;  %v8052_v7 = vadd.f32 %v6944_v52, %v3909_v56 }
0x1d79   :  { %v3912_v25 = vpop.f32.mrb[95].mxu1  ;;  %v4101_v31 = vpop.f32.mrb[99].mxu0  ;;  %v4118_v49 = vsel %vm380_vm3, %v8040_v59, -inf }
0x1d7a   :  { %v8045_v43 = vadd.f32 %v6943_v37, %v4101_v31  ;;  %v4112_v33 = vsel %vm373_vm2, %v8035_v24, -inf  ;;  %v8059_v39 = vadd.f32 %v6945_v41, %v3912_v25  ;;  %v3923_v20 = vsel %vm373_vm2, %v8052_v7, -inf }
0x1d7b   :  { %4113 = vmax.xlane.f32.xlu0 %v4112_v33  ;;  %v3929_v25 = vsel %vm380_vm3, %v8066_v8, -inf }
0x1d7c   :  { %v4115_v38 = vsel %vm373_vm2, %v8045_v43, -inf  ;;  %v3926_v42 = vsel %vm373_vm2, %v8059_v39, -inf }
0x1d7d   :  { %4116 = vmax.xlane.f32.xlu1 %v4115_v38 }
0x1d7e   :  { %v6421_v28 = vpop.f32.mrb[96].mxu1 }
0x1d7f   :  { %v6453_v53 = vpop.f32.mrb[100].mxu0  ;;  %4119 = vmax.xlane.f32.xlu0 %v4118_v49  ;;  %v4042_v58 = vpop.f32.mrb[97].mxu1  ;;  %v4051_v9 = vadd.f32 %v6947_v5, %v6421_v28 }
0x1d80   :  { %v4297_v57 = vpop.f32.mrb[101].mxu0  ;;  %v6422_v0 = vpop.f32.mrb[98].mxu1  ;;  %v4043_v19 = vadd.f32 %v6947_v5, %v4042_v58  ;;  %v4306_v16 = vadd.f32 %v6453_v53, %v7686_v23 }
0x1d81   :  { %v6454_v2 = vpop.f32.mrb[102].mxu0  ;;  %v4045_v63 = vpop.f32.mrb[99].mxu1  ;;  %3924 = vmax.xlane.f32.xlu1 %v3923_v20  ;;  %v4298_v18 = vadd.f32 %v7686_v23, %v4297_v57  ;;  %v4148_v36 = vpack.c.bf16 %v4051_v9, %v4051_v9 }
0x1d82   :  { %v4046_v47 = vadd.f32 %v6947_v5, %v4045_v63  ;;  %v4300_v56 = vpop.f32.mrb[103].mxu0  ;;  %v4360_v37 = vpack.c.bf16 %v4306_v16, %v4306_v16 }
0x1d83   :  { %v4301_v4 = vadd.f32 %v7686_v23, %v4300_v56  ;;  %3927 = vmax.xlane.f32.xlu0 %v3926_v42  ;;  %v4156_v23 = vsel %vm730_vm4, %v4148_v36, 0 }
0x1d84   :  { %v4147_v40 = vpack.c.bf16 %v4046_v47, %v4043_v19  ;;  %v4365_v52 = vsel %vm35_vm0, %v4360_v37, 0 }
0x1d85   :  { %v4359_v31 = vpack.c.bf16 %v4301_v4, %v4298_v18  ;;  %3930 = vmax.xlane.f32.xlu1 %v3929_v25 }
0x1d86   :  { %6431 = vmatprep.subr.bf16.mxu1 %v4147_v40 }
0x1d87   :  { %6629 = vmatprep.subr.msk.bf16.mxu0 %vm35_vm0, %v4359_v31  ;;  %6432 = vmatpush3.bf16.msra.mxu1 %v4147_v40  ;;  %v4362_v33 = vsel %vm35_vm0, %v4359_v31, 0  ;;  %v6948_v31 = vld [vmem:[%s8404_s6 + $0x90] sm:$0xff] }
0x1d88   :  { %6464 = vmatpush3.bf16.xpose.msra.mxu0 %v4362_v33  ;;  %6627 = vmatprep.subr.msk.bf16.mxu1 %vm730_vm4, %v4148_v36 }
0x1d89   :  { %6630 = vmatprep.subr.msk.bf16.mxu0 %vm35_vm0, %v4360_v37 }
0x1d8b   :  { %6434 = vmatpush3.bf16.msra.mxu1 %v4156_v23  ;;  %v6949_v23 = vld [vmem:[%s8404_s6 + $0xa0] sm:$0x3] }
0x1d8c   :  { %6439 = vmatprep.subr.bf16.mxu1 %v8004_v6 }
0x1d90   :  { %6466 = vmatpush3.bf16.xpose.msra.mxu0 %v4365_v52 }
0x1d91   :  { %6487 = vmatprep.subr.bf16.mxu0 %v7743_v10 }
0x1d97   :  { %6468 = vmatmul.mubr.msk.bf16.vlgmr.msra.gmra.mrb[104].mxu0 %vm35_vm0, %v7253_v17 }
0x1d98   :  { %6488 = vmatpush3.bf16.msra.mxu0 %v7743_v10  ;;  %6491 = vmatprep.mubr.msk.bf16.mxu0 %vm35_vm0, %v7959_v29 }
0x1d99   :  { %6489 = vmatprep.subr.bf16.mxu0 %v7749_v14 }
0x1d9c   :  { %6490 = vmatpush3.bf16.msra.mxu0 %v7749_v14 }
0x1d9f   :  { %6492 = vmatmul.mubr.msk.bf16.vlgmr.msra.gmra.mrb[108].mxu0 %vm35_vm0, %v7961_v3 }
0x1e08   :  { %v4114_v38 = vpop.xlane.xlu0 %4113 }
0x1e09   :  { %v4121_v41 = vsub.f32 %v8035_v24, %v4114_v38  ;;  %v6950_v38 = vld [vmem:[%s8404_s6 + $0x98] sm:$0xff] }
0x1e0a   :  { %v4117_v28 = vpop.xlane.xlu1 %4116 }
0x1e0b   :  { %v4124_v49 = vmul.f32 1.442695, %v4121_v41  ;;  %v4122_v53 = vsub.f32 %v8045_v43, %v4117_v28 }
0x1e0c   :  { %v4120_v17 = vpop.xlane.xlu0 %4119 }
0x1e0d   :  { %6856 = vpow2.f32 %v4124_v49  ;;  %v4126_v10 = vmul.f32 1.442695, %v4122_v53  ;;  %v4123_v58 = vsub.f32 %v8040_v59, %v4120_v17 }
0x1e0e   :  { %v3925_v1 = vpop.xlane.xlu1 %3924 }
0x1e0f   :  { %6858 = vpow2.f32 %v4126_v10  ;;  %v4128_v57 = vmul.f32 1.442695, %v4123_v58  ;;  %v3932_v14 = vsub.f32 %v8052_v7, %v3925_v1 }
0x1e10   :  { %v3928_v0 = vpop.xlane.xlu0 %3927 }
0x1e11   :  { %6860 = vpow2.f32 %v4128_v57  ;;  %v3935_v20 = vmul.f32 1.442695, %v3932_v14  ;;  %v3933_v2 = vsub.f32 %v8059_v39, %v3928_v0 }
0x1e12   :  { %v3931_v24 = vpop.xlane.xlu1 %3930 }
0x1e13   :  { %6862 = vpow2.f32 %v3935_v20  ;;  %v3937_v63 = vmul.f32 1.442695, %v3933_v2  ;;  %v3934_v43 = vsub.f32 %v8066_v8, %v3931_v24 }
0x1e15   :  { %6864 = vpow2.f32 %v3937_v63  ;;  %v3939_v5 = vmul.f32 1.442695, %v3934_v43 }
0x1e17   :  { %v8103_v9 = vpop.eup %6856  ;;  %6866 = vpow2.f32 %v3939_v5 }
0x1e18   :  { %v4130_v59 = vsel %vm373_vm2, %v8103_v9, 0.0 }
0x1e19   :  { %v6859_v19 = vpop.eup %6858  ;;  %4131 = vadd.xlane.f32.xlu0 %v4130_v59 }
0x1e1a   :  { %v4133_v7 = vsel %vm373_vm2, %v6859_v19, 0.0 }
0x1e1b   :  { %v6861_v47 = vpop.eup %6860  ;;  %4134 = vadd.xlane.f32.xlu1 %v4133_v7 }
0x1e1c   :  { %v4136_v39 = vsel %vm380_vm3, %v6861_v47, 0.0 }
0x1e1d   :  { %v8109_v56 = vpop.eup %6862  ;;  %4137 = vadd.xlane.f32.xlu0 %v4136_v39 }
0x1e1e   :  { %v3941_v8 = vsel %vm373_vm2, %v8109_v56, 0.0 }
0x1e1f   :  { %v8113_v42 = vpop.eup %6864  ;;  %3942 = vadd.xlane.f32.xlu1 %v3941_v8 }
0x1e20   :  { %v3944_v16 = vsel %vm373_vm2, %v8113_v42, 0.0 }
0x1e21   :  { %v8117_v18 = vpop.eup %6866  ;;  %3945 = vadd.xlane.f32.xlu0 %v3944_v16 }
0x1e22   :  { %v3947_v4 = vsel %vm380_vm3, %v8117_v18, 0.0 }
0x1e23   :  { %3948 = vadd.xlane.f32.xlu1 %v3947_v4 }
0x1e6a   :  { %v6469_v40 = vpop.f32.mrb[104].mxu0 }
0x1e6b   :  { %v4401_v25 = vpop.f32.mrb[105].mxu0  ;;  %v8129_v52 = vadd.f32 %v6949_v23, %v6469_v40 }
0x1e6c   :  { %v8124_v36 = vadd.f32 %v6948_v31, %v4401_v25  ;;  %v6470_v37 = vpop.f32.mrb[106].mxu0 }
0x1e6d   :  { %v4404_v33 = vpop.f32.mrb[107].mxu0  ;;  %v4421_v17 = vsel %vm380_vm3, %v8129_v52, -inf }
0x1e6e   :  { %v8134_v41 = vadd.f32 %v6950_v38, %v4404_v33  ;;  %v4415_v28 = vsel %vm373_vm2, %v8124_v36, -inf }
0x1e6f   :  { %4416 = vmax.xlane.f32.xlu0 %v4415_v28 }
0x1e70   :  { %v4418_v49 = vsel %vm373_vm2, %v8134_v41, -inf }
0x1e71   :  { %4419 = vmax.xlane.f32.xlu1 %v4418_v49 }
0x1e72   :  { %v6493_v53 = vpop.f32.mrb[108].mxu0 }
0x1e73   :  { %v4594_v10 = vpop.f32.mrb[109].mxu0  ;;  %4422 = vmax.xlane.f32.xlu0 %v4421_v17  ;;  %v4603_v57 = vadd.f32 %v6493_v53, %v7776_v51 }
0x1e74   :  { %v6494_v58 = vpop.f32.mrb[110].mxu0  ;;  %v4595_v14 = vadd.f32 %v7776_v51, %v4594_v10 }
0x1e75   :  { %v4597_v1 = vpop.f32.mrb[111].mxu0  ;;  %v4700_v2 = vpack.c.bf16 %v4603_v57, %v4603_v57 }
0x1e76   :  { %v4598_v0 = vadd.f32 %v7776_v51, %v4597_v1 }
0x1e77   :  { %v4708_v24 = vsel %vm730_vm4, %v4700_v2, 0 }
0x1e78   :  { %v4699_v20 = vpack.c.bf16 %v4598_v0, %v4595_v14 }
0x1e7a   :  { %6503 = vmatprep.subr.bf16.mxu0 %v4699_v20 }
0x1e7b   :  { %6504 = vmatpush3.bf16.msra.mxu0 %v4699_v20 }
0x1e7c   :  { %6634 = vmatprep.subr.msk.bf16.mxu0 %vm730_vm4, %v4700_v2 }
0x1e7f   :  { %6506 = vmatpush3.bf16.msra.mxu0 %v4708_v24 }
0x1e80   :  { %6511 = vmatprep.subr.bf16.mxu0 %v7837_v22  ;;  %v3862_v22 = vadd.f32 %v8000_v27, %v7989_v13 }
0x1e82   :  { %v3959_v38 = vpack.c.bf16 %v3862_v22, %v3862_v22 }
0x1e84   :  { %v4213_v27 = vsel %vm730_vm4, %v3959_v38, 0 }
0x1ea6   :  { %v4132_v63 = vpop.xlane.xlu0 %4131 }
0x1ea7   :  { %6868 = vrcp.f32 %v4132_v63 }
0x1ea8   :  { %v4135_v43 = vpop.xlane.xlu1 %4134 }
0x1ea9   :  { %6870 = vrcp.f32 %v4135_v43 }
0x1eaa   :  { %v4138_v5 = vpop.xlane.xlu0 %4137 }
0x1eab   :  { %6872 = vrcp.f32 %v4138_v5 }
0x1eac   :  { %v3943_v59 = vpop.xlane.xlu1 %3942 }
0x1ead   :  { %6874 = vrcp.f32 %v3943_v59 }
0x1eae   :  { %v3946_v51 = vpop.xlane.xlu0 %3945 }
0x1eaf   :  { %6876 = vrcp.f32 %v3946_v51 }
0x1eb0   :  { %v3949_v7 = vpop.xlane.xlu1 %3948 }
0x1eb1   :  { %v6869_v39 = vpop.eup %6868  ;;  %6878 = vrcp.f32 %v3949_v7 }
0x1eb2   :  { %v4142_v16 = vmul.f32 %v6869_v39, %v8103_v9 }
0x1eb3   :  { %v6871_v8 = vpop.eup %6870 }
0x1eb4   :  { %v4143_v4 = vmul.f32 %v6871_v8, %v6859_v19 }
0x1eb5   :  { %v6873_v40 = vpop.eup %6872 }
0x1eb6   :  { %v4144_v25 = vmul.f32 %v6873_v40, %v6861_v47  ;;  %v4145_v31 = vpack.c.bf16 %v4143_v4, %v4142_v16 }
0x1eb7   :  { %v6875_v37 = vpop.eup %6874 }
0x1eb8   :  { %6435 = vmatprep.mubr.msk.bf16.mxu1 %vm373_vm2, %v4145_v31  ;;  %v4146_v33 = vpack.c.bf16 %v4144_v25, %v4144_v25  ;;  %v3953_v28 = vmul.f32 %v6875_v37, %v8109_v56  ;;  %v6951_v56 = vld [vmem:[%s8402_s2 + $0x1a0] sm:$0xff]  }
0x1eb9   :  { %v6877_v23 = vpop.eup %6876 }
0x1eba   :  { %6436 = vmatmul.mubr.msk.bf16.vlgmr.msra.gmra.mrb[100].mxu1 %vm373_vm2, %v4146_v33  ;;  %v3954_v49 = vmul.f32 %v6877_v23, %v8113_v42 }
0x1ebb   :  { %v6879_v9 = vpop.eup %6878  ;;  %6440 = vmatpush3.bf16.msra.mxu1 %v8004_v6  ;;  %v6952_v6 = vld [vmem:[%s8402_s2 + $0x1a8] sm:$0xff]  }
0x1ebc   :  { %v3955_v19 = vmul.f32 %v6879_v9, %v8117_v18  ;;  %6628 = vmatprep.subr.msk.bf16.mxu1 %vm730_vm4, %v3959_v38  ;;  %v3956_v13 = vpack.c.bf16 %v3954_v49, %v3953_v28  ;;  %v6953_v38 = vld [vmem:[%s8403_s4 + $0x22] ss:$0 sm:$0xff] }
0x1ebe   :  { %6443 = vmatprep.mubr.msk.bf16.mxu1 %vm373_vm2, %v3956_v13  ;;  %v3957_v47 = vpack.c.bf16 %v3955_v19, %v3955_v19 }
0x1ebf   :  { %6442 = vmatpush3.bf16.msra.mxu1 %v4213_v27 }
0x1ec0   :  { %6455 = vmatprep.subr.bf16.mxu1 %v6951_v56 }
0x1ec2   :  { %6444 = vmatmul.mubr.msk.bf16.vlgmr.msra.gmra.mrb[104].mxu1 %vm373_vm2, %v3957_v47 }
0x1ec3   :  { %6456 = vmatpush3.bf16.msra.mxu1 %v6951_v56  ;;  %6459 = vmatprep.mubr.msk.bf16.mxu1 %vm35_vm0, %v7959_v29 }
0x1ec4   :  { %6457 = vmatprep.subr.bf16.mxu1 %v6952_v6 }
0x1ec7   :  { %6458 = vmatpush3.bf16.msra.mxu1 %v6952_v6 }
0x1eca   :  { %6460 = vmatmul.mubr.msk.bf16.vlgmr.msra.gmra.mrb[108].mxu1 %vm35_vm0, %v7961_v3 }
0x1efc   :  { %v4417_v42 = vpop.xlane.xlu0 %4416 }
0x1efd   :  { %v4424_v18 = vsub.f32 %v8124_v36, %v4417_v42 }
0x1efe   :  { %v4420_v53 = vpop.xlane.xlu1 %4419 }
0x1eff   :  { %v4427_v17 = vmul.f32 1.442695, %v4424_v18  ;;  %v4425_v10 = vsub.f32 %v8134_v41, %v4420_v53 }
0x1f00   :  { %v4423_v58 = vpop.xlane.xlu0 %4422 }
0x1f01   :  { %6880 = vpow2.f32 %v4427_v17  ;;  %v4429_v1 = vmul.f32 1.442695, %v4425_v10  ;;  %v4426_v57 = vsub.f32 %v8129_v52, %v4423_v58  ;;  %v6954_v10 = vld [vmem:[%s8402_s2 + $0x170] sm:$0xff]  }
0x1f03   :  { %6882 = vpow2.f32 %v4429_v1  ;;  %v4431_v14 = vmul.f32 1.442695, %v4426_v57  ;;  %v6955_v1 = vld [vmem:[%s8402_s2 + $0x178] sm:$0xff]  }
0x1f05   :  { %6884 = vpow2.f32 %v4431_v14 }
0x1f0b   :  { %v6881_v0 = vpop.eup %6880 }
0x1f0c   :  { %v4433_v20 = vsel %vm373_vm2, %v6881_v0, 0.0 }
0x1f0d   :  { %v6883_v2 = vpop.eup %6882  ;;  %4434 = vadd.xlane.f32.xlu1 %v4433_v20 }
0x1f0e   :  { %v4436_v24 = vsel %vm373_vm2, %v6883_v2, 0.0 }
0x1f0f   :  { %v6885_v36 = vpop.eup %6884  ;;  %4437 = vadd.xlane.f32.xlu0 %v4436_v24 }
0x1f10   :  { %v4439_v63 = vsel %vm380_vm3, %v6885_v36, 0.0 }
0x1f11   :  { %4440 = vadd.xlane.f32.xlu1 %v4439_v63 }
0x1f8d   :  { %v6437_v41 = vpop.f32.mrb[100].mxu1 }
0x1f8e   :  { %v4192_v43 = vpop.f32.mrb[101].mxu1 }
0x1f8f   :  { %v6438_v5 = vpop.f32.mrb[102].mxu1 }
0x1f90   :  { %v4195_v59 = vpop.f32.mrb[103].mxu1 }
0x1f95   :  { %v6445_v52 = vpop.f32.mrb[104].mxu1 }
0x1f96   :  { %v4258_v51 = vadd.f32 %v6445_v52, %v6437_v41  ;;  %v4249_v7 = vpop.f32.mrb[105].mxu1 }
0x1f97   :  { %v4250_v39 = vadd.f32 %v4249_v7, %v4192_v43  ;;  %v6446_v8 = vpop.f32.mrb[106].mxu1 }
0x1f98   :  { %v4252_v16 = vpop.f32.mrb[107].mxu1 }
0x1f99   :  { %v4253_v4 = vadd.f32 %v4252_v16, %v4195_v59 }
0x1f9a   :  { %v4435_v40 = vpop.xlane.xlu1 %4434 }
0x1f9b   :  { %6886 = vrcp.f32 %v4435_v40 }
0x1f9c   :  { %v4438_v22 = vpop.xlane.xlu0 %4437 }
0x1f9d   :  { %6888 = vrcp.f32 %v4438_v22  ;;  %v6461_v25 = vpop.f32.mrb[108].mxu1 }
0x1f9e   :  { %v4441_v31 = vpop.xlane.xlu1 %4440  ;;  %v4345_v37 = vpop.f32.mrb[109].mxu1  ;;  %v4354_v28 = vadd.f32 %v6953_v38, %v6461_v25 }
0x1f9f   :  { %6890 = vrcp.f32 %v4441_v31  ;;  %v6462_v33 = vpop.f32.mrb[110].mxu1  ;;  %v4346_v49 = vadd.f32 %v6953_v38, %v4345_v37 }
0x1fa0   :  { %v4348_v23 = vpop.f32.mrb[111].mxu1  ;;  %v4451_v27 = vpack.c.bf16 %v4354_v28, %v4354_v28 }
0x1fa1   :  { %v4349_v9 = vadd.f32 %v6953_v38, %v4348_v23 }
0x1fa2   :  { %v4459_v18 = vsel %vm730_vm4, %v4451_v27, 0 }
0x1fa3   :  { %v4450_v19 = vpack.c.bf16 %v4349_v9, %v4346_v49 }
0x1fa5   :  { %v6887_v13 = vpop.eup %6886  ;;  %6471 = vmatprep.subr.bf16.mxu1 %v4450_v19 }
0x1fa6   :  { %6472 = vmatpush3.bf16.msra.mxu1 %v4450_v19  ;;  %v4445_v56 = vmul.f32 %v6887_v13, %v6881_v0 }
0x1fa7   :  { %v6889_v47 = vpop.eup %6888  ;;  %6631 = vmatprep.subr.msk.bf16.mxu1 %vm730_vm4, %v4451_v27 }
0x1fa8   :  { %v4446_v6 = vmul.f32 %v6889_v47, %v6883_v2 }
0x1fa9   :  { %v6891_v42 = vpop.eup %6890 }
0x1faa   :  { %v4447_v53 = vmul.f32 %v6891_v42, %v6885_v36  ;;  %6474 = vmatpush3.bf16.msra.mxu1 %v4459_v18  ;;  %v4448_v17 = vpack.c.bf16 %v4446_v6, %v4445_v56 }
0x1fab   :  { %6479 = vmatprep.subr.bf16.mxu1 %v6954_v10 }
0x1fac   :  { %6475 = vmatprep.mubr.msk.bf16.mxu1 %vm373_vm2, %v4448_v17  ;;  %v4449_v58 = vpack.c.bf16 %v4447_v53, %v4447_v53 }
0x1fae   :  { %6476 = vmatmul.mubr.msk.bf16.vlgmr.msra.gmra.mrb[112].mxu1 %vm373_vm2, %v4449_v58 }
0x1faf   :  { %6480 = vmatpush3.bf16.msra.mxu1 %v6954_v10  ;;  %6483 = vmatprep.mubr.msk.bf16.mxu1 %vm35_vm0, %v7959_v29 }
0x1fb0   :  { %6481 = vmatprep.subr.bf16.mxu1 %v6955_v1 }
0x1fb3   :  { %6482 = vmatpush3.bf16.msra.mxu1 %v6955_v1 }
0x1fb6   :  { %6484 = vmatmul.mubr.msk.bf16.vlgmr.msra.gmra.mrb[116].mxu1 %vm35_vm0, %v7961_v3  ;;  %v6956_v3 = vld [vmem:[%s8403_s4 + $0x1f] ss:$0 sm:$0xff] }
0x1fb7   :  { %6499 = vmatprep.mubr.msk.bf16.mxu1 %vm35_vm0, %v7320_v34 }
0x2081   :  { %v6477_v57 = vpop.f32.mrb[112].mxu1 }
0x2082   :  { %v8196_v14 = vadd.f32 %v6477_v57, %v4258_v51  ;;  %v4495_v0 = vpop.f32.mrb[113].mxu1 }
0x2083   :  { %v8198_v20 = vadd.f32 %v4495_v0, %v4250_v39  ;;  %v6478_v2 = vpop.f32.mrb[114].mxu1 }
0x2084   :  { %v4498_v29 = vpop.f32.mrb[115].mxu1 }
0x2085   :  { %v8200_v24 = vadd.f32 %v4498_v29, %v4253_v4  ;;  %v6960_v29 = vld [vmem:[%s8406_s3 + $0x10] sm:$0xff]  }
0x2089   :  { %v6485_v36 = vpop.f32.mrb[116].mxu1 }
0x208a   :  { %v4546_v63 = vpop.f32.mrb[117].mxu1  ;;  %v4555_v5 = vadd.f32 %v6956_v3, %v6485_v36  ;;  %v6961_v36 = vld [vmem:[%s8406_s3 + $0x18] sm:$0xff]  }
0x208b   :  { %v6486_v41 = vpop.f32.mrb[118].mxu1  ;;  %v4547_v34 = vadd.f32 %v6956_v3, %v4546_v63 }
0x208c   :  { %v4549_v43 = vpop.f32.mrb[119].mxu1  ;;  %v4609_v51 = vpack.c.bf16 %v4555_v5, %v4555_v5 }
0x208d   :  { %v4550_v59 = vadd.f32 %v6956_v3, %v4549_v43 }
0x208e   :  { %v4614_v39 = vsel %vm35_vm0, %v4609_v51, 0 }
0x208f   :  { %v4608_v52 = vpack.c.bf16 %v4550_v59, %v4547_v34 }
0x2091   :  { %6632 = vmatprep.subr.msk.bf16.mxu1 %vm35_vm0, %v4608_v52  ;;  %v4611_v7 = vsel %vm35_vm0, %v4608_v52, 0 }
0x2092   :  { %6496 = vmatpush3.bf16.xpose.msra.mxu1 %v4611_v7  ;;  %v6962_v7 = vld [vmem:[%s8403_s4 + $0x16] ss:$0 sm:$0xff] }
0x2093   :  { %6633 = vmatprep.subr.msk.bf16.mxu1 %vm35_vm0, %v4609_v51 }
0x209a   :  { %6498 = vmatpush3.bf16.xpose.msra.mxu1 %v4614_v39 }
0x209b   :  { %6519 = vmatprep.subr.bf16.mxu1 %v7867_v26 }
0x20a1   :  { %6500 = vmatmul.mubr.msk.bf16.vlgmr.msra.gmra.mrb[120].mxu1 %vm35_vm0, %v7322_v62 }
0x20a2   :  { %6520 = vmatpush3.bf16.msra.mxu1 %v7867_v26 }
0x20a3   :  { %6521 = vmatprep.subr.bf16.mxu1 %v7874_v61 }
0x20a6   :  { %6522 = vmatpush3.bf16.msra.mxu1 %v7874_v61  ;;  %v6957_v61 = vld [vmem:[%s8404_s6 + $0xa8] sm:$0xff] }
0x20a7   :  { %6523 = vmatprep.subr.bf16.mxu1 %v7881_v21 }
0x20aa   :  { %6524 = vmatpush3.bf16.msra.mxu1 %v7881_v21 }
0x20ab   :  { %6525 = vmatprep.subr.bf16.mxu1 %v7886_v30 }
0x20ae   :  { %6526 = vmatpush3.bf16.msra.mxu1 %v7886_v30 }
0x20af   :  { %6527 = vmatprep.subr.bf16.mxu1 %v7894_v50 }
0x20b2   :  { %6528 = vmatpush3.bf16.msra.mxu1 %v7894_v50 }
0x20b3   :  { %6529 = vmatprep.subr.bf16.mxu1 %v7901_v45 }
0x20b6   :  { %6530 = vmatpush3.bf16.msra.mxu1 %v7901_v45  ;;  %v6958_v45 = vld [vmem:[%s8404_s6 + $0xb8] sm:$0x3] }
0x20b7   :  { %6531 = vmatprep.subr.bf16.mxu1 %v7908_v32 }
0x20ba   :  { %6532 = vmatpush3.bf16.msra.mxu1 %v7908_v32  ;;  %v6959_v32 = vld [vmem:[%s8404_s6 + $0xb0] sm:$0xff] }
0x20bb   :  { %6533 = vmatprep.subr.bf16.mxu1 %v7915_v35 }
0x20be   :  { %6534 = vmatpush3.bf16.msra.mxu1 %v7915_v35 }
0x2174   :  { %v6501_v62 = vpop.f32.mrb[120].mxu1 }
0x2175   :  { %v4650_v26 = vpop.f32.mrb[121].mxu1  ;;  %v4659_v8 = vadd.f32 %v6958_v45, %v6501_v62 }
0x2176   :  { %v4651_v21 = vadd.f32 %v6957_v61, %v4650_v26  ;;  %v6502_v30 = vpop.f32.mrb[122].mxu1 }
0x2177   :  { %v4653_v50 = vpop.f32.mrb[123].mxu1  ;;  %v4670_v40 = vsel %vm380_vm3, %v4659_v8, -inf }
0x2178   :  { %v4654_v16 = vadd.f32 %v6959_v32, %v4653_v50  ;;  %v4664_v35 = vsel %vm373_vm2, %v4651_v21, -inf }
0x2179   :  { %4665 = vmax.xlane.f32.xlu0 %v4664_v35 }
0x217a   :  { %v4667_v4 = vsel %vm373_vm2, %v4654_v16, -inf }
0x217b   :  { %4668 = vmax.xlane.f32.xlu1 %v4667_v4 }
0x217d   :  { %4671 = vmax.xlane.f32.xlu0 %v4670_v40 }
0x2206   :  { %v4666_v22 = vpop.xlane.xlu0 %4665 }
0x2207   :  { %v4673_v25 = vsub.f32 %v4651_v21, %v4666_v22 }
0x2208   :  { %v4669_v31 = vpop.xlane.xlu1 %4668 }
0x2209   :  { %v4676_v37 = vmul.f32 1.442695, %v4673_v25  ;;  %v4674_v33 = vsub.f32 %v4654_v16, %v4669_v31 }
0x220a   :  { %v4672_v23 = vpop.xlane.xlu0 %4671 }
0x220b   :  { %6892 = vpow2.f32 %v4676_v37  ;;  %v4678_v38 = vmul.f32 1.442695, %v4674_v33  ;;  %v4675_v28 = vsub.f32 %v4659_v8, %v4672_v23 }
0x220d   :  { %6894 = vpow2.f32 %v4678_v38  ;;  %v4680_v49 = vmul.f32 1.442695, %v4675_v28 }
0x220f   :  { %6896 = vpow2.f32 %v4680_v49 }
0x2215   :  { %v6893_v9 = vpop.eup %6892 }
0x2216   :  { %v4682_v19 = vsel %vm373_vm2, %v6893_v9, 0.0 }
0x2217   :  { %v6895_v13 = vpop.eup %6894  ;;  %4683 = vadd.xlane.f32.xlu1 %v4682_v19 }
0x2218   :  { %v4685_v27 = vsel %vm373_vm2, %v6895_v13, 0.0 }
0x2219   :  { %v6897_v47 = vpop.eup %6896  ;;  %4686 = vadd.xlane.f32.xlu0 %v4685_v27 }
0x221a   :  { %v4688_v56 = vsel %vm380_vm3, %v6897_v47, 0.0 }
0x221b   :  { %4689 = vadd.xlane.f32.xlu1 %v4688_v56 }
0x22a4   :  { %v4684_v6 = vpop.xlane.xlu1 %4683 }
0x22a5   :  { %6898 = vrcp.f32 %v4684_v6 }
0x22a6   :  { %v4687_v42 = vpop.xlane.xlu0 %4686 }
0x22a7   :  { %6900 = vrcp.f32 %v4687_v42 }
0x22a8   :  { %v4690_v18 = vpop.xlane.xlu1 %4689 }
0x22a9   :  { %6902 = vrcp.f32 %v4690_v18 }
0x22af   :  { %v6899_v53 = vpop.eup %6898 }
0x22b0   :  { %v4694_v10 = vmul.f32 %v6899_v53, %v6893_v9  ;;  %v6963_v53 = vld [vmem:[%s8403_s4 + $0x14] ss:$0 sm:$0xff] }
0x22b1   :  { %v6901_v17 = vpop.eup %6900 }
0x22b2   :  { %v4695_v58 = vmul.f32 %v6901_v17, %v6895_v13 }
0x22b3   :  { %v6903_v1 = vpop.eup %6902 }
0x22b4   :  { %v4696_v57 = vmul.f32 %v6903_v1, %v6897_v47  ;;  %v4697_v0 = vpack.c.bf16 %v4695_v58, %v4694_v10 }
0x22b6   :  { %6507 = vmatprep.mubr.msk.bf16.mxu0 %vm373_vm2, %v4697_v0  ;;  %v4698_v2 = vpack.c.bf16 %v4696_v57, %v4696_v57  ;;  %v6964_v0 = vld [vmem:[%s8403_s4 + $0x15] ss:$0 sm:$0xff] }
0x22b8   :  { %6508 = vmatmul.mubr.msk.bf16.vlgmr.msra.gmra.mrb[112].mxu0 %vm373_vm2, %v4698_v2 }
0x22b9   :  { %6512 = vmatpush3.bf16.msra.mxu0 %v6960_v29 }
0x22ba   :  { %6513 = vmatprep.subr.bf16.mxu0 %v6961_v36 }
0x22bd   :  { %6514 = vmatpush3.bf16.msra.mxu0 %v6961_v36 }
0x238b   :  { %v6509_v63 = vpop.f32.mrb[112].mxu0 }
0x238c   :  { %v4760_v41 = vadd.f32 %v6509_v63, %v8196_v14  ;;  %v4744_v43 = vpop.f32.mrb[113].mxu0 }
0x238d   :  { %v4758_v3 = vadd.f32 %v4744_v43, %v8198_v20  ;;  %v6510_v5 = vpop.f32.mrb[114].mxu0 }
0x238e   :  { %v4747_v34 = vpop.f32.mrb[115].mxu0  ;;  %v4763_v59 = vadd.f32 %v4760_v41, %v7937_v54 }
0x238f   :  { %v4761_v52 = vadd.f32 %v4758_v3, %v7934_v60  ;;  %v4759_v51 = vadd.f32 %v4747_v34, %v8200_v24  ;;  %v6965_v3 = vld [vmem:[%s8407_s5 + $0x1] ss:$0 sm:$0xff] }
0x2390   :  { %v8261_v14 = vadd.f32 %v6962_v7, %v4763_v59 }
0x2391   :  { %v8258_v39 = vadd.f32 %v6962_v7, %v4761_v52  ;;  %v4762_v62 = vadd.f32 %v4759_v51, %v7939_v55 }
0x2392   :  { %v4773_v24 = vsel %vm42_vm1, %v8261_v14, 0.0 }
0x2393   :  { %v8263_v26 = vadd.f32 %v6962_v7, %v4762_v62  ;;  %v4767_v20 = vsel %vm35_vm0, %v8258_v39, 0.0 }
0x2394   :  { %4768 = vadd.xlane.f32.xlu0 %v4767_v20 }
0x2395   :  { %v4770_v61 = vsel %vm35_vm0, %v8263_v26, 0.0 }
0x2396   :  { %4771 = vadd.xlane.f32.xlu1 %v4770_v61 }
0x2398   :  { %4774 = vadd.xlane.f32.xlu0 %v4773_v24 }
0x2421   :  { %v4769_v21 = vpop.xlane.xlu0 %4768 }
0x2422   :  { %v4776_v30 = vmul.f32 0.03125, %v4769_v21 }
0x2423   :  { %v4772_v50 = vpop.xlane.xlu1 %4771 }
0x2424   :  { %v4779_v45 = vsub.f32 %v8258_v39, %v4776_v30  ;;  %v4777_v8 = vmul.f32 0.03125, %v4772_v50 }
0x2425   :  { %v4775_v32 = vpop.xlane.xlu0 %4774 }
0x2426   :  { %v4780_v16 = vsub.f32 %v8263_v26, %v4777_v8  ;;  %v4778_v35 = vmul.f32 0.03125, %v4775_v32  ;;  %v4782_v4 = vmul.f32 %v4779_v45, %v4779_v45 }
0x2428   :  { %v4781_v40 = vsub.f32 %v8261_v14, %v4778_v35  ;;  %v4785_v22 = vsel %vm35_vm0, %v4782_v4, 0.0  ;;  %v4783_v25 = vmul.f32 %v4780_v16, %v4780_v16 }
0x2429   :  { %4786 = vadd.xlane.f32.xlu1 %v4785_v22 }
0x242a   :  { %v4788_v31 = vsel %vm35_vm0, %v4783_v25, 0.0  ;;  %v4784_v37 = vmul.f32 %v4781_v40, %v4781_v40 }
0x242b   :  { %4789 = vadd.xlane.f32.xlu0 %v4788_v31 }
0x242c   :  { %v4791_v33 = vsel %vm42_vm1, %v4784_v37, 0.0 }
0x242d   :  { %4792 = vadd.xlane.f32.xlu1 %v4791_v33 }
0x24b6   :  { %v4787_v23 = vpop.xlane.xlu1 %4786 }
0x24b7   :  { %v4794_v38 = vmul.f32 0.03125, %v4787_v23 }
0x24b8   :  { %v4790_v28 = vpop.xlane.xlu0 %4789 }
0x24b9   :  { %v4797_v49 = vadd.f32 1e-05, %v4794_v38  ;;  %v4795_v9 = vmul.f32 0.03125, %v4790_v28 }
0x24ba   :  { %v4793_v19 = vpop.xlane.xlu1 %4792 }
0x24bb   :  { %6904 = vrsqrt.f32 %v4797_v49  ;;  %v4798_v13 = vadd.f32 1e-05, %v4795_v9  ;;  %v4796_v27 = vmul.f32 0.03125, %v4793_v19 }
0x24bd   :  { %6906 = vrsqrt.f32 %v4798_v13  ;;  %v4799_v47 = vadd.f32 1e-05, %v4796_v27 }
0x24bf   :  { %6908 = vrsqrt.f32 %v4799_v47 }
0x24c5   :  { %v6905_v56 = vpop.eup %6904 }
0x24c6   :  { %v4803_v6 = vmul.f32 %v6905_v56, %v4779_v45 }
0x24c7   :  { %v6907_v42 = vpop.eup %6906 }
0x24c8   :  { %v4804_v18 = vmul.f32 %v6907_v42, %v4780_v16  ;;  %v4806_v17 = vmul.f32 %v6963_v53, %v4803_v6  ;;  %v6706_v6 = vld [vmem:[%s8406_s3 + $0x30] sm:$0xff]   ;;  %v6707_v42 = vld [vmem:[%s8406_s3 + $0x38] sm:$0xff]  }
0x24c9   :  { %v6909_v10 = vpop.eup %6908  ;;  %6539 = vmatprep.subr.bf16.mxu0 %v6706_v6 }
0x24ca   :  { %v4805_v58 = vmul.f32 %v6909_v10, %v4781_v40  ;;  %v4807_v1 = vmul.f32 %v6963_v53, %v4804_v18  ;;  %v4809_v2 = vadd.f32 %v6964_v0, %v4806_v17  ;;  %v6708_v18 = vld [vmem:[%s8406_s3 + $0x20] sm:$0xff]  }
0x24cc   :  { %v4808_v57 = vmul.f32 %v6963_v53, %v4805_v58  ;;  %v4810_v29 = vadd.f32 %v6964_v0, %v4807_v1  ;;  %v1868_v58 = vadd.f32 %v7560_v15, %v7369_v48 }
0x24ce   :  { %v4812_v36 = vpack.c.bf16 %v4810_v29, %v4809_v2  ;;  %v4811_v63 = vadd.f32 %v6964_v0, %v4808_v57  ;;  %v1867_v2 = vadd.f32 %v7558_v12, %v7362_v44  ;;  %v1869_v44 = vadd.f32 %v7556_v11, %v7367_v46  ;;  %v6710_v11 = vld [vmem:[%s8402_s2 + $0x200] sm:$0xff]  }
0x24d0   :  { %6515 = vmatprep.mubr.msk.bf16.mxu0 %vm35_vm0, %v4812_v36  ;;  %v4813_v41 = vpack.c.bf16 %v4811_v63, %v4811_v63  ;;  %v5548_v36 = vld [vmem:[%s8403_s4 + $0x5] ss:$0 sm:$0xff] }
0x24d2   :  { %6516 = vmatmul.mubr.msk.bf16.vlgmr.msra.gmra.mrb[116].mxu0 %vm35_vm0, %v4813_v41  ;;  %v8310_v41 = vadd.f32 %v5548_v36, %v1868_v58 }
0x24d3   :  { %6540 = vmatpush3.bf16.msra.mxu0 %v6706_v6 }
0x24d4   :  { %6541 = vmatprep.subr.bf16.mxu0 %v6707_v42 }
0x24d7   :  { %6542 = vmatpush3.bf16.msra.mxu0 %v6707_v42 }
0x24d8   :  { %6547 = vmatprep.subr.bf16.mxu0 %v6708_v18 }
0x25a5   :  { %v6517_v43 = vpop.f32.mrb[116].mxu0 }
0x25a6   :  { %v4863_v5 = vadd.f32 %v6965_v3, %v6517_v43  ;;  %v4854_v34 = vpop.f32.mrb[117].mxu0 }
0x25a7   :  { %v4855_v59 = vadd.f32 %v6965_v3, %v4854_v34  ;;  %v6518_v52 = vpop.f32.mrb[118].mxu0  ;;  %v6711_v34 = vld [vmem:[%s8402_s2 + $0x208] sm:$0xff]  }
0x25a8   :  { %v4873_v51 = vmul.f32 0.044715, %v4863_v5  ;;  %v4857_v7 = vpop.f32.mrb[119].mxu0  ;;  %v4870_v38 = vmul.f32 0.5, %v4863_v5  ;;  %v6713_v52 = vld [vmem:[%s8402_s2 + $0x218] sm:$0xff]  }
0x25a9   :  { %v4871_v62 = vmul.f32 0.044715, %v4855_v59  ;;  %v4858_v20 = vadd.f32 %v6965_v3, %v4857_v7  ;;  %v4868_v28 = vmul.f32 0.5, %v4855_v59  ;;  %v6715_v7 = vld [vmem:[%s8402_s2 + $0x228] sm:$0xff]  }
0x25aa   :  { %v4876_v61 = vmul.f32 %v4873_v51, %v4863_v5  ;;  %v6714_v51 = vld [vmem:[%s8402_s2 + $0x220] sm:$0xff]  }
0x25ab   :  { %v4874_v24 = vmul.f32 %v4871_v62, %v4855_v59  ;;  %v4872_v21 = vmul.f32 0.044715, %v4858_v20  ;;  %v4869_v49 = vmul.f32 0.5, %v4858_v20  ;;  %v6716_v62 = vld [vmem:[%s8402_s2 + $0x230] sm:$0xff]  }
0x25ac   :  { %v4879_v30 = vmul.f32 %v4876_v61, %v4863_v5 }
0x25ad   :  { %v4877_v50 = vmul.f32 %v4874_v24, %v4855_v59  ;;  %v4875_v45 = vmul.f32 %v4872_v21, %v4858_v20 }
0x25ae   :  { %v4882_v8 = vadd.f32 %v4879_v30, %v4863_v5  ;;  %v8324_v5 = vadd.f32 %v5548_v36, %v1869_v44  ;;  %v6969_v44 = vmov 0.0  }
0x25af   :  { %v4878_v32 = vmul.f32 %v4875_v45, %v4858_v20  ;;  %v4880_v16 = vadd.f32 %v4877_v50, %v4855_v59  ;;  %v6712_v59 = vld [vmem:[%s8402_s2 + $0x210] sm:$0xff]   ;;  %v5698_v45 = vld [vmem:[%s8407_s5 + $0x2] ss:$0 sm:$0xff] }
0x25b0   :  { %v4885_v35 = vmul.f32 0.7978846, %v4882_v8  ;;  %v4952_v46 = vpack.c.bf16 %v8324_v5, %v8324_v5 }
0x25b1   :  { %v4881_v4 = vadd.f32 %v4878_v32, %v4858_v20  ;;  %v4883_v40 = vmul.f32 0.7978846, %v4880_v16  ;;  %v6717_v20 = vld [vmem:[%s8402_s2 + $0x238] sm:$0xff]  }
0x25b2   :  { %6910 = vtanh.f32 %v4885_v35 }
0x25b3   :  { %v4884_v22 = vmul.f32 0.7978846, %v4881_v4  ;;  %6912 = vtanh.f32 %v4883_v40 }
0x25b5   :  { %6914 = vtanh.f32 %v4884_v22 }
0x25bc   :  { %v6911_v25 = vpop.eup %6910 }
0x25bd   :  { %v6913_v31 = vpop.eup %6912  ;;  %v4891_v37 = vadd.f32 1.0, %v6911_v25 }
0x25be   :  { %v4889_v33 = vadd.f32 1.0, %v6913_v31 }
0x25bf   :  { %v6915_v23 = vpop.eup %6914  ;;  %v4894_v19 = vmul.f32 %v4891_v37, %v4870_v38 }
0x25c0   :  { %v4890_v9 = vadd.f32 1.0, %v6915_v23  ;;  %v4892_v13 = vmul.f32 %v4889_v33, %v4868_v28 }
0x25c1   :  { %v4896_v56 = vpack.c.bf16 %v4894_v19, %v4894_v19 }
0x25c2   :  { %v4893_v27 = vmul.f32 %v4890_v9, %v4869_v49 }
0x25c4   :  { %v4895_v47 = vpack.c.bf16 %v4893_v27, %v4892_v13 }
0x25c6   :  { %6535 = vmatprep.mubr.bf16.mxu1 %v4895_v47 }
0x25c7   :  { %6536 = vmatmul.mubr.bf16.vlgmr.msra.gmra.mrb[124].mxu1 %v4896_v56 }
0x25c8   :  { %6581 = vmatprep.mubr.msk.f32.mxu1 %vm6968_vm5, %v6969_v44 }
0x269a   :  { %v6537_v53 = vpop.f32.mrb[124].mxu1 }
0x269b   :  { %v4947_v17 = vadd.f32 %v6537_v53, %v8261_v14  ;;  %v4931_v10 = vpop.f32.mrb[125].mxu1  ;;  %v6966_v14 = vld [vmem:[%s8403_s4 + $0x17] ss:$0 sm:$0xff] }
0x269c   :  { %v4945_v1 = vadd.f32 %v4931_v10, %v8258_v39  ;;  %v6538_v57 = vpop.f32.mrb[126].mxu1  ;;  %v8312_v39 = vadd.f32 %v5548_v36, %v1867_v2 }
0x269d   :  { %v4934_v0 = vpop.f32.mrb[127].mxu1  ;;  %v4950_v63 = vadd.f32 %v6966_v14, %v4947_v17 }
0x269e   :  { %v4946_v29 = vadd.f32 %v4934_v0, %v8263_v26  ;;  %v4948_v48 = vadd.f32 %v6966_v14, %v4945_v1  ;;  %v6709_v26 = vld [vmem:[%s8406_s3 + $0x28] sm:$0xff]   ;;  %v4951_v3 = vpack.c.bf16 %v8310_v41, %v8312_v39 }
0x269f   :  { %v4958_v12 = vpack.c.bf16 %v4950_v63, %v4950_v63 }
0x26a0   :  { %v4949_v15 = vadd.f32 %v6966_v14, %v4946_v29 }
0x26a2   :  { %v4957_v43 = vpack.c.bf16 %v4949_v15, %v4948_v48 }
0x26a4   :  { %6543 = vmatprep.mubr.msk.bf16.mxu0 %vm35_vm0, %v4957_v43  ;;  %v6967_v43 = vmov 0.0|0.0  }
0x26a5   :  { %6544 = vmatmul.mubr.msk.bf16.vlgmr.msra.gmra.mrb[120].mxu0 %vm35_vm0, %v4958_v12  ;;  %6593 = vmatprep.subr.bf16.mxu1 %v6967_v43  ;;  %v5255_v12 = vlaneseq }
0x26a6   :  { %6548 = vmatpush3.bf16.msra.mxu0 %v6708_v18  ;;  %6551 = vmatprep.mubr.msk.bf16.mxu0 %vm35_vm0, %v4951_v3 }
0x26a7   :  { %6549 = vmatprep.subr.bf16.mxu0 %v6709_v26 }
0x26aa   :  { %6550 = vmatpush3.bf16.msra.mxu0 %v6709_v26  ;;  %v5256_v26 = vshrl.u32 %v5255_v12, 7 }
0x26ab   :  { %6555 = vmatprep.subr.bf16.mxu0 %v6710_v11 }
0x26ad   :  { %6552 = vmatmul.mubr.msk.bf16.vlgmr.msra.gmra.mrb[124].mxu0 %vm35_vm0, %v4952_v46  ;;  %v5261_v46 = vadd.s32 1, %v5256_v26 }
0x26ae   :  { %6556 = vmatpush3.bf16.msra.mxu0 %v6710_v11  ;;  %v5707_v11 = vld [vmem:[%s8403_s4 + $0x24] ss:$0 sm:$0xff] }
0x26af   :  { %6557 = vmatprep.subr.bf16.mxu0 %v6711_v34 }
0x26b2   :  { %6558 = vmatpush3.bf16.msra.mxu0 %v6711_v34 }
0x26b3   :  { %6559 = vmatprep.subr.bf16.mxu0 %v6712_v59 }
0x26b6   :  { %6560 = vmatpush3.bf16.msra.mxu0 %v6712_v59 }
0x26b7   :  { %6561 = vmatprep.subr.bf16.mxu0 %v6713_v52 }
0x26ba   :  { %6562 = vmatpush3.bf16.msra.mxu0 %v6713_v52 }
0x26bb   :  { %6563 = vmatprep.subr.bf16.mxu0 %v6714_v51 }
0x26be   :  { %6564 = vmatpush3.bf16.msra.mxu0 %v6714_v51 }
0x26bf   :  { %6565 = vmatprep.subr.bf16.mxu0 %v6715_v7 }
0x26c2   :  { %6566 = vmatpush3.bf16.msra.mxu0 %v6715_v7  ;;  %v5258_v7 = vand.u32 127, %v5255_v12 }
0x26c3   :  { %6567 = vmatprep.subr.bf16.mxu0 %v6716_v62 }
0x26c6   :  { %6568 = vmatpush3.bf16.msra.mxu0 %v6716_v62 }
0x26c7   :  { %6569 = vmatprep.subr.bf16.mxu0 %v6717_v20 }
0x26ca   :  { %6570 = vmatpush3.bf16.msra.mxu0 %v6717_v20 }
0x2778   :  { %v6545_v61 = vpop.f32.mrb[120].mxu0 }
0x2779   :  { %v5015_v24 = vpop.f32.mrb[121].mxu0 }
0x277a   :  { %v6546_v21 = vpop.f32.mrb[122].mxu0 }
0x277b   :  { %v5018_v30 = vpop.f32.mrb[123].mxu0  ;;  %v5267_v21 = vld [vmem:[%s8403_s4 + $0x40] sm:$0xff] }
0x2780   :  { %v6553_v50 = vpop.f32.mrb[124].mxu0 }
0x2781   :  { %v5090_v8 = vadd.f32 %v6553_v50, %v6545_v61  ;;  %v5081_v32 = vpop.f32.mrb[125].mxu0  ;;  %v5259_v61 = vmul.u32 9, %v5256_v26 }
0x2782   :  { %v5082_v16 = vadd.f32 %v5081_v32, %v5015_v24  ;;  %v6554_v35 = vpop.f32.mrb[126].mxu0  ;;  %v5262_v24 = vmul.u32 9, %v5261_v46 }
0x2783   :  { %v5102_v4 = vadd.f32 %v5698_v45, %v5090_v8  ;;  %v5084_v40 = vpop.f32.mrb[127].mxu0  ;;  %vm5260_vm6 = vcmp.ge.s32.totalorder %v5258_v7, %v5259_v61  ;;  %v5269_v35 = vld [vmem:[%s8403_s4 + $0x50] sm:$0x3] }
0x2784   :  { %v5100_v22 = vadd.f32 %v5698_v45, %v5082_v16  ;;  %v5085_v25 = vadd.f32 %v5084_v40, %v5018_v30  ;;  %v5268_v30 = vld [vmem:[%s8403_s4 + $0x48] sm:$0xff]  ;;  %vm5263_vm7 = vcmp.lt.s32.totalorder %v5258_v7, %v5262_v24 }
0x2785   :  { %v5108_v31 = vmul.f32 0.044715, %v5102_v4  ;;  %v5105_v57 = vmul.f32 0.5, %v5102_v4  ;;  %vm5264_vm8 = vmand %vm5260_vm6, %vm5263_vm7 }
0x2786   :  { %v5106_v37 = vmul.f32 0.044715, %v5100_v22  ;;  %v5101_v33 = vadd.f32 %v5698_v45, %v5085_v25  ;;  %v5103_v0 = vmul.f32 0.5, %v5100_v22 }
0x2787   :  { %v5111_v23 = vmul.f32 %v5108_v31, %v5102_v4 }
0x2788   :  { %v5109_v38 = vmul.f32 %v5106_v37, %v5100_v22  ;;  %v5107_v28 = vmul.f32 0.044715, %v5101_v33  ;;  %v5104_v2 = vmul.f32 0.5, %v5101_v33  ;;  %v5275_v37 = vld [vmem:[%s8403_s4 + $0x38] sm:$0x3] }
0x2789   :  { %v5114_v49 = vmul.f32 %v5111_v23, %v5102_v4 }
0x278a   :  { %v5110_v9 = vmul.f32 %v5107_v28, %v5101_v33  ;;  %v5112_v19 = vmul.f32 %v5109_v38, %v5100_v22  ;;  %v5712_v28 = vld [vmem:[%s8403_s4 + $0x25] ss:$0 sm:$0xff] }
0x278b   :  { %v5117_v13 = vadd.f32 %v5114_v49, %v5102_v4 }
0x278c   :  { %v5113_v27 = vmul.f32 %v5110_v9, %v5101_v33  ;;  %v5115_v47 = vadd.f32 %v5112_v19, %v5100_v22  ;;  %v5708_v22 = vsel %vm5264_vm8, 1.0, %v6969_v44 }
0x278d   :  { %v5120_v56 = vmul.f32 0.7978846, %v5117_v13 }
0x278e   :  { %v5116_v6 = vadd.f32 %v5113_v27, %v5101_v33  ;;  %v5118_v42 = vmul.f32 0.7978846, %v5115_v47 }
0x278f   :  { %6916 = vtanh.f32 %v5120_v56 }
0x2790   :  { %v5119_v18 = vmul.f32 0.7978846, %v5116_v6  ;;  %6918 = vtanh.f32 %v5118_v42 }
0x2792   :  { %6920 = vtanh.f32 %v5119_v18 }
0x2799   :  { %v6917_v53 = vpop.eup %6916 }
0x279a   :  { %v6919_v17 = vpop.eup %6918  ;;  %v5126_v10 = vadd.f32 1.0, %v6917_v53 }
0x279b   :  { %v5124_v58 = vadd.f32 1.0, %v6919_v17 }
0x279c   :  { %v6921_v1 = vpop.eup %6920  ;;  %v5129_v36 = vmul.f32 %v5126_v10, %v5105_v57 }
0x279d   :  { %v5125_v29 = vadd.f32 1.0, %v6921_v1  ;;  %v5127_v14 = vmul.f32 %v5124_v58, %v5103_v0 }
0x279e   :  { %v5131_v15 = vpack.c.bf16 %v5129_v36, %v5129_v36 }
0x279f   :  { %v5128_v63 = vmul.f32 %v5125_v29, %v5104_v2 }
0x27a1   :  { %v5130_v48 = vpack.c.bf16 %v5128_v63, %v5127_v14 }
0x27a3   :  { %6571 = vmatprep.mubr.bf16.mxu0 %v5130_v48 }
0x27a4   :  { %6572 = vmatmul.mubr.bf16.vlgmr.msra.gmra.mrb[128].mxu0 %v5131_v15 }
0x2877   :  { %v6573_v3 = vpop.f32.mrb[128].mxu0 }
0x2878   :  { %v5230_v34 = vpop.f32.mrb[129].mxu0  ;;  %v5246_v50 = vadd.f32 %v6573_v3, %v8324_v5  ;;  %v5273_v5 = vld [vmem:[%s8403_s4 + $0x28] sm:$0xff] }
0x2879   :  { %v5244_v59 = vadd.f32 %v5230_v34, %v8312_v39  ;;  %v6574_v52 = vpop.f32.mrb[130].mxu0  ;;  %v5276_v25 = vmul.f32 %v5273_v5, %v7934_v60  ;;  %v5709_v60 = vld [vmem:[%s8403_s4 + $0x26] ss:$0 sm:$0xff] }
0x287a   :  { %v5233_v51 = vpop.f32.mrb[131].mxu0  ;;  %v5254_v32 = vadd.f32 %v5707_v11, %v5246_v50 }
0x287b   :  { %v5252_v62 = vadd.f32 %v5707_v11, %v5244_v59  ;;  %v5245_v20 = vadd.f32 %v5233_v51, %v8310_v41  ;;  %v5274_v41 = vld [vmem:[%s8403_s4 + $0x30] sm:$0xff] }
0x287c   :  { %v5277_v4 = vmul.f32 %v5274_v41, %v7939_v55  ;;  %v5272_v40 = vmul.f32 %v5269_v35, %v5254_v32  ;;  %v5278_v55 = vmul.f32 %v5275_v37, %v7937_v54 }
0x287d   :  { %v5253_v45 = vadd.f32 %v5707_v11, %v5245_v20  ;;  %v5270_v39 = vmul.f32 %v5267_v21, %v5252_v62 }
0x287e   :  { %v6597_v31 = vpack.c.bf16 %v5277_v4, %v5276_v25 }
0x287f   :  { %v5271_v8 = vmul.f32 %v5268_v30, %v5253_v45 }
0x2881   :  { %v6594_v16 = vpack.c.bf16 %v5271_v8, %v5270_v39 }
0x2883   :  { %6595 = vmatpush3.bf16.msra.mxu1 %v6594_v16 }
0x2884   :  { %6579 = vmatprep.subr.mxu1 %v6969_v44 }
0x2887   :  { %6580 = vmatpush3.msk.msra.mxu1 %vm5287_vm9, %v5272_v40 }
0x2888   :  { %6596 = vmatprep.subr.bf16.mxu1 %v6967_v43  ;;  %6582 = vmatmul.mubr.msk.f32.vlgmr.msra.gmra.mrb[128].mxu1 %vm373_vm2, %v5708_v22 }
0x2889   :  { %6598 = vmatpush3.bf16.msra.mxu1 %v6597_v31  ;;  %6590 = vmatprep.mubr.msk.f32.mxu1 %vm6968_vm5, %v6969_v44 }
0x288a   :  { %6588 = vmatprep.subr.mxu1 %v6969_v44 }
0x288d   :  { %6589 = vmatpush3.msk.msra.mxu1 %vm5287_vm9, %v5278_v55 }
0x288e   :  { %6591 = vmatmul.mubr.msk.f32.vlgmr.msra.gmra.mrb[130].mxu1 %vm373_vm2, %v5708_v22 }
0x295b   :  { %v5357_v33 = vpop.f32.mrb[128].mxu1 }
0x295c   :  { %v5358_v23 = vadd.f32 %v5709_v60, %v5357_v33  ;;  %v6583_v38 = vpop.f32.mrb[129].mxu1 }
0x295e   :  { %5361 = vst.msk [vmem:[%s8408_s7] sm:$0x3] %vm42_vm1, %v5358_v23 }
0x2961   :  { %v5436_v54 = vpop.f32.mrb[130].mxu1 }
0x2962   :  { %v5437_v49 = vadd.f32 %v5712_v28, %v5436_v54  ;;  %v6592_v9 = vpop.f32.mrb[131].mxu1 }
0x2964   :  { %5440 = vst.msk [vmem:[%s8408_s7 + $0x2] sm:$0x3] %vm42_vm1, %v5437_v49 }

</bundles_post_ra>
